<compile_context>
chip_gen: v6e
topology: v6e:2x2x1
jax: 0.10.0
libtpu: 0.0.40
codegen_flags: <defaults>
</compile_context>

<pallas_src>
import jax
import jax.numpy as jnp
from jax import lax
from jax.experimental import pallas as pl
from jax.experimental.pallas import tpu as pltpu

LANES = 128


def _round_up(n, m):
    return ((n + m - 1) // m) * m


# GEMM K dims (im2col columns), zero-padded.
K1 = 32                               # conv1: 5*5*1  = 25  -> 32  (block == full dim)
K2 = _round_up(25 * 16, LANES)        # conv2: 5*5*16 = 400 -> 512
# Pooled-position (GEMM M per image) dims, padded to bf16 sublane multiples.
P1, P1_PAD = 14 * 14, 208             # conv1 pool output 14x14
P2, P2_PAD = 7 * 7, 64                # conv2 pool output 7x7
KF = P2_PAD * LANES                   # FC K: conv2's native (pos, lane) layout = 8192


# ----------------------------- Pallas kernels -----------------------------

def _conv_pool_kernel(a_ref, w_ref, b_ref, o_ref):
    """Fused conv-as-GEMM + 2x2 maxpool + bias + ReLU for a block of images.

    a_ref : (4, M, K) bf16 im2col patches, one slab per pool phase
            (M = images_per_step * padded pooled positions).
    w_ref : (K, 128) bf16 conv weights, C_out zero-padded to 128 lanes.
    b_ref : (1, 128) f32 bias (zero-padded lanes).
    o_ref : (M, 128) pooled + ReLU'd output (lane-dense store).

    Uses maxpool(relu(x_i + b)) == relu(max_i(x_i) + b) (monotonicity).
    Running max keeps only two f32 (M,128) accumulators live at a time.
    """
    w = w_ref[...]
    y = jnp.dot(a_ref[0], w, preferred_element_type=jnp.float32)
    for ph in range(1, 4):
        y = jnp.maximum(y, jnp.dot(a_ref[ph], w,
                                   preferred_element_type=jnp.float32))
    o_ref[...] = jnp.maximum(y + b_ref[...], 0.0).astype(o_ref.dtype)


def _images_per_step(bsz, cap=8):
    """Largest divisor of bsz that is <= cap while keeping >= 2 grid steps
    (so both v7x TensorCores get work); 1 if bsz < 4."""
    best = 1
    for cand in range(2, min(cap, max(bsz // 2, 1)) + 1):
        if bsz % cand == 0:
            best = cand
    return best


def conv_relu_pool(patches, w, b, *, bsz, p_pad, out_dtype):
    """patches: (4, bsz*p_pad, K) bf16; w: (K,128) bf16; b: (1,128) f32."""
    _, _, k = patches.shape
    b_blk = _images_per_step(bsz)
    m_blk = b_blk * p_pad
    n_steps = bsz // b_blk
    return pl.pallas_call(
        _conv_pool_kernel,
        out_shape=jax.ShapeDtypeStruct((bsz * p_pad, LANES), out_dtype),
        grid=(n_steps,),
        in_specs=[pl.BlockSpec((4, m_blk, k), lambda i: (0, i, 0)),
                  pl.BlockSpec((k, LANES), lambda i: (0, 0)),      # resident
                  pl.BlockSpec((1, LANES), lambda i: (0, 0))],     # resident
        out_specs=pl.BlockSpec((m_blk, LANES), lambda i: (i, 0)),
        compiler_params=pltpu.CompilerParams(
            dimension_semantics=("parallel",)),
    )(patches, w, b)


def _fc_kernel(a_ref, w_ref, b_ref, o_ref):
    a = a_ref[...].astype(jnp.bfloat16)     # bf16 MXU operands, f32 accumulation
    o_ref[...] = (jnp.dot(a, w_ref[...], preferred_element_type=jnp.float32)
                  + b_ref[...])


def linear(a, w, b):
    m, k = a.shape
    return pl.pallas_call(
        _fc_kernel,
        out_shape=jax.ShapeDtypeStruct((m, LANES), jnp.float32),
        grid=(1,),
        in_specs=[pl.BlockSpec((m, k), lambda i: (0, 0)),
                  pl.BlockSpec((k, LANES), lambda i: (0, 0)),
                  pl.BlockSpec((1, LANES), lambda i: (0, 0))],
        out_specs=pl.BlockSpec((m, LANES), lambda i: (0, 0)),
        compiler_params=pltpu.CompilerParams(
            dimension_semantics=("arbitrary",)),
    )(a, w, b)


# --------------------------------- glue ----------------------------------

def pooled_patches(x_nhwc, k_pad, p_pad, ksize=5, pad=2):
    """(B,H,W,C) -> (4, B*p_pad, k_pad) bf16.

    Slab (dh,dw) holds the im2col patches of the conv positions feeding the
    (dh,dw) corner of each 2x2 max-pool window.  Column order (kh, kw, cin),
    zero-padded from 25*C to k_pad; pooled positions padded to p_pad rows."""
    b, h, w, c = x_nhwc.shape
    ph, pw = h // 2, w // 2
    xp = jnp.pad(x_nhwc, ((0, 0), (pad, pad), (pad, pad), (0, 0)))
    slabs = []
    for dh in range(2):
        for dw in range(2):
            cols = []
            for kh in range(ksize):
                for kw in range(ksize):
                    # conv output (2i+dh, 2j+dw), tap (kh,kw) -> padded input
                    # position (2i+dh+kh, 2j+dw+kw)
                    cols.append(xp[:, dh + kh: dh + kh + 2 * ph: 2,
                                   dw + kw: dw + kw + 2 * pw: 2, :])
            a = jnp.stack(cols, axis=3).reshape(b, ph * pw, ksize * ksize * c)
            a = jnp.pad(a, ((0, 0), (0, p_pad - ph * pw),
                            (0, k_pad - ksize * ksize * c)))
            slabs.append(a)
    return (jnp.stack(slabs, axis=0)
            .astype(jnp.bfloat16)
            .reshape(4, b * p_pad, k_pad))


# ------------------------------- forward ---------------------------------

def cnn_forward(x_nchw, p):
    bsz = x_nchw.shape[0]
    x = jnp.transpose(x_nchw, (0, 2, 3, 1)).astype(jnp.bfloat16)   # NHWC, bf16

    # conv1: 1 -> 16, 5x5, stride 1, pad 2, + ReLU + maxpool2  (one pallas_call)
    a1 = pooled_patches(x, K1, P1_PAD)                       # (4, B*208, 32)
    p1 = conv_relu_pool(a1, p["w1m"], p["b1m"], bsz=bsz, p_pad=P1_PAD,
                        out_dtype=jnp.bfloat16)              # (B*208, 128) bf16
    p1 = p1.reshape(bsz, P1_PAD, LANES)[:, :P1, :16].reshape(bsz, 14, 14, 16)

    # conv2: 16 -> 32, 5x5, stride 1, pad 2, + ReLU + maxpool2 (one pallas_call)
    a2 = pooled_patches(p1, K2, P2_PAD)                      # (4, B*64, 512)
    p2 = conv_relu_pool(a2, p["w2m"], p["b2m"], bsz=bsz, p_pad=P2_PAD,
                        out_dtype=jnp.float32)               # (B*64, 128) f32

    # Linear 1568 -> 10: the FC weight was reordered at init to conv2's native
    # (pos, 128-padded-channel) layout, so the kernel consumes p2 directly
    # (no transpose / slice / pad on this path; padded rows hit zero weights).
    out = linear(p2.reshape(bsz, KF), p["wom"], p["bom"])[:, :10]

    # torch-ordered flattened features (the module returns them alongside out)
    feat = jnp.transpose(p2.reshape(bsz, P2_PAD, LANES)[:, :P2, :32],
                         (0, 2, 1)).reshape(bsz, 32 * P2)
    return out, feat


# ------------------------- params & pure-JAX references -------------------

def init_params(key):
    ks = jax.random.split(key, 6)

    def u(k, shape, fan_in):
        bound = 1.0 / (fan_in ** 0.5)
        return jax.random.uniform(k, shape, jnp.float32, -bound, bound)

    w1 = u(ks[0], (16, 1, 5, 5), 1 * 25)           # torch OIHW
    b1 = u(ks[1], (16,), 1 * 25)
    w2 = u(ks[2], (32, 16, 5, 5), 16 * 25)
    b2 = u(ks[3], (32,), 16 * 25)
    wl = u(ks[4], (10, 32 * 7 * 7), 32 * 7 * 7)    # torch Linear (out, in)
    bl = u(ks[5], (10,), 32 * 7 * 7)

    torch_params = dict(w1=w1, b1=b1, w2=w2, b2=b2, wl=wl, bl=bl)

    def conv_w(w, k_pad):
        o, i, kh, kw = w.shape
        wm = jnp.transpose(w, (2, 3, 1, 0)).reshape(kh * kw * i, o)  # (kh,kw,ci) rows
        wm = jnp.pad(wm, ((0, k_pad - kh * kw * i), (0, LANES - o)))
        return wm.astype(jnp.bfloat16)

    def vec(b):
        return jnp.pad(b, (0, LANES - b.shape[0])).reshape(1, LANES).astype(jnp.float32)

    # FC weight reordered into conv2's native layout:
    #   row (pos*128 + c)  <-  torch input column (c*49 + pos); padded rows/lanes zero.
    wl_pco = jnp.transpose(wl.reshape(10, 32, P2), (2, 1, 0))        # (49, 32, 10)
    wom = jnp.zeros((P2_PAD, LANES, LANES), jnp.float32)
    wom = wom.at[:P2, :32, :10].set(wl_pco)
    wom = wom.reshape(KF, LANES).astype(jnp.bfloat16)                # (8192, 128)

    kernel_params = dict(
        w1m=conv_w(w1, K1), b1m=vec(b1),
        w2m=conv_w(w2, K2), b2m=vec(b2),
        wom=wom, bom=vec(bl),
    )
    return torch_params, kernel_params


def _conv(x, w):
    return lax.conv_general_dilated(
        x, w, window_strides=(1, 1), padding=((2, 2), (2, 2)),
        dimension_numbers=("NCHW", "OIHW", "NCHW"),
        precision=lax.Precision.HIGHEST)


def _pool(x):
    init = jnp.array(-jnp.inf, dtype=x.dtype)
    return lax.reduce_window(x, init, lax.max, (1, 1, 2, 2), (1, 1, 2, 2), "VALID")


def reference_forward(x_nchw, tp):
    """Full-f32 reference == original PyTorch module semantics."""
    y = _pool(jax.nn.relu(_conv(x_nchw, tp["w1"]) + tp["b1"].reshape(1, -1, 1, 1)))
    y = _pool(jax.nn.relu(_conv(y, tp["w2"]) + tp["b2"].reshape(1, -1, 1, 1)))
    feat = y.reshape(y.shape[0], -1)
    out = jnp.dot(feat, tp["wl"].T, precision=lax.Precision.HIGHEST) + tp["bl"]
    return out, feat


def reference_forward_bf16(x_nchw, tp):
    """Same math with operands rounded to bf16 at exactly the points the Pallas
    pipeline rounds them (bf16 MXU inputs, f32 accumulation)."""
    r = lambda a: a.astype(jnp.bfloat16).astype(jnp.float32)
    y = _pool(jax.nn.relu(_conv(r(x_nchw), r(tp["w1"])) + tp["b1"].reshape(1, -1, 1, 1)))
    y = r(y)  # stage-1 kernel stores its pooled output in bf16
    y = _pool(jax.nn.relu(_conv(y, r(tp["w2"])) + tp["b2"].reshape(1, -1, 1, 1)))
    feat = y.reshape(y.shape[0], -1)
    out = jnp.dot(r(feat), r(tp["wl"]).T, precision=lax.Precision.HIGHEST) + tp["bl"]
    return out, feat


# --------------------------------- main -----------------------------------

if __name__ == "__main__":
    key = jax.random.PRNGKey(0)
    kp, kx = jax.random.split(key)
    torch_params, kernel_params = init_params(kp)

    # Input shape implied by Linear(32*7*7, 10): (B, 1, 28, 28), B=2.
    x = jax.random.normal(kx, (2, 1, 28, 28), jnp.float32)

    out, feat = jax.jit(cnn_forward)(x, kernel_params)
    out, feat = jax.block_until_ready((out, feat))
    assert out.shape == (2, 10) and feat.shape == (2, 32 * 7 * 7)

    # Tight check vs a precision-matched reference (identical bf16 rounding
    # points, f32 accumulation everywhere).
    ref_out_q, ref_feat_q = reference_forward_bf16(x, torch_params)
    assert jnp.allclose(feat, ref_feat_q, atol=1e-3, rtol=1e-3)
    assert jnp.allclose(out, ref_out_q, atol=1e-3, rtol=1e-3)

    # Loose sanity check vs the original full-f32 module semantics (slack
    # accounts only for feeding the MXU bf16 operands).
    ref_out, ref_feat = reference_forward(x, torch_params)
    assert jnp.allclose(feat, ref_feat, atol=1e-1, rtol=1e-1)
    assert jnp.allclose(out, ref_out, atol=1e-1, rtol=1e-1)

    print("KERNEL_OK")
</pallas_src>

<mosaic_0001>
module attributes {stable_mosaic.version = 11 : i64} {
  func.func @_conv_pool_kernel(%arg0: i32, %arg1: memref<4x208x32xbf16, #tpu.memory_space<vmem>>, %arg2: memref<32x128xbf16, #tpu.memory_space<vmem>>, %arg3: memref<1x128xf32, #tpu.memory_space<vmem>>, %arg4: memref<208x128xbf16, #tpu.memory_space<vmem>>) attributes {dimension_semantics = [#tpu.dimension_semantics<parallel>], iteration_bounds = array<i64: 2>, scalar_prefetch = 0 : i64, scratch_operands = 0 : i64, tpu.core_type = #tpu.core_type<tc>, window_params = [{transform_indices = @transform_0, window_bounds = array<i64: 4, 208, 32>}, {pipeline_mode = #tpu.pipeline_mode<synchronous>, transform_indices = @transform_1, window_bounds = array<i64: 32, 128>}, {pipeline_mode = #tpu.pipeline_mode<synchronous>, transform_indices = @transform_2, window_bounds = array<i64: 1, 128>}, {transform_indices = @transform_3, window_bounds = array<i64: 208, 128>}]} {
    %c0 = arith.constant 0 : index
    %c0_0 = arith.constant 0 : index
    %0 = vector.load %arg2[%c0, %c0_0] : memref<32x128xbf16, #tpu.memory_space<vmem>>, vector<32x128xbf16>
    %c0_1 = arith.constant 0 : index
    %c0_2 = arith.constant 0 : index
    %c0_3 = arith.constant 0 : index
    %1 = vector.load %arg1[%c0_1, %c0_2, %c0_3] : memref<4x208x32xbf16, #tpu.memory_space<vmem>>, vector<1x208x32xbf16>
    %2 = vector.shape_cast %1 : vector<1x208x32xbf16> to vector<208x32xbf16>
    %cst = arith.constant dense<0.000000e+00> : vector<208x128xf32>
    %3 = tpu.matmul %2, %0, %cst {dimension_numbers = #tpu.dot_dimension_numbers<[1], [0], [0], [1], [0, 0, 1, 1], [], []>} : vector<208x32xbf16>, vector<32x128xbf16>, vector<208x128xf32> -> vector<208x128xf32>
    %c1 = arith.constant 1 : index
    %c0_4 = arith.constant 0 : index
    %c0_5 = arith.constant 0 : index
    %4 = vector.load %arg1[%c1, %c0_4, %c0_5] : memref<4x208x32xbf16, #tpu.memory_space<vmem>>, vector<1x208x32xbf16>
    %5 = vector.shape_cast %4 : vector<1x208x32xbf16> to vector<208x32xbf16>
    %cst_6 = arith.constant dense<0.000000e+00> : vector<208x128xf32>
    %6 = tpu.matmul %5, %0, %cst_6 {dimension_numbers = #tpu.dot_dimension_numbers<[1], [0], [0], [1], [0, 0, 1, 1], [], []>} : vector<208x32xbf16>, vector<32x128xbf16>, vector<208x128xf32> -> vector<208x128xf32>
    %7 = arith.maximumf %3, %6 : vector<208x128xf32>
    %c2 = arith.constant 2 : index
    %c0_7 = arith.constant 0 : index
    %c0_8 = arith.constant 0 : index
    %8 = vector.load %arg1[%c2, %c0_7, %c0_8] : memref<4x208x32xbf16, #tpu.memory_space<vmem>>, vector<1x208x32xbf16>
    %9 = vector.shape_cast %8 : vector<1x208x32xbf16> to vector<208x32xbf16>
    %cst_9 = arith.constant dense<0.000000e+00> : vector<208x128xf32>
    %10 = tpu.matmul %9, %0, %cst_9 {dimension_numbers = #tpu.dot_dimension_numbers<[1], [0], [0], [1], [0, 0, 1, 1], [], []>} : vector<208x32xbf16>, vector<32x128xbf16>, vector<208x128xf32> -> vector<208x128xf32>
    %11 = arith.maximumf %7, %10 : vector<208x128xf32>
    %c3 = arith.constant 3 : index
    %c0_10 = arith.constant 0 : index
    %c0_11 = arith.constant 0 : index
    %12 = vector.load %arg1[%c3, %c0_10, %c0_11] : memref<4x208x32xbf16, #tpu.memory_space<vmem>>, vector<1x208x32xbf16>
    %13 = vector.shape_cast %12 : vector<1x208x32xbf16> to vector<208x32xbf16>
    %cst_12 = arith.constant dense<0.000000e+00> : vector<208x128xf32>
    %14 = tpu.matmul %13, %0, %cst_12 {dimension_numbers = #tpu.dot_dimension_numbers<[1], [0], [0], [1], [0, 0, 1, 1], [], []>} : vector<208x32xbf16>, vector<32x128xbf16>, vector<208x128xf32> -> vector<208x128xf32>
    %15 = arith.maximumf %11, %14 : vector<208x128xf32>
    %c0_13 = arith.constant 0 : index
    %c0_14 = arith.constant 0 : index
    %16 = vector.load %arg3[%c0_13, %c0_14] : memref<1x128xf32, #tpu.memory_space<vmem>>, vector<1x128xf32>
    %17 = vector.broadcast %16 : vector<1x128xf32> to vector<208x128xf32>
    %18 = arith.addf %15, %17 : vector<208x128xf32>
    %cst_15 = arith.constant 0.000000e+00 : f32
    %19 = vector.broadcast %cst_15 : f32 to vector<208x128xf32>
    %20 = arith.maximumf %18, %19 : vector<208x128xf32>
    %21 = arith.truncf %20 : vector<208x128xf32> to vector<208x128xbf16>
    %c0_16 = arith.constant 0 : index
    %c0_17 = arith.constant 0 : index
    %22 = vector.load %arg4[%c0_16, %c0_17] : memref<208x128xbf16, #tpu.memory_space<vmem>>, vector<208x128xbf16>
    tpu.vector_store %arg4[%c0_16, %c0_17], %21 {strides = array<i32>} : memref<208x128xbf16, #tpu.memory_space<vmem>>, vector<208x128xbf16>,
    return
  }
  func.func @transform_0(%arg0: i32) -> (i32, i32, i32) {
    %c0_i32 = arith.constant 0 : i32
    %c0_i32_0 = arith.constant 0 : i32
    %c0_i32_1 = arith.constant 0 : i32
    return %c0_i32, %arg0, %c0_i32_0 : i32, i32, i32
  }
  func.func @transform_1(%arg0: i32) -> (i32, i32) {
    %c0_i32 = arith.constant 0 : i32
    %c0_i32_0 = arith.constant 0 : i32
    %c0_i32_1 = arith.constant 0 : i32
    return %c0_i32, %c0_i32_0 : i32, i32
  }
  func.func @transform_2(%arg0: i32) -> (i32, i32) {
    %c0_i32 = arith.constant 0 : i32
    %c0_i32_0 = arith.constant 0 : i32
    %c0_i32_1 = arith.constant 0 : i32
    return %c0_i32, %c0_i32_0 : i32, i32
  }
  func.func @transform_3(%arg0: i32) -> (i32, i32) {
    %c0_i32 = arith.constant 0 : i32
    %c0_i32_0 = arith.constant 0 : i32
    return %arg0, %c0_i32 : i32, i32
  }
}

module attributes {stable_mosaic.version = 11 : i64} {
  func.func @_conv_pool_kernel(%arg0: i32, %arg1: memref<4x64x512xbf16, #tpu.memory_space<vmem>>, %arg2: memref<512x128xbf16, #tpu.memory_space<vmem>>, %arg3: memref<1x128xf32, #tpu.memory_space<vmem>>, %arg4: memref<64x128xf32, #tpu.memory_space<vmem>>) attributes {dimension_semantics = [#tpu.dimension_semantics<parallel>], iteration_bounds = array<i64: 2>, scalar_prefetch = 0 : i64, scratch_operands = 0 : i64, tpu.core_type = #tpu.core_type<tc>, window_params = [{transform_indices = @transform_0, window_bounds = array<i64: 4, 64, 512>}, {pipeline_mode = #tpu.pipeline_mode<synchronous>, transform_indices = @transform_1, window_bounds = array<i64: 512, 128>}, {pipeline_mode = #tpu.pipeline_mode<synchronous>, transform_indices = @transform_2, window_bounds = array<i64: 1, 128>}, {transform_indices = @transform_3, window_bounds = array<i64: 64, 128>}]} {
    %c0 = arith.constant 0 : index
    %c0_0 = arith.constant 0 : index
    %0 = vector.load %arg2[%c0, %c0_0] : memref<512x128xbf16, #tpu.memory_space<vmem>>, vector<512x128xbf16>
    %c0_1 = arith.constant 0 : index
    %c0_2 = arith.constant 0 : index
    %c0_3 = arith.constant 0 : index
    %1 = vector.load %arg1[%c0_1, %c0_2, %c0_3] : memref<4x64x512xbf16, #tpu.memory_space<vmem>>, vector<1x64x512xbf16>
    %2 = vector.shape_cast %1 : vector<1x64x512xbf16> to vector<64x512xbf16>
    %cst = arith.constant dense<0.000000e+00> : vector<64x128xf32>
    %3 = tpu.matmul %2, %0, %cst {dimension_numbers = #tpu.dot_dimension_numbers<[1], [0], [0], [1], [0, 0, 1, 1], [], []>} : vector<64x512xbf16>, vector<512x128xbf16>, vector<64x128xf32> -> vector<64x128xf32>
    %c1 = arith.constant 1 : index
    %c0_4 = arith.constant 0 : index
    %c0_5 = arith.constant 0 : index
    %4 = vector.load %arg1[%c1, %c0_4, %c0_5] : memref<4x64x512xbf16, #tpu.memory_space<vmem>>, vector<1x64x512xbf16>
    %5 = vector.shape_cast %4 : vector<1x64x512xbf16> to vector<64x512xbf16>
    %cst_6 = arith.constant dense<0.000000e+00> : vector<64x128xf32>
    %6 = tpu.matmul %5, %0, %cst_6 {dimension_numbers = #tpu.dot_dimension_numbers<[1], [0], [0], [1], [0, 0, 1, 1], [], []>} : vector<64x512xbf16>, vector<512x128xbf16>, vector<64x128xf32> -> vector<64x128xf32>
    %7 = arith.maximumf %3, %6 : vector<64x128xf32>
    %c2 = arith.constant 2 : index
    %c0_7 = arith.constant 0 : index
    %c0_8 = arith.constant 0 : index
    %8 = vector.load %arg1[%c2, %c0_7, %c0_8] : memref<4x64x512xbf16, #tpu.memory_space<vmem>>, vector<1x64x512xbf16>
    %9 = vector.shape_cast %8 : vector<1x64x512xbf16> to vector<64x512xbf16>
    %cst_9 = arith.constant dense<0.000000e+00> : vector<64x128xf32>
    %10 = tpu.matmul %9, %0, %cst_9 {dimension_numbers = #tpu.dot_dimension_numbers<[1], [0], [0], [1], [0, 0, 1, 1], [], []>} : vector<64x512xbf16>, vector<512x128xbf16>, vector<64x128xf32> -> vector<64x128xf32>
    %11 = arith.maximumf %7, %10 : vector<64x128xf32>
    %c3 = arith.constant 3 : index
    %c0_10 = arith.constant 0 : index
    %c0_11 = arith.constant 0 : index
    %12 = vector.load %arg1[%c3, %c0_10, %c0_11] : memref<4x64x512xbf16, #tpu.memory_space<vmem>>, vector<1x64x512xbf16>
    %13 = vector.shape_cast %12 : vector<1x64x512xbf16> to vector<64x512xbf16>
    %cst_12 = arith.constant dense<0.000000e+00> : vector<64x128xf32>
    %14 = tpu.matmul %13, %0, %cst_12 {dimension_numbers = #tpu.dot_dimension_numbers<[1], [0], [0], [1], [0, 0, 1, 1], [], []>} : vector<64x512xbf16>, vector<512x128xbf16>, vector<64x128xf32> -> vector<64x128xf32>
    %15 = arith.maximumf %11, %14 : vector<64x128xf32>
    %c0_13 = arith.constant 0 : index
    %c0_14 = arith.constant 0 : index
    %16 = vector.load %arg3[%c0_13, %c0_14] : memref<1x128xf32, #tpu.memory_space<vmem>>, vector<1x128xf32>
    %17 = vector.broadcast %16 : vector<1x128xf32> to vector<64x128xf32>
    %18 = arith.addf %15, %17 : vector<64x128xf32>
    %cst_15 = arith.constant 0.000000e+00 : f32
    %19 = vector.broadcast %cst_15 : f32 to vector<64x128xf32>
    %20 = arith.maximumf %18, %19 : vector<64x128xf32>
    %c0_16 = arith.constant 0 : index
    %c0_17 = arith.constant 0 : index
    %21 = vector.load %arg4[%c0_16, %c0_17] : memref<64x128xf32, #tpu.memory_space<vmem>>, vector<64x128xf32>
    tpu.vector_store %arg4[%c0_16, %c0_17], %20 {strides = array<i32>} : memref<64x128xf32, #tpu.memory_space<vmem>>, vector<64x128xf32>,
    return
  }
  func.func @transform_0(%arg0: i32) -> (i32, i32, i32) {
    %c0_i32 = arith.constant 0 : i32
    %c0_i32_0 = arith.constant 0 : i32
    %c0_i32_1 = arith.constant 0 : i32
    return %c0_i32, %arg0, %c0_i32_0 : i32, i32, i32
  }
  func.func @transform_1(%arg0: i32) -> (i32, i32) {
    %c0_i32 = arith.constant 0 : i32
    %c0_i32_0 = arith.constant 0 : i32
    %c0_i32_1 = arith.constant 0 : i32
    return %c0_i32, %c0_i32_0 : i32, i32
  }
  func.func @transform_2(%arg0: i32) -> (i32, i32) {
    %c0_i32 = arith.constant 0 : i32
    %c0_i32_0 = arith.constant 0 : i32
    %c0_i32_1 = arith.constant 0 : i32
    return %c0_i32, %c0_i32_0 : i32, i32
  }
  func.func @transform_3(%arg0: i32) -> (i32, i32) {
    %c0_i32 = arith.constant 0 : i32
    %c0_i32_0 = arith.constant 0 : i32
    return %arg0, %c0_i32 : i32, i32
  }
}

module attributes {stable_mosaic.version = 11 : i64} {
  func.func @_fc_kernel(%arg0: i32, %arg1: memref<2x8192xf32, #tpu.memory_space<vmem>>, %arg2: memref<8192x128xbf16, #tpu.memory_space<vmem>>, %arg3: memref<1x128xf32, #tpu.memory_space<vmem>>, %arg4: memref<2x128xf32, #tpu.memory_space<vmem>>) attributes {dimension_semantics = [#tpu.dimension_semantics<arbitrary>], iteration_bounds = array<i64: 1>, scalar_prefetch = 0 : i64, scratch_operands = 0 : i64, tpu.core_type = #tpu.core_type<tc>, window_params = [{pipeline_mode = #tpu.pipeline_mode<synchronous>, transform_indices = @transform_0, window_bounds = array<i64: 2, 8192>}, {pipeline_mode = #tpu.pipeline_mode<synchronous>, transform_indices = @transform_1, window_bounds = array<i64: 8192, 128>}, {pipeline_mode = #tpu.pipeline_mode<synchronous>, transform_indices = @transform_2, window_bounds = array<i64: 1, 128>}, {pipeline_mode = #tpu.pipeline_mode<synchronous>, transform_indices = @transform_3, window_bounds = array<i64: 2, 128>}]} {
    %c0 = arith.constant 0 : index
    %c0_0 = arith.constant 0 : index
    %0 = vector.load %arg1[%c0, %c0_0] : memref<2x8192xf32, #tpu.memory_space<vmem>>, vector<2x8192xf32>
    %1 = arith.truncf %0 : vector<2x8192xf32> to vector<2x8192xbf16>
    %c0_1 = arith.constant 0 : index
    %c0_2 = arith.constant 0 : index
    %2 = vector.load %arg2[%c0_1, %c0_2] : memref<8192x128xbf16, #tpu.memory_space<vmem>>, vector<8192x128xbf16>
    %cst = arith.constant dense<0.000000e+00> : vector<2x128xf32>
    %3 = tpu.matmul %1, %2, %cst {dimension_numbers = #tpu.dot_dimension_numbers<[1], [0], [0], [1], [0, 0, 1, 1], [], []>} : vector<2x8192xbf16>, vector<8192x128xbf16>, vector<2x128xf32> -> vector<2x128xf32>
    %c0_3 = arith.constant 0 : index
    %c0_4 = arith.constant 0 : index
    %4 = vector.load %arg3[%c0_3, %c0_4] : memref<1x128xf32, #tpu.memory_space<vmem>>, vector<1x128xf32>
    %5 = vector.broadcast %4 : vector<1x128xf32> to vector<2x128xf32>
    %6 = arith.addf %3, %5 : vector<2x128xf32>
    %c0_5 = arith.constant 0 : index
    %c0_6 = arith.constant 0 : index
    %7 = vector.load %arg4[%c0_5, %c0_6] : memref<2x128xf32, #tpu.memory_space<vmem>>, vector<2x128xf32>
    tpu.vector_store %arg4[%c0_5, %c0_6], %6 {strides = array<i32>} : memref<2x128xf32, #tpu.memory_space<vmem>>, vector<2x128xf32>,
    return
  }
  func.func @transform_0(%arg0: i32) -> (i32, i32) {
    %c0_i32 = arith.constant 0 : i32
    %c0_i32_0 = arith.constant 0 : i32
    %c0_i32_1 = arith.constant 0 : i32
    return %c0_i32, %c0_i32_0 : i32, i32
  }
  func.func @transform_1(%arg0: i32) -> (i32, i32) {
    %c0_i32 = arith.constant 0 : i32
    %c0_i32_0 = arith.constant 0 : i32
    %c0_i32_1 = arith.constant 0 : i32
    return %c0_i32, %c0_i32_0 : i32, i32
  }
  func.func @transform_2(%arg0: i32) -> (i32, i32) {
    %c0_i32 = arith.constant 0 : i32
    %c0_i32_0 = arith.constant 0 : i32
    %c0_i32_1 = arith.constant 0 : i32
    return %c0_i32, %c0_i32_0 : i32, i32
  }
  func.func @transform_3(%arg0: i32) -> (i32, i32) {
    %c0_i32 = arith.constant 0 : i32
    %c0_i32_0 = arith.constant 0 : i32
    %c0_i32_1 = arith.constant 0 : i32
    return %c0_i32, %c0_i32_0 : i32, i32
  }
}

</mosaic_0001>

<bundles_post_ra>
// kernel: cnn_forward.3
= control target key start
LH: loop header
LB: loop body
LE: loop exit
PB: predicated region body
PF: predicated region fallthrough
CT: control target
= control target key end

     0   :  { %s2783_s12 = smov 0   ;;  %s2785_s13 = smov 0   ;;  %s3447_s0 = inlined_call_operand.vmem [shape: bf16[4,416,32], index: 0, kind: input, shape index: {}]   ;;  %s3448_s1 = inlined_call_operand.vmem [shape: bf16[32,128], index: 1, kind: input, shape index: {}]   ;;  %s3449_s2 = inlined_call_operand.vmem [shape: f32[1,128], index: 2, kind: input, shape index: {}]   ;;  %s3450_s3 = inlined_call_operand.vmem [shape: bf16[416,128], index: 3, kind: output, shape index: {}]  }
   0x1   :  { %s2787_s14 = smov 0  }
   0x2 LB: > { %s2047_s15 = sadd.s32 4294967295, %s2759_s14   ;;  %s2800_s16 = sadd.s32 1, %s2759_s14   ;;  %s2759_s14 = sphi %s2787_s14, %s3490_s14   ;;  %s2755_s13 = sphi %s2785_s13, %s3489_s13   ;;  %s2751_s12 = sphi %s2783_s12, %s3488_s12  }
   0x3   : > { %s17_s17 = ssub.s32 %s2759_s14, %s2800_s16  ;;  %s20_s18 = sadd.s32 1, %s2755_s13 }
   0x4   : > { %p18_p0 = scmp.eq.s32.totalorder %s17_s17, 0  ;;  %p27_p1 = scmp.ne.s32.totalorder %s2755_s13, %s2751_s12 }
   0x5   : > { %p28_p2 = scmp.eq.s32.totalorder %s2759_s14, 0  ;;  %p2050_p4 = scmp.ge.s32.totalorder %s2759_s14, 2 }
   0x6   : > { %s2809_s19 = scalar_select %p18_p0, %s2755_s13, %s20_s18  }
   0x7   : > { %p29_p3 = por %p28_p2, %p27_p1  ;;  %127 = sbr.rel (%p2050_p4) target bundleno = 43 (0x2b), region = 24 }
   0xc   : > { %130 = sbr.rel (!%p29_p3) target bundleno = 43 (0x2b), region = 28  ;;  %s132_s20 = sand.u32 (%p29_p3), 1, %s2755_s13  }
   0xd   : > { %s2267_s21 = smul.u32 (%p29_p3), 104, %s2759_s14 }
   0xe   : > { %s2655_s22 = smul.u32 (%p29_p3), 416, %s132_s20 }
   0xf   : > { %s2817_s25 = scalar_lea.vmem (%p29_p3), %s3447_s0, %s2267_s21 }
  0x10   : > { %v154_v0 = vld [vmem:[%s2817_s25] sm:$0xff] (%p29_p3)   ;;  %v158_v1 = vld [vmem:[%s2817_s25 + $0x8] sm:$0xff] (%p29_p3)   ;;  %v162_v2 = vld [vmem:[%s2817_s25 + $0x10] sm:$0xff] (%p29_p3)   ;;  %s2822_s26 = scalar_lea.vmem (%p29_p3), [#allocation2], %s2655_s22 }
  0x11   : > { %155 = vst [vmem:[%s2822_s26] sm:$0xff] %v154_v0   ;;  %159 = vst [vmem:[%s2822_s26 + $0x8] sm:$0xff] %v158_v1   ;;  %v166_v3 = vld [vmem:[%s2817_s25 + $0x18] sm:$0xff]   ;;  %v170_v4 = vld [vmem:[%s2817_s25 + $0x20] sm:$0xff]  }
  0x12   : > { %163 = vst [vmem:[%s2822_s26 + $0x10] sm:$0xff] %v162_v2   ;;  %v174_v5 = vld [vmem:[%s2817_s25 + $0x28] sm:$0xff]   ;;  %167 = vst [vmem:[%s2822_s26 + $0x18] sm:$0xff] %v166_v3   ;;  %v178_v6 = vld [vmem:[%s2817_s25 + $0x30] sm:$0xff]  }
  0x13   : > { %171 = vst [vmem:[%s2822_s26 + $0x20] sm:$0xff] %v170_v4   ;;  %175 = vst [vmem:[%s2822_s26 + $0x28] sm:$0xff] %v174_v5   ;;  %v182_v7 = vld [vmem:[%s2817_s25 + $0x38] sm:$0xff]   ;;  %v186_v8 = vld [vmem:[%s2817_s25 + $0x40] sm:$0xff]  }
  0x14   : > { %179 = vst [vmem:[%s2822_s26 + $0x30] sm:$0xff] %v178_v6   ;;  %183 = vst [vmem:[%s2822_s26 + $0x38] sm:$0xff] %v182_v7   ;;  %v190_v9 = vld [vmem:[%s2817_s25 + $0x48] sm:$0xff]   ;;  %v194_v10 = vld [vmem:[%s2817_s25 + $0x50] sm:$0xff]  }
  0x15   : > { %187 = vst [vmem:[%s2822_s26 + $0x40] sm:$0xff] %v186_v8   ;;  %v198_v11 = vld [vmem:[%s2817_s25 + $0x58] sm:$0xff]   ;;  %191 = vst [vmem:[%s2822_s26 + $0x48] sm:$0xff] %v190_v9   ;;  %v202_v12 = vld [vmem:[%s2817_s25 + $0x60] sm:$0xff]  }
  0x16   : > { %195 = vst [vmem:[%s2822_s26 + $0x50] sm:$0xff] %v194_v10   ;;  %199 = vst [vmem:[%s2822_s26 + $0x58] sm:$0xff] %v198_v11   ;;  %v206_v13 = vld [vmem:[%s2817_s25 + $0xd0] sm:$0xff]   ;;  %v210_v14 = vld [vmem:[%s2817_s25 + $0xd8] sm:$0xff]  }
  0x17   : > { %203 = vst [vmem:[%s2822_s26 + $0x60] sm:$0xff] %v202_v12   ;;  %207 = vst [vmem:[%s2822_s26 + $0x68] sm:$0xff] %v206_v13   ;;  %v214_v15 = vld [vmem:[%s2817_s25 + $0xe0] sm:$0xff]   ;;  %v218_v16 = vld [vmem:[%s2817_s25 + $0xe8] sm:$0xff]  }
  0x18   : > { %211 = vst [vmem:[%s2822_s26 + $0x70] sm:$0xff] %v210_v14   ;;  %v222_v17 = vld [vmem:[%s2817_s25 + $0xf0] sm:$0xff]   ;;  %215 = vst [vmem:[%s2822_s26 + $0x78] sm:$0xff] %v214_v15   ;;  %v226_v18 = vld [vmem:[%s2817_s25 + $0xf8] sm:$0xff]  }
  0x19   : > { %219 = vst [vmem:[%s2822_s26 + $0x80] sm:$0xff] %v218_v16   ;;  %223 = vst [vmem:[%s2822_s26 + $0x88] sm:$0xff] %v222_v17   ;;  %v230_v19 = vld [vmem:[%s2817_s25 + $0x100] sm:$0xff]   ;;  %v234_v20 = vld [vmem:[%s2817_s25 + $0x108] sm:$0xff]  }
  0x1a   : > { %227 = vst [vmem:[%s2822_s26 + $0x90] sm:$0xff] %v226_v18   ;;  %231 = vst [vmem:[%s2822_s26 + $0x98] sm:$0xff] %v230_v19   ;;  %v238_v21 = vld [vmem:[%s2817_s25 + $0x110] sm:$0xff]   ;;  %v242_v22 = vld [vmem:[%s2817_s25 + $0x118] sm:$0xff]  }
  0x1b   : > { %235 = vst [vmem:[%s2822_s26 + $0xa0] sm:$0xff] %v234_v20   ;;  %v246_v23 = vld [vmem:[%s2817_s25 + $0x120] sm:$0xff]   ;;  %239 = vst [vmem:[%s2822_s26 + $0xa8] sm:$0xff] %v238_v21   ;;  %v250_v24 = vld [vmem:[%s2817_s25 + $0x128] sm:$0xff]  }
  0x1c   : > { %243 = vst [vmem:[%s2822_s26 + $0xb0] sm:$0xff] %v242_v22   ;;  %247 = vst [vmem:[%s2822_s26 + $0xb8] sm:$0xff] %v246_v23   ;;  %v254_v25 = vld [vmem:[%s2817_s25 + $0x130] sm:$0xff]   ;;  %v258_v26 = vld [vmem:[%s2817_s25 + $0x1a0] sm:$0xff]  }
  0x1d   : > { %251 = vst [vmem:[%s2822_s26 + $0xc0] sm:$0xff] %v250_v24   ;;  %255 = vst [vmem:[%s2822_s26 + $0xc8] sm:$0xff] %v254_v25   ;;  %v262_v27 = vld [vmem:[%s2817_s25 + $0x1a8] sm:$0xff]   ;;  %v266_v28 = vld [vmem:[%s2817_s25 + $0x1b0] sm:$0xff]  }
  0x1e   : > { %259 = vst [vmem:[%s2822_s26 + $0xd0] sm:$0xff] %v258_v26   ;;  %v270_v29 = vld [vmem:[%s2817_s25 + $0x1b8] sm:$0xff]   ;;  %263 = vst [vmem:[%s2822_s26 + $0xd8] sm:$0xff] %v262_v27   ;;  %v274_v30 = vld [vmem:[%s2817_s25 + $0x1c0] sm:$0xff]  }
  0x1f   : > { %267 = vst [vmem:[%s2822_s26 + $0xe0] sm:$0xff] %v266_v28   ;;  %271 = vst [vmem:[%s2822_s26 + $0xe8] sm:$0xff] %v270_v29   ;;  %v278_v31 = vld [vmem:[%s2817_s25 + $0x1c8] sm:$0xff]   ;;  %v282_v32 = vld [vmem:[%s2817_s25 + $0x1d0] sm:$0xff]  }
  0x20   : > { %275 = vst [vmem:[%s2822_s26 + $0xf0] sm:$0xff] %v274_v30   ;;  %279 = vst [vmem:[%s2822_s26 + $0xf8] sm:$0xff] %v278_v31   ;;  %v286_v33 = vld [vmem:[%s2817_s25 + $0x1d8] sm:$0xff]   ;;  %v290_v34 = vld [vmem:[%s2817_s25 + $0x1e0] sm:$0xff]  }
  0x21   : > { %283 = vst [vmem:[%s2822_s26 + $0x100] sm:$0xff] %v282_v32   ;;  %v294_v35 = vld [vmem:[%s2817_s25 + $0x1e8] sm:$0xff]   ;;  %287 = vst [vmem:[%s2822_s26 + $0x108] sm:$0xff] %v286_v33   ;;  %v298_v36 = vld [vmem:[%s2817_s25 + $0x1f0] sm:$0xff]  }
  0x22   : > { %291 = vst [vmem:[%s2822_s26 + $0x110] sm:$0xff] %v290_v34   ;;  %295 = vst [vmem:[%s2822_s26 + $0x118] sm:$0xff] %v294_v35   ;;  %v302_v37 = vld [vmem:[%s2817_s25 + $0x1f8] sm:$0xff]   ;;  %v306_v38 = vld [vmem:[%s2817_s25 + $0x200] sm:$0xff]  }
  0x23   : > { %299 = vst [vmem:[%s2822_s26 + $0x120] sm:$0xff] %v298_v36   ;;  %303 = vst [vmem:[%s2822_s26 + $0x128] sm:$0xff] %v302_v37   ;;  %v310_v39 = vld [vmem:[%s2817_s25 + $0x270] sm:$0xff]   ;;  %v314_v40 = vld [vmem:[%s2817_s25 + $0x278] sm:$0xff]  }
  0x24   : > { %307 = vst [vmem:[%s2822_s26 + $0x130] sm:$0xff] %v306_v38   ;;  %v318_v41 = vld [vmem:[%s2817_s25 + $0x280] sm:$0xff]   ;;  %311 = vst [vmem:[%s2822_s26 + $0x138] sm:$0xff] %v310_v39   ;;  %v322_v42 = vld [vmem:[%s2817_s25 + $0x288] sm:$0xff]  }
  0x25   : > { %315 = vst [vmem:[%s2822_s26 + $0x140] sm:$0xff] %v314_v40   ;;  %319 = vst [vmem:[%s2822_s26 + $0x148] sm:$0xff] %v318_v41   ;;  %v326_v43 = vld [vmem:[%s2817_s25 + $0x290] sm:$0xff]   ;;  %v330_v44 = vld [vmem:[%s2817_s25 + $0x298] sm:$0xff]  }
  0x26   : > { %323 = vst [vmem:[%s2822_s26 + $0x150] sm:$0xff] %v322_v42   ;;  %327 = vst [vmem:[%s2822_s26 + $0x158] sm:$0xff] %v326_v43   ;;  %v334_v45 = vld [vmem:[%s2817_s25 + $0x2a0] sm:$0xff]   ;;  %v338_v46 = vld [vmem:[%s2817_s25 + $0x2a8] sm:$0xff]  }
  0x27   : > { %331 = vst [vmem:[%s2822_s26 + $0x160] sm:$0xff] %v330_v44   ;;  %v342_v47 = vld [vmem:[%s2817_s25 + $0x2b0] sm:$0xff]   ;;  %335 = vst [vmem:[%s2822_s26 + $0x168] sm:$0xff] %v334_v45   ;;  %v346_v48 = vld [vmem:[%s2817_s25 + $0x2b8] sm:$0xff]  }
  0x28   : > { %339 = vst [vmem:[%s2822_s26 + $0x170] sm:$0xff] %v338_v46   ;;  %343 = vst [vmem:[%s2822_s26 + $0x178] sm:$0xff] %v342_v47   ;;  %v350_v49 = vld [vmem:[%s2817_s25 + $0x2c0] sm:$0xff]   ;;  %v354_v50 = vld [vmem:[%s2817_s25 + $0x2c8] sm:$0xff]  }
  0x29   : > { %347 = vst [vmem:[%s2822_s26 + $0x180] sm:$0xff] %v346_v48   ;;  %351 = vst [vmem:[%s2822_s26 + $0x188] sm:$0xff] %v350_v49   ;;  %v358_v51 = vld [vmem:[%s2817_s25 + $0x2d0] sm:$0xff]  }
  0x2a   : > { %355 = vst [vmem:[%s2822_s26 + $0x190] sm:$0xff] %v354_v50   ;;  %359 = vst [vmem:[%s2822_s26 + $0x198] sm:$0xff] %v358_v51  }
  0x2b PF: > { %p2052_p5 = scmp.ge.s32.totalorder %s2759_s14, 1  ;;  %p592_p6 = scmp.lt.s32.totalorder %s2759_s14, 3 }
  0x2d   : > { %p593_p7 = pnand %p2052_p5, %p592_p6 }
  0x2f   : > { %596 = sbr.rel (%p593_p7) target bundleno = 469 (0x1d5), region = 69 }
  0x34   : > { %v2683_v52 = vld [vmem:[%s3448_s1 + $0x8] sm:$0xff]   ;;  %v2761_v53 = vmov 0.0   ;;  %v2684_v54 = vld [vmem:[%s3448_s1] sm:$0xff]   ;;  %s599_s4 = sand.u32 1, %s2751_s12   ;;  %vm2762_vm0 = vmmov 0   ;;  %vm737_vm1 = vcmask 261120  }
  0x35   : > { %2431 = vmatprep.subr.bf16.mxu0 %v2761_v53  ;;  %2487 = vmatprep.subr.bf16.mxu1 %v2761_v53  ;;  %s2656_s5 = smul.u32 416, %s599_s4 }
  0x36   : > { %2432 = vmatpush3.bf16.msra.mxu0 %v2683_v52  ;;  %2488 = vmatpush3.bf16.msra.mxu1 %v2683_v52  ;;  %s623_s7 = smul.u32 26, %s2047_s15 }
  0x37   : > { %2433 = vmatprep.subr.bf16.mxu0 %v2761_v53  ;;  %2489 = vmatprep.subr.bf16.mxu1 %v2761_v53  ;;  %s2942_s6 = scalar_lea.vmem [#allocation2], %s2656_s5 }
  0x38   : > { %2435 = vmatprep.mubr.msk.bf16.mxu0 %vm2762_vm0, %v2761_v53  ;;  %2491 = vmatprep.mubr.msk.bf16.mxu1 %vm2762_vm0, %v2761_v53  ;;  %v2685_v55 = vld [vmem:[%s2942_s6] sm:$0xff]   ;;  %v2686_v56 = vld [vmem:[%s2942_s6 + $0x68] sm:$0xff]   ;;  %v2688_v58 = vld [vmem:[%s2942_s6 + $0x70] sm:$0xff]   ;;  %p624_p8 = scmp.lt.s32.totalorder %s623_s7, 51 }
  0x39   : > { %v2687_v57 = vld [vmem:[%s2942_s6 + $0x8] sm:$0xff]   ;;  %v2689_v59 = vld [vmem:[%s2942_s6 + $0x10] sm:$0xff]   ;;  %v2690_v60 = vld [vmem:[%s2942_s6 + $0x78] sm:$0xff]  }
  0x3a   : > { %2434 = vmatpush3.bf16.msra.mxu0 %v2684_v54  ;;  %2490 = vmatpush3.bf16.msra.mxu1 %v2684_v54  ;;  %v2691_v61 = vld [vmem:[%s2942_s6 + $0x18] sm:$0xff]   ;;  %v2692_v62 = vld [vmem:[%s2942_s6 + $0x80] sm:$0xff]   ;;  %v2694_v0 = vld [vmem:[%s2942_s6 + $0x88] sm:$0xff]   ;;  %s3492_s7 = smov (!%p624_p8, %s623_s7), 51 }
  0x3b   : > { %2543 = vmatprep.subr.bf16.mxu0 %v2761_v53  ;;  %2599 = vmatprep.subr.bf16.mxu1 %v2761_v53  ;;  %v2693_v63 = vld [vmem:[%s2942_s6 + $0x20] sm:$0xff]   ;;  %v2695_v1 = vld [vmem:[%s2942_s6 + $0x28] sm:$0xff]   ;;  %v2696_v2 = vld [vmem:[%s2942_s6 + $0x90] sm:$0xff]   ;;  %s2053_s10 = sshll.u32 %s3492_s7, 2 }
  0x3c   : > { %v2697_v3 = vld [vmem:[%s2942_s6 + $0x30] sm:$0xff]   ;;  %v2698_v4 = vld [vmem:[%s2942_s6 + $0x98] sm:$0xff]   ;;  %v2700_v6 = vld [vmem:[%s2942_s6 + $0xa0] sm:$0xff]   ;;  %s3329_s14 = scalar_lea.vmem %s3450_s3, %s2053_s10 }
  0x3d   : > { %2436 = vmatmul.mubr.msk.bf16.vlgmr.msra.gmra.mxu0 %vm737_vm1, %v2685_v55  ;;  %2492 = vmatmul.mubr.msk.bf16.vlgmr.msra.gmra.mxu1 %vm737_vm1, %v2686_v56  ;;  %v2699_v5 = vld [vmem:[%s2942_s6 + $0x38] sm:$0xff]   ;;  %v2701_v7 = vld [vmem:[%s2942_s6 + $0x40] sm:$0xff]   ;;  %v2702_v8 = vld [vmem:[%s2942_s6 + $0xa8] sm:$0xff]  }
  0x3e   : > { %2544 = vmatpush3.bf16.msra.mxu0 %v2683_v52  ;;  %2600 = vmatpush3.bf16.msra.mxu1 %v2683_v52  ;;  %v2703_v9 = vld [vmem:[%s2942_s6 + $0x48] sm:$0xff]   ;;  %v2704_v10 = vld [vmem:[%s2942_s6 + $0xb0] sm:$0xff]   ;;  %v2706_v12 = vld [vmem:[%s2942_s6 + $0xb8] sm:$0xff]  }
  0x3f   : > { %2439 = vmatprep.mubr.msk.bf16.mxu0 %vm2762_vm0, %v2761_v53  ;;  %2495 = vmatprep.mubr.msk.bf16.mxu1 %vm2762_vm0, %v2761_v53  ;;  %v2705_v11 = vld [vmem:[%s2942_s6 + $0x50] sm:$0xff]   ;;  %v2707_v13 = vld [vmem:[%s2942_s6 + $0x58] sm:$0xff]   ;;  %v2708_v14 = vld [vmem:[%s2942_s6 + $0xc0] sm:$0xff]  }
  0x40   : > { %2545 = vmatprep.subr.bf16.mxu0 %v2761_v53  ;;  %2601 = vmatprep.subr.bf16.mxu1 %v2761_v53  ;;  %v2709_v15 = vld [vmem:[%s2942_s6 + $0x60] sm:$0xff]   ;;  %v2710_v16 = vld [vmem:[%s2942_s6 + $0xc8] sm:$0xff]   ;;  %v2711_v17 = vld [vmem:[%s2942_s6 + $0xd0] sm:$0xff]  }
  0x41   : > { %v2712_v18 = vld [vmem:[%s2942_s6 + $0x138] sm:$0xff]   ;;  %v2714_v20 = vld [vmem:[%s2942_s6 + $0x140] sm:$0xff]   ;;  %v2716_v22 = vld [vmem:[%s2942_s6 + $0x148] sm:$0xff]  }
  0x42   : > { %2546 = vmatpush3.bf16.msra.mxu0 %v2684_v54  ;;  %2602 = vmatpush3.bf16.msra.mxu1 %v2684_v54  ;;  %v2713_v19 = vld [vmem:[%s2942_s6 + $0xd8] sm:$0xff]   ;;  %v2715_v21 = vld [vmem:[%s2942_s6 + $0xe0] sm:$0xff]   ;;  %v2717_v23 = vld [vmem:[%s2942_s6 + $0xe8] sm:$0xff]  }
  0x43   : > { %v2718_v24 = vld [vmem:[%s2942_s6 + $0x150] sm:$0xff]   ;;  %v2720_v26 = vld [vmem:[%s2942_s6 + $0x158] sm:$0xff]   ;;  %v2722_v28 = vld [vmem:[%s2942_s6 + $0x160] sm:$0xff]  }
  0x44   : > { %v2719_v25 = vld [vmem:[%s2942_s6 + $0xf0] sm:$0xff]   ;;  %v2721_v27 = vld [vmem:[%s2942_s6 + $0xf8] sm:$0xff]   ;;  %v2723_v29 = vld [vmem:[%s2942_s6 + $0x100] sm:$0xff]  }
  0x45   : > { %2440 = vmatmul.mubr.msk.bf16.gmra.mxu0 %vm737_vm1, %v2687_v57  ;;  %2496 = vmatmul.mubr.msk.bf16.gmra.mxu1 %vm737_vm1, %v2688_v58  ;;  %v2724_v30 = vld [vmem:[%s2942_s6 + $0x168] sm:$0xff]   ;;  %v2726_v32 = vld [vmem:[%s2942_s6 + $0x170] sm:$0xff]   ;;  %v2728_v34 = vld [vmem:[%s2942_s6 + $0x178] sm:$0xff]  }
  0x46   : > { %2443 = vmatprep.mubr.msk.bf16.mxu0 %vm2762_vm0, %v2761_v53  ;;  %2499 = vmatprep.mubr.msk.bf16.mxu1 %vm2762_vm0, %v2761_v53  ;;  %v2725_v31 = vld [vmem:[%s2942_s6 + $0x108] sm:$0xff]   ;;  %v2727_v33 = vld [vmem:[%s2942_s6 + $0x110] sm:$0xff]   ;;  %v2729_v35 = vld [vmem:[%s2942_s6 + $0x118] sm:$0xff]  }
  0x47   : > { %v2730_v36 = vld [vmem:[%s2942_s6 + $0x180] sm:$0xff]   ;;  %v2732_v38 = vld [vmem:[%s2942_s6 + $0x188] sm:$0xff]   ;;  %v2734_v40 = vld [vmem:[%s2942_s6 + $0x190] sm:$0xff]  }
  0x48   : > { %v2731_v37 = vld [vmem:[%s2942_s6 + $0x120] sm:$0xff]   ;;  %v2733_v39 = vld [vmem:[%s2942_s6 + $0x128] sm:$0xff]   ;;  %v2735_v48 = vld [vmem:[%s2942_s6 + $0x130] sm:$0xff]  }
  0x49   : > { %v2736_v49 = vld [vmem:[%s2942_s6 + $0x198] sm:$0xff]  }
  0x4d   : > { %2444 = vmatmul.mubr.msk.bf16.gmra.mxu0 %vm737_vm1, %v2689_v59  ;;  %2500 = vmatmul.mubr.msk.bf16.gmra.mxu1 %vm737_vm1, %v2690_v60 }
  0x4e   : > { %2447 = vmatprep.mubr.msk.bf16.mxu0 %vm2762_vm0, %v2761_v53  ;;  %2503 = vmatprep.mubr.msk.bf16.mxu1 %vm2762_vm0, %v2761_v53 }
  0x55   : > { %2448 = vmatmul.mubr.msk.bf16.gmra.mxu0 %vm737_vm1, %v2691_v61  ;;  %2504 = vmatmul.mubr.msk.bf16.gmra.mxu1 %vm737_vm1, %v2692_v62 }
  0x56   : > { %2451 = vmatprep.mubr.msk.bf16.mxu0 %vm2762_vm0, %v2761_v53  ;;  %2507 = vmatprep.mubr.msk.bf16.mxu1 %vm2762_vm0, %v2761_v53 }
  0x5d   : > { %2452 = vmatmul.mubr.msk.bf16.gmra.mxu0 %vm737_vm1, %v2693_v63  ;;  %2508 = vmatmul.mubr.msk.bf16.gmra.mxu1 %vm737_vm1, %v2694_v0 }
  0x5e   : > { %2455 = vmatprep.mubr.msk.bf16.mxu0 %vm2762_vm0, %v2761_v53  ;;  %2511 = vmatprep.mubr.msk.bf16.mxu1 %vm2762_vm0, %v2761_v53 }
  0x65   : > { %2456 = vmatmul.mubr.msk.bf16.gmra.mxu0 %vm737_vm1, %v2695_v1  ;;  %2512 = vmatmul.mubr.msk.bf16.gmra.mxu1 %vm737_vm1, %v2696_v2 }
  0x66   : > { %2459 = vmatprep.mubr.msk.bf16.mxu0 %vm2762_vm0, %v2761_v53  ;;  %2515 = vmatprep.mubr.msk.bf16.mxu1 %vm2762_vm0, %v2761_v53 }
  0x6d   : > { %2460 = vmatmul.mubr.msk.bf16.gmra.mxu0 %vm737_vm1, %v2697_v3  ;;  %2516 = vmatmul.mubr.msk.bf16.gmra.mxu1 %vm737_vm1, %v2698_v4 }
  0x6e   : > { %2463 = vmatprep.mubr.msk.bf16.mxu0 %vm2762_vm0, %v2761_v53  ;;  %2519 = vmatprep.mubr.msk.bf16.mxu1 %vm2762_vm0, %v2761_v53 }
  0x75   : > { %2464 = vmatmul.mubr.msk.bf16.gmra.mxu0 %vm737_vm1, %v2699_v5  ;;  %2520 = vmatmul.mubr.msk.bf16.gmra.mxu1 %vm737_vm1, %v2700_v6 }
  0x76   : > { %2467 = vmatprep.mubr.msk.bf16.mxu0 %vm2762_vm0, %v2761_v53  ;;  %2523 = vmatprep.mubr.msk.bf16.mxu1 %vm2762_vm0, %v2761_v53 }
  0x7d   : > { %2468 = vmatmul.mubr.msk.bf16.gmra.mxu0 %vm737_vm1, %v2701_v7  ;;  %2524 = vmatmul.mubr.msk.bf16.gmra.mxu1 %vm737_vm1, %v2702_v8 }
  0x7e   : > { %2471 = vmatprep.mubr.msk.bf16.mxu0 %vm2762_vm0, %v2761_v53  ;;  %2527 = vmatprep.mubr.msk.bf16.mxu1 %vm2762_vm0, %v2761_v53 }
  0x85   : > { %2472 = vmatmul.mubr.msk.bf16.gmra.mxu0 %vm737_vm1, %v2703_v9  ;;  %2528 = vmatmul.mubr.msk.bf16.gmra.mxu1 %vm737_vm1, %v2704_v10 }
  0x86   : > { %2475 = vmatprep.mubr.msk.bf16.mxu0 %vm2762_vm0, %v2761_v53  ;;  %2531 = vmatprep.mubr.msk.bf16.mxu1 %vm2762_vm0, %v2761_v53 }
  0x8d   : > { %2476 = vmatmul.mubr.msk.bf16.gmra.mxu0 %vm737_vm1, %v2705_v11  ;;  %2532 = vmatmul.mubr.msk.bf16.gmra.mxu1 %vm737_vm1, %v2706_v12 }
  0x8e   : > { %2479 = vmatprep.mubr.msk.bf16.mxu0 %vm2762_vm0, %v2761_v53  ;;  %2535 = vmatprep.mubr.msk.bf16.mxu1 %vm2762_vm0, %v2761_v53 }
  0x95   : > { %2480 = vmatmul.mubr.msk.bf16.gmra.mxu0 %vm737_vm1, %v2707_v13  ;;  %2536 = vmatmul.mubr.msk.bf16.gmra.mxu1 %vm737_vm1, %v2708_v14 }
  0x96   : > { %2483 = vmatprep.mubr.msk.bf16.mxu0 %vm2762_vm0, %v2761_v53  ;;  %2539 = vmatprep.mubr.msk.bf16.mxu1 %vm2762_vm0, %v2761_v53 }
  0x9d   : > { %2484 = vmatmul.mubr.msk.bf16.gmra.mxu0 %vm737_vm1, %v2709_v15  ;;  %2540 = vmatmul.mubr.msk.bf16.gmra.mxu1 %vm737_vm1, %v2710_v16 }
  0x9e   : > { %2547 = vmatprep.mubr.msk.bf16.mxu0 %vm2762_vm0, %v2761_v53  ;;  %2603 = vmatprep.mubr.msk.bf16.mxu1 %vm2762_vm0, %v2761_v53 }
  0xa5   : > { %2548 = vmatmul.mubr.msk.bf16.vlgmr.msra.gmra.mxu0 %vm737_vm1, %v2711_v17  ;;  %2604 = vmatmul.mubr.msk.bf16.vlgmr.msra.gmra.mxu1 %vm737_vm1, %v2712_v18 }
  0xa6   : > { %2551 = vmatprep.mubr.msk.bf16.mxu0 %vm2762_vm0, %v2761_v53  ;;  %2607 = vmatprep.mubr.msk.bf16.mxu1 %vm2762_vm0, %v2761_v53 }
  0xad   : > { %2552 = vmatmul.mubr.msk.bf16.gmra.mxu0 %vm737_vm1, %v2713_v19  ;;  %2608 = vmatmul.mubr.msk.bf16.gmra.mxu1 %vm737_vm1, %v2714_v20 }
  0xae   : > { %2555 = vmatprep.mubr.msk.bf16.mxu0 %vm2762_vm0, %v2761_v53  ;;  %2611 = vmatprep.mubr.msk.bf16.mxu1 %vm2762_vm0, %v2761_v53 }
  0xb5   : > { %2556 = vmatmul.mubr.msk.bf16.gmra.mxu0 %vm737_vm1, %v2715_v21  ;;  %2612 = vmatmul.mubr.msk.bf16.gmra.mxu1 %vm737_vm1, %v2716_v22 }
  0xb6   : > { %2559 = vmatprep.mubr.msk.bf16.mxu0 %vm2762_vm0, %v2761_v53  ;;  %2615 = vmatprep.mubr.msk.bf16.mxu1 %vm2762_vm0, %v2761_v53 }
  0xbd   : > { %2560 = vmatmul.mubr.msk.bf16.gmra.mxu0 %vm737_vm1, %v2717_v23  ;;  %2616 = vmatmul.mubr.msk.bf16.gmra.mxu1 %vm737_vm1, %v2718_v24 }
  0xbe   : > { %2563 = vmatprep.mubr.msk.bf16.mxu0 %vm2762_vm0, %v2761_v53  ;;  %2619 = vmatprep.mubr.msk.bf16.mxu1 %vm2762_vm0, %v2761_v53 }
  0xc5   : > { %2564 = vmatmul.mubr.msk.bf16.gmra.mxu0 %vm737_vm1, %v2719_v25  ;;  %2620 = vmatmul.mubr.msk.bf16.gmra.mxu1 %vm737_vm1, %v2720_v26 }
  0xc6   : > { %2567 = vmatprep.mubr.msk.bf16.mxu0 %vm2762_vm0, %v2761_v53  ;;  %2623 = vmatprep.mubr.msk.bf16.mxu1 %vm2762_vm0, %v2761_v53 }
  0xcd   : > { %2568 = vmatmul.mubr.msk.bf16.gmra.mxu0 %vm737_vm1, %v2721_v27  ;;  %2624 = vmatmul.mubr.msk.bf16.gmra.mxu1 %vm737_vm1, %v2722_v28 }
  0xce   : > { %2571 = vmatprep.mubr.msk.bf16.mxu0 %vm2762_vm0, %v2761_v53  ;;  %2627 = vmatprep.mubr.msk.bf16.mxu1 %vm2762_vm0, %v2761_v53 }
  0xd5   : > { %2572 = vmatmul.mubr.msk.bf16.gmra.mxu0 %vm737_vm1, %v2723_v29  ;;  %2628 = vmatmul.mubr.msk.bf16.gmra.mxu1 %vm737_vm1, %v2724_v30 }
  0xd6   : > { %2575 = vmatprep.mubr.msk.bf16.mxu0 %vm2762_vm0, %v2761_v53  ;;  %2631 = vmatprep.mubr.msk.bf16.mxu1 %vm2762_vm0, %v2761_v53 }
  0xdd   : > { %2576 = vmatmul.mubr.msk.bf16.gmra.mxu0 %vm737_vm1, %v2725_v31  ;;  %2632 = vmatmul.mubr.msk.bf16.gmra.mxu1 %vm737_vm1, %v2726_v32 }
  0xde   : > { %2579 = vmatprep.mubr.msk.bf16.mxu0 %vm2762_vm0, %v2761_v53  ;;  %2635 = vmatprep.mubr.msk.bf16.mxu1 %vm2762_vm0, %v2761_v53 }
  0xe5   : > { %2580 = vmatmul.mubr.msk.bf16.gmra.mxu0 %vm737_vm1, %v2727_v33  ;;  %2636 = vmatmul.mubr.msk.bf16.gmra.mxu1 %vm737_vm1, %v2728_v34 }
  0xe6   : > { %2583 = vmatprep.mubr.msk.bf16.mxu0 %vm2762_vm0, %v2761_v53  ;;  %2639 = vmatprep.mubr.msk.bf16.mxu1 %vm2762_vm0, %v2761_v53 }
  0xed   : > { %2584 = vmatmul.mubr.msk.bf16.gmra.mxu0 %vm737_vm1, %v2729_v35  ;;  %2640 = vmatmul.mubr.msk.bf16.gmra.mxu1 %vm737_vm1, %v2730_v36 }
  0xee   : > { %2587 = vmatprep.mubr.msk.bf16.mxu0 %vm2762_vm0, %v2761_v53  ;;  %2643 = vmatprep.mubr.msk.bf16.mxu1 %vm2762_vm0, %v2761_v53 }
  0xf5   : > { %2588 = vmatmul.mubr.msk.bf16.gmra.mxu0 %vm737_vm1, %v2731_v37  ;;  %2644 = vmatmul.mubr.msk.bf16.gmra.mxu1 %vm737_vm1, %v2732_v38 }
  0xf6   : > { %2591 = vmatprep.mubr.msk.bf16.mxu0 %vm2762_vm0, %v2761_v53  ;;  %2647 = vmatprep.mubr.msk.bf16.mxu1 %vm2762_vm0, %v2761_v53 }
  0xfd   : > { %v3142_v41 = vpop.f32.mrf.mxu0  ;;  %v3144_v42 = vpop.f32.mrf.mxu1  ;;  %2592 = vmatmul.mubr.msk.bf16.gmra.mxu0 %vm737_vm1, %v2733_v39  ;;  %2648 = vmatmul.mubr.msk.bf16.gmra.mxu1 %vm737_vm1, %v2734_v40 }
  0xfe   : > { %v1182_v43 = vmax.f32 %v3142_v41, %v3144_v42  ;;  %2595 = vmatprep.mubr.msk.bf16.mxu0 %vm2762_vm0, %v2761_v53  ;;  %2651 = vmatprep.mubr.msk.bf16.mxu1 %vm2762_vm0, %v2761_v53  ;;  %v3316_v53 = vld [vmem:[%s3449_s2] ss:$0 sm:$0xff] }
  0xff   : > { %v2437_v44 = vpop.f32.mrf.mxu0  ;;  %v2493_v45 = vpop.f32.mrf.mxu1 }
 0x101   : > { %v3154_v46 = vpop.f32.mrf.mxu0  ;;  %v3156_v47 = vpop.f32.mrf.mxu1 }
 0x103   : > { %v2438_v51 = vpop.f32.mrf.mxu0  ;;  %v2494_v52 = vpop.f32.mrf.mxu1 }
 0x105   : > { %v3162_v54 = vpop.f32.mrf.mxu0  ;;  %v3164_v55 = vpop.f32.mrf.mxu1  ;;  %2596 = vmatmul.mubr.msk.bf16.gmra.mxu0 %vm737_vm1, %v2735_v48  ;;  %2652 = vmatmul.mubr.msk.bf16.gmra.mxu1 %vm737_vm1, %v2736_v49 }
 0x107   : > { %v2441_v56 = vpop.f32.mrf.mxu0  ;;  %v2497_v57 = vpop.f32.mrf.mxu1 }
 0x109   : > { %v3170_v58 = vpop.f32.mrf.mxu0  ;;  %v3172_v59 = vpop.f32.mrf.mxu1 }
 0x10b   : > { %v2442_v61 = vpop.f32.mrf.mxu0  ;;  %v2498_v62 = vpop.f32.mrf.mxu1 }
 0x10d   : > { %v3176_v63 = vpop.f32.mrf.mxu0  ;;  %v3178_v0 = vpop.f32.mrf.mxu1 }
 0x10f   : > { %v2445_v2 = vpop.f32.mrf.mxu0  ;;  %v2501_v3 = vpop.f32.mrf.mxu1 }
 0x111   : > { %v3182_v4 = vpop.f32.mrf.mxu0  ;;  %v3184_v5 = vpop.f32.mrf.mxu1 }
 0x113   : > { %v2446_v7 = vpop.f32.mrf.mxu0  ;;  %v2502_v8 = vpop.f32.mrf.mxu1 }
 0x115   : > { %v3188_v9 = vpop.f32.mrf.mxu0  ;;  %v3190_v10 = vpop.f32.mrf.mxu1 }
 0x117   : > { %v2449_v12 = vpop.f32.mrf.mxu0  ;;  %v2505_v13 = vpop.f32.mrf.mxu1 }
 0x119   : > { %v3194_v14 = vpop.f32.mrf.mxu0  ;;  %v3196_v15 = vpop.f32.mrf.mxu1 }
 0x11b   : > { %v2450_v17 = vpop.f32.mrf.mxu0  ;;  %v2506_v18 = vpop.f32.mrf.mxu1 }
 0x11d   : > { %v3200_v19 = vpop.f32.mrf.mxu0  ;;  %v3202_v20 = vpop.f32.mrf.mxu1 }
 0x11f   : > { %v2453_v22 = vpop.f32.mrf.mxu0  ;;  %v2509_v23 = vpop.f32.mrf.mxu1 }
 0x121   : > { %v3206_v24 = vpop.f32.mrf.mxu0  ;;  %v3208_v25 = vpop.f32.mrf.mxu1 }
 0x123   : > { %v2454_v27 = vpop.f32.mrf.mxu0  ;;  %v2510_v28 = vpop.f32.mrf.mxu1 }
 0x125   : > { %v3212_v29 = vpop.f32.mrf.mxu0  ;;  %v3214_v30 = vpop.f32.mrf.mxu1 }
 0x127   : > { %v2457_v32 = vpop.f32.mrf.mxu0  ;;  %v2513_v33 = vpop.f32.mrf.mxu1 }
 0x129   : > { %v3218_v34 = vpop.f32.mrf.mxu0  ;;  %v3220_v35 = vpop.f32.mrf.mxu1 }
 0x12b   : > { %v2458_v37 = vpop.f32.mrf.mxu0  ;;  %v2514_v38 = vpop.f32.mrf.mxu1 }
 0x12d   : > { %v3224_v39 = vpop.f32.mrf.mxu0  ;;  %v3226_v40 = vpop.f32.mrf.mxu1 }
 0x12f   : > { %v2461_v45 = vpop.f32.mrf.mxu0  ;;  %v2517_v48 = vpop.f32.mrf.mxu1 }
 0x131   : > { %v3230_v49 = vpop.f32.mrf.mxu0  ;;  %v3232_v51 = vpop.f32.mrf.mxu1 }
 0x133   : > { %v2462_v56 = vpop.f32.mrf.mxu0  ;;  %v2518_v57 = vpop.f32.mrf.mxu1 }
 0x135   : > { %v3236_v61 = vpop.f32.mrf.mxu0  ;;  %v3238_v62 = vpop.f32.mrf.mxu1 }
 0x137   : > { %v2465_v3 = vpop.f32.mrf.mxu0  ;;  %v2521_v7 = vpop.f32.mrf.mxu1 }
 0x139   : > { %v3242_v8 = vpop.f32.mrf.mxu0  ;;  %v3244_v12 = vpop.f32.mrf.mxu1 }
 0x13b   : > { %v2466_v17 = vpop.f32.mrf.mxu0  ;;  %v2522_v18 = vpop.f32.mrf.mxu1 }
 0x13d   : > { %v3248_v22 = vpop.f32.mrf.mxu0  ;;  %v3250_v23 = vpop.f32.mrf.mxu1 }
 0x13f   : > { %v2469_v28 = vpop.f32.mrf.mxu0  ;;  %v2525_v32 = vpop.f32.mrf.mxu1 }
 0x141   : > { %v3254_v33 = vpop.f32.mrf.mxu0  ;;  %v3256_v37 = vpop.f32.mrf.mxu1 }
 0x143   : > { %v2470_v45 = vpop.f32.mrf.mxu0  ;;  %v2526_v48 = vpop.f32.mrf.mxu1 }
 0x145   : > { %v3260_v56 = vpop.f32.mrf.mxu0  ;;  %v3262_v57 = vpop.f32.mrf.mxu1 }
 0x147   : > { %v2473_v7 = vpop.f32.mrf.mxu0  ;;  %v2529_v17 = vpop.f32.mrf.mxu1 }
 0x149   : > { %v3266_v18 = vpop.f32.mrf.mxu0  ;;  %v3268_v28 = vpop.f32.mrf.mxu1 }
 0x14b   : > { %v2474_v27 = vpop.f32.mrf.mxu0  ;;  %v2530_v38 = vpop.f32.mrf.mxu1 }
 0x14d   : > { %v3272_v45 = vpop.f32.mrf.mxu0  ;;  %v3274_v48 = vpop.f32.mrf.mxu1 }
 0x14f   : > { %v2477_v2 = vpop.f32.mrf.mxu0  ;;  %v2533_v3 = vpop.f32.mrf.mxu1 }
 0x151   : > { %v3278_v7 = vpop.f32.mrf.mxu0  ;;  %v3280_v17 = vpop.f32.mrf.mxu1 }
 0x153   : > { %v2478_v44 = vpop.f32.mrf.mxu0  ;;  %v2534_v32 = vpop.f32.mrf.mxu1 }
 0x155   : > { %v3284_v27 = vpop.f32.mrf.mxu0  ;;  %v3286_v38 = vpop.f32.mrf.mxu1 }
 0x157   : > { %v2481_v13 = vpop.f32.mrf.mxu0  ;;  %v2537_v2 = vpop.f32.mrf.mxu1 }
 0x159   : > { %v3290_v3 = vpop.f32.mrf.mxu0  ;;  %v3292_v31 = vpop.f32.mrf.mxu1 }
 0x15b   : > { %v2482_v52 = vpop.f32.mrf.mxu0  ;;  %v2538_v44 = vpop.f32.mrf.mxu1 }
 0x15d   : > { %v3296_v32 = vpop.f32.mrf.mxu0  ;;  %v3298_v21 = vpop.f32.mrf.mxu1 }
 0x15e   : > { %3455 = vst [vmem:[#allocation3_spill] sm:$0xff] %v3296_v32  ;;  %3456 = vst [vmem:[#allocation4_spill] sm:$0xff] %v3298_v21 }
 0x15f   : > { %v2485_v36 = vpop.f32.mrf.mxu0  ;;  %v2541_v11 = vpop.f32.mrf.mxu1 }
 0x161   : > { %v3302_v13 = vpop.f32.mrf.mxu0  ;;  %v3304_v2 = vpop.f32.mrf.mxu1 }
 0x162   : > { %3457 = vst [vmem:[#allocation5_spill] sm:$0xff] %v3302_v13  ;;  %3458 = vst [vmem:[#allocation6_spill] sm:$0xff] %v3304_v2 }
 0x163   : > { %v2486_v52 = vpop.f32.mrf.mxu0  ;;  %v2542_v44 = vpop.f32.mrf.mxu1 }
 0x164   : > { %v3459_v52 = vmax.f32 %v3154_v46, %v3156_v47 }
 0x165   : > { %v1373_v26 = vpop.f32.mrf.mxu0  ;;  %v1667_v1 = vpop.f32.mrf.mxu1 }
 0x166   : > { %v1476_v60 = vmax.f32 %v1182_v43, %v1373_v26 }
 0x167   : > { %v2549_v36 = vpop.f32.mrf.mxu0  ;;  %v2605_v11 = vpop.f32.mrf.mxu1 }
 0x168   : > { %v1770_v16 = vmax.f32 %v1476_v60, %v1667_v1  ;;  %v3460_v1 = vmax.f32 %v3162_v54, %v3164_v55 }
 0x169   : > { %v1376_v6 = vpop.f32.mrf.mxu0  ;;  %v1670_v50 = vpop.f32.mrf.mxu1 }
 0x16a   : > { %v1477_v44 = vmax.f32 %v3459_v52, %v1376_v6  ;;  %v1803_v41 = vadd.f32 %v3316_v53, %v1770_v16 }
 0x16b   : > { %v2550_v2 = vpop.f32.mrf.mxu0  ;;  %v2606_v13 = vpop.f32.mrf.mxu1 }
 0x16c   : > { %v1771_v42 = vmax.f32 %v1477_v44, %v1670_v50  ;;  %v1829_v32 = vmax.f32 %v1803_v41, 0.0  ;;  %v3461_v13 = vmax.f32 %v3170_v58, %v3172_v59 }
 0x16d   : > { %v1381_v43 = vpop.f32.mrf.mxu0  ;;  %v1675_v26 = vpop.f32.mrf.mxu1 }
 0x16e   : > { %v1804_v60 = vadd.f32 %v3316_v53, %v1771_v42  ;;  %v1478_v36 = vmax.f32 %v3460_v1, %v1381_v43  ;;  %v3462_v43 = vmax.f32 %v3176_v63, %v3178_v0 }
 0x16f   : > { %v2553_v11 = vpop.f32.mrf.mxu0  ;;  %v2609_v21 = vpop.f32.mrf.mxu1 }
 0x170   : > { %v1830_v46 = vmax.f32 %v1804_v60, 0.0  ;;  %v1772_v47 = vmax.f32 %v1478_v36, %v1675_v26 }
 0x171   : > { %v1384_v50 = vpop.f32.mrf.mxu0  ;;  %v1678_v6 = vpop.f32.mrf.mxu1 }
 0x172   : > { %v2297_v16 = vpack.c.bf16 %v1830_v46, %v1829_v32  ;;  %v1479_v2 = vmax.f32 %v3461_v13, %v1384_v50  ;;  %v1805_v21 = vadd.f32 %v3316_v53, %v1772_v47  ;;  %v3463_v47 = vmax.f32 %v3182_v4, %v3184_v5 }
 0x173   : > { %v2554_v54 = vpop.f32.mrf.mxu0  ;;  %v2610_v55 = vpop.f32.mrf.mxu1 }
 0x174   : > { %2298 = vst [vmem:[%s3329_s14] sm:$0xff] %v2297_v16   ;;  %v1773_v52 = vmax.f32 %v1479_v2, %v1678_v6  ;;  %v1831_v1 = vmax.f32 %v1805_v21, 0.0  ;;  %v3464_v55 = vmax.f32 %v3188_v9, %v3190_v10 }
 0x175   : > { %v1389_v44 = vpop.f32.mrf.mxu0  ;;  %v1683_v41 = vpop.f32.mrf.mxu1 }
 0x176   : > { %v1806_v42 = vadd.f32 %v3316_v53, %v1773_v52  ;;  %v1480_v26 = vmax.f32 %v3462_v43, %v1389_v44 }
 0x177   : > { %v2557_v32 = vpop.f32.mrf.mxu0  ;;  %v2613_v60 = vpop.f32.mrf.mxu1 }
 0x178   : > { %v1832_v58 = vmax.f32 %v1806_v42, 0.0  ;;  %v1774_v59 = vmax.f32 %v1480_v26, %v1683_v41  ;;  %v3465_v32 = vmax.f32 %v3194_v14, %v3196_v15 }
 0x179   : > { %v1392_v36 = vpop.f32.mrf.mxu0  ;;  %v1686_v11 = vpop.f32.mrf.mxu1 }
 0x17a   : > { %v2302_v46 = vpack.c.bf16 %v1832_v58, %v1831_v1  ;;  %v1481_v50 = vmax.f32 %v3463_v47, %v1392_v36  ;;  %v1807_v13 = vadd.f32 %v3316_v53, %v1774_v59 }
 0x17b   : > { %v2558_v6 = vpop.f32.mrf.mxu0  ;;  %v2614_v16 = vpop.f32.mrf.mxu1 }
 0x17c   : > { %2359 = vst [vmem:[%s3329_s14 + $0x8] sm:$0xff] %v2302_v46   ;;  %v1775_v2 = vmax.f32 %v1481_v50, %v1686_v11  ;;  %v1833_v41 = vmax.f32 %v1807_v13, 0.0  ;;  %v3466_v46 = vmax.f32 %v3200_v19, %v3202_v20 }
 0x17d   : > { %v1397_v63 = vpop.f32.mrf.mxu0  ;;  %v1691_v0 = vpop.f32.mrf.mxu1 }
 0x17e   : > { %v1808_v54 = vadd.f32 %v3316_v53, %v1775_v2  ;;  %v1482_v21 = vmax.f32 %v3464_v55, %v1397_v63 }
 0x17f   : > { %v2561_v52 = vpop.f32.mrf.mxu0  ;;  %v2617_v44 = vpop.f32.mrf.mxu1 }
 0x180   : > { %v1834_v4 = vmax.f32 %v1808_v54, 0.0  ;;  %v1776_v5 = vmax.f32 %v1482_v21, %v1691_v0  ;;  %v3467_v0 = vmax.f32 %v3206_v24, %v3208_v25 }
 0x181   : > { %v1400_v42 = vpop.f32.mrf.mxu0  ;;  %v1694_v43 = vpop.f32.mrf.mxu1 }
 0x182   : > { %v2307_v26 = vpack.c.bf16 %v1834_v4, %v1833_v41  ;;  %v1483_v60 = vmax.f32 %v3465_v32, %v1400_v42  ;;  %v1809_v59 = vadd.f32 %v3316_v53, %v1776_v5  ;;  %v3468_v4 = vmax.f32 %v3212_v29, %v3214_v30 }
 0x183   : > { %v2562_v1 = vpop.f32.mrf.mxu0  ;;  %v2618_v58 = vpop.f32.mrf.mxu1 }
 0x184   : > { %2360 = vst [vmem:[%s3329_s14 + $0x10] sm:$0xff] %v2307_v26   ;;  %v1777_v36 = vmax.f32 %v1483_v60, %v1694_v43  ;;  %v1835_v16 = vmax.f32 %v1809_v59, 0.0  ;;  %v3469_v58 = vmax.f32 %v3218_v34, %v3220_v35 }
 0x185   : > { %v1405_v9 = vpop.f32.mrf.mxu0  ;;  %v1699_v10 = vpop.f32.mrf.mxu1 }
 0x186   : > { %v1810_v11 = vadd.f32 %v3316_v53, %v1777_v36  ;;  %v1484_v47 = vmax.f32 %v3466_v46, %v1405_v9 }
 0x187   : > { %v2565_v50 = vpop.f32.mrf.mxu0  ;;  %v2621_v6 = vpop.f32.mrf.mxu1 }
 0x188   : > { %v1836_v14 = vmax.f32 %v1810_v11, 0.0  ;;  %v1778_v15 = vmax.f32 %v1484_v47, %v1699_v10  ;;  %v3470_v47 = vmax.f32 %v3224_v39, %v3226_v40 }
 0x189   : > { %v1408_v13 = vpop.f32.mrf.mxu0  ;;  %v1702_v2 = vpop.f32.mrf.mxu1 }
 0x18a   : > { %v2312_v63 = vpack.c.bf16 %v1836_v14, %v1835_v16  ;;  %v1485_v54 = vmax.f32 %v3467_v0, %v1408_v13  ;;  %v1811_v52 = vadd.f32 %v3316_v53, %v1778_v15 }
 0x18b   : > { %v2566_v55 = vpop.f32.mrf.mxu0  ;;  %v2622_v21 = vpop.f32.mrf.mxu1 }
 0x18c   : > { %2361 = vst [vmem:[%s3329_s14 + $0x18] sm:$0xff] %v2312_v63   ;;  %v1779_v44 = vmax.f32 %v1485_v54, %v1702_v2  ;;  %v1837_v26 = vmax.f32 %v1811_v52, 0.0  ;;  %v3471_v63 = vmax.f32 %v3230_v49, %v3232_v51 }
 0x18d   : > { %v1413_v19 = vpop.f32.mrf.mxu0  ;;  %v1707_v20 = vpop.f32.mrf.mxu1 }
 0x18e   : > { %v1812_v41 = vadd.f32 %v3316_v53, %v1779_v44  ;;  %v1486_v5 = vmax.f32 %v3468_v4, %v1413_v19  ;;  %v3472_v19 = vmax.f32 %v3236_v61, %v3238_v62 }
 0x18f   : > { %v2569_v42 = vpop.f32.mrf.mxu0  ;;  %v2625_v43 = vpop.f32.mrf.mxu1 }
 0x190   : > { %v1838_v24 = vmax.f32 %v1812_v41, 0.0  ;;  %v1780_v25 = vmax.f32 %v1486_v5, %v1707_v20 }
 0x191   : > { %v1416_v32 = vpop.f32.mrf.mxu0  ;;  %v1710_v60 = vpop.f32.mrf.mxu1 }
 0x192   : > { %v2317_v1 = vpack.c.bf16 %v1838_v24, %v1837_v26  ;;  %v1487_v59 = vmax.f32 %v3469_v58, %v1416_v32  ;;  %v1813_v10 = vadd.f32 %v3316_v53, %v1780_v25  ;;  %v3473_v24 = vmax.f32 %v3242_v8, %v3244_v12 }
 0x193   : > { %v2570_v36 = vpop.f32.mrf.mxu0  ;;  %v2626_v9 = vpop.f32.mrf.mxu1 }
 0x194   : > { %2362 = vst [vmem:[%s3329_s14 + $0x20] sm:$0xff] %v2317_v1   ;;  %v1781_v11 = vmax.f32 %v1487_v59, %v1710_v60  ;;  %v1839_v14 = vmax.f32 %v1813_v10, 0.0  ;;  %v3474_v36 = vmax.f32 %v3248_v22, %v3250_v23 }
 0x195   : > { %v1421_v29 = vpop.f32.mrf.mxu0  ;;  %v1715_v30 = vpop.f32.mrf.mxu1 }
 0x196   : > { %v1814_v46 = vadd.f32 %v3316_v53, %v1781_v11  ;;  %v1488_v50 = vmax.f32 %v3470_v47, %v1421_v29 }
 0x197   : > { %v2573_v6 = vpop.f32.mrf.mxu0  ;;  %v2629_v16 = vpop.f32.mrf.mxu1 }
 0x198   : > { %v1840_v34 = vmax.f32 %v1814_v46, 0.0  ;;  %v1782_v35 = vmax.f32 %v1488_v50, %v1715_v30  ;;  %v3475_v50 = vmax.f32 %v3254_v33, %v3256_v37 }
 0x199   : > { %v1424_v15 = vpop.f32.mrf.mxu0  ;;  %v1718_v13 = vpop.f32.mrf.mxu1 }
 0x19a   : > { %v2322_v2 = vpack.c.bf16 %v1840_v34, %v1839_v14  ;;  %v1489_v0 = vmax.f32 %v3471_v63, %v1424_v15  ;;  %v1815_v21 = vadd.f32 %v3316_v53, %v1782_v35 }
 0x19b   : > { %v2574_v54 = vpop.f32.mrf.mxu0  ;;  %v2630_v55 = vpop.f32.mrf.mxu1 }
 0x19c   : > { %2363 = vst [vmem:[%s3329_s14 + $0x28] sm:$0xff] %v2322_v2   ;;  %v1783_v52 = vmax.f32 %v1489_v0, %v1718_v13  ;;  %v1841_v5 = vmax.f32 %v1815_v21, 0.0  ;;  %v3476_v13 = vmax.f32 %v3260_v56, %v3262_v57 }
 0x19d   : > { %v1429_v39 = vpop.f32.mrf.mxu0  ;;  %v1723_v40 = vpop.f32.mrf.mxu1 }
 0x19e   : > { %v1816_v44 = vadd.f32 %v3316_v53, %v1783_v52  ;;  %v1490_v20 = vmax.f32 %v3472_v19, %v1429_v39  ;;  %v3477_v39 = vmax.f32 %v3266_v18, %v3268_v28 }
 0x19f   : > { %v2577_v41 = vpop.f32.mrf.mxu0  ;;  %v2633_v4 = vpop.f32.mrf.mxu1 }
 0x1a0   : > { %v1842_v49 = vmax.f32 %v1816_v44, 0.0  ;;  %v1784_v51 = vmax.f32 %v1490_v20, %v1723_v40 }
 0x1a1   : > { %v1432_v42 = vpop.f32.mrf.mxu0  ;;  %v1726_v43 = vpop.f32.mrf.mxu1 }
 0x1a2   : > { %v2327_v26 = vpack.c.bf16 %v1842_v49, %v1841_v5  ;;  %v1491_v25 = vmax.f32 %v3473_v24, %v1432_v42  ;;  %v1817_v1 = vadd.f32 %v3316_v53, %v1784_v51  ;;  %v3478_v5 = vmax.f32 %v3272_v45, %v3274_v48 }
 0x1a3   : > { %v2578_v32 = vpop.f32.mrf.mxu0  ;;  %v2634_v60 = vpop.f32.mrf.mxu1 }
 0x1a4   : > { %2364 = vst [vmem:[%s3329_s14 + $0x30] sm:$0xff] %v2327_v26   ;;  %v1785_v58 = vmax.f32 %v1491_v25, %v1726_v43  ;;  %v1843_v29 = vmax.f32 %v1817_v1, 0.0  ;;  %v3479_v32 = vmax.f32 %v3278_v7, %v3280_v17 }
 0x1a5   : > { %v1437_v61 = vpop.f32.mrf.mxu0  ;;  %v1731_v62 = vpop.f32.mrf.mxu1 }
 0x1a6   : > { %v1818_v59 = vadd.f32 %v3316_v53, %v1785_v58  ;;  %v1492_v9 = vmax.f32 %v3474_v36, %v1437_v61  ;;  %v3480_v36 = vmax.f32 %v3284_v27, %v3286_v38 }
 0x1a7   : > { %v2581_v10 = vpop.f32.mrf.mxu0  ;;  %v2637_v11 = vpop.f32.mrf.mxu1 }
 0x1a8   : > { %v1844_v8 = vmax.f32 %v1818_v59, 0.0  ;;  %v1786_v12 = vmax.f32 %v1492_v9, %v1731_v62 }
 0x1a9   : > { %v1440_v30 = vpop.f32.mrf.mxu0  ;;  %v1734_v46 = vpop.f32.mrf.mxu1 }
 0x1aa   : > { %v2332_v47 = vpack.c.bf16 %v1844_v8, %v1843_v29  ;;  %v1493_v6 = vmax.f32 %v3475_v50, %v1440_v30  ;;  %v1819_v34 = vadd.f32 %v3316_v53, %v1786_v12 }
 0x1ab   : > { %v2582_v16 = vpop.f32.mrf.mxu0  ;;  %v2638_v14 = vpop.f32.mrf.mxu1 }
 0x1ac   : > { %2365 = vst [vmem:[%s3329_s14 + $0x38] sm:$0xff] %v2332_v47   ;;  %v1787_v35 = vmax.f32 %v1493_v6, %v1734_v46  ;;  %v1845_v54 = vmax.f32 %v1819_v34, 0.0  ;;  %v3481_v46 = vmax.f32 %v3290_v3, %v3292_v31 }
 0x1ad   : > { %v1445_v22 = vpop.f32.mrf.mxu0  ;;  %v1739_v23 = vpop.f32.mrf.mxu1 }
 0x1ae   : > { %v1820_v15 = vadd.f32 %v3316_v53, %v1787_v35  ;;  %v1494_v2 = vmax.f32 %v3476_v13, %v1445_v22  ;;  %v3482_v35 = vld [vmem:[#allocation3_spill] sm:$0xff]  ;;  %v3483_v22 = vld [vmem:[#allocation4_spill] sm:$0xff] }
 0x1af   : > { %v2585_v63 = vpop.f32.mrf.mxu0  ;;  %v2641_v0 = vpop.f32.mrf.mxu1 }
 0x1b0   : > { %v1846_v33 = vmax.f32 %v1820_v15, 0.0  ;;  %v1788_v37 = vmax.f32 %v1494_v2, %v1739_v23  ;;  %v3484_v23 = vmax.f32 %v3482_v35, %v3483_v22 }
 0x1b1   : > { %v1448_v55 = vpop.f32.mrf.mxu0  ;;  %v1742_v21 = vpop.f32.mrf.mxu1 }
 0x1b2   : > { %v2337_v52 = vpack.c.bf16 %v1846_v33, %v1845_v54  ;;  %v1495_v40 = vmax.f32 %v3477_v39, %v1448_v55  ;;  %v1821_v20 = vadd.f32 %v3316_v53, %v1788_v37  ;;  %v3485_v37 = vld [vmem:[#allocation5_spill] sm:$0xff]  ;;  %v3486_v55 = vld [vmem:[#allocation6_spill] sm:$0xff] }
 0x1b3   : > { %v2586_v44 = vpop.f32.mrf.mxu0  ;;  %v2642_v19 = vpop.f32.mrf.mxu1 }
 0x1b4   : > { %2366 = vst [vmem:[%s3329_s14 + $0x40] sm:$0xff] %v2337_v52   ;;  %v1789_v41 = vmax.f32 %v1495_v40, %v1742_v21  ;;  %v1847_v43 = vmax.f32 %v1821_v20, 0.0  ;;  %v3487_v21 = vmax.f32 %v3485_v37, %v3486_v55 }
 0x1b5   : > { %v1453_v56 = vpop.f32.mrf.mxu0  ;;  %v1747_v57 = vpop.f32.mrf.mxu1 }
 0x1b6   : > { %v1822_v4 = vadd.f32 %v3316_v53, %v1789_v41  ;;  %v1496_v49 = vmax.f32 %v3478_v5, %v1453_v56 }
 0x1b7   : > { %v2589_v51 = vpop.f32.mrf.mxu0  ;;  %v2645_v42 = vpop.f32.mrf.mxu1 }
 0x1b8   : > { %v1848_v18 = vmax.f32 %v1822_v4, 0.0  ;;  %v1790_v28 = vmax.f32 %v1496_v49, %v1747_v57 }
 0x1b9   : > { %v1456_v26 = vpop.f32.mrf.mxu0  ;;  %v1750_v24 = vpop.f32.mrf.mxu1 }
 0x1ba   : > { %v2342_v25 = vpack.c.bf16 %v1848_v18, %v1847_v43  ;;  %v1497_v60 = vmax.f32 %v3479_v32, %v1456_v26  ;;  %v1823_v61 = vadd.f32 %v3316_v53, %v1790_v28 }
 0x1bb   : > { %v2590_v1 = vpop.f32.mrf.mxu0  ;;  %v2646_v58 = vpop.f32.mrf.mxu1 }
 0x1bc   : > { %2367 = vst [vmem:[%s3329_s14 + $0x48] sm:$0xff] %v2342_v25   ;;  %v1791_v62 = vmax.f32 %v1497_v60, %v1750_v24  ;;  %v1849_v29 = vmax.f32 %v1823_v61, 0.0 }
 0x1bd   : > { %v1461_v45 = vpop.f32.mrf.mxu0  ;;  %v1755_v48 = vpop.f32.mrf.mxu1 }
 0x1be   : > { %v1824_v59 = vadd.f32 %v3316_v53, %v1791_v62  ;;  %v1498_v9 = vmax.f32 %v3480_v36, %v1461_v45 }
 0x1bf   : > { %v2593_v10 = vpop.f32.mrf.mxu0  ;;  %v2649_v11 = vpop.f32.mrf.mxu1 }
 0x1c0   : > { %v1850_v7 = vmax.f32 %v1824_v59, 0.0  ;;  %v1792_v17 = vmax.f32 %v1498_v9, %v1755_v48 }
 0x1c1   : > { %v1464_v8 = vpop.f32.mrf.mxu0  ;;  %v1758_v12 = vpop.f32.mrf.mxu1 }
 0x1c2   : > { %v2347_v30 = vpack.c.bf16 %v1850_v7, %v1849_v29  ;;  %v1499_v47 = vmax.f32 %v3481_v46, %v1464_v8  ;;  %v1825_v16 = vadd.f32 %v3316_v53, %v1792_v17 }
 0x1c3   : > { %v2594_v50 = vpop.f32.mrf.mxu0  ;;  %v2650_v6 = vpop.f32.mrf.mxu1 }
 0x1c4   : > { %2368 = vst [vmem:[%s3329_s14 + $0x50] sm:$0xff] %v2347_v30   ;;  %v1793_v14 = vmax.f32 %v1499_v47, %v1758_v12  ;;  %v1851_v63 = vmax.f32 %v1825_v16, 0.0 }
 0x1c5   : > { %v1469_v27 = vpop.f32.mrf.mxu0  ;;  %v1763_v38 = vpop.f32.mrf.mxu1 }
 0x1c6   : > { %v1826_v34 = vadd.f32 %v3316_v53, %v1793_v14  ;;  %v1500_v15 = vmax.f32 %v3484_v23, %v1469_v27 }
 0x1c7   : > { %v2597_v13 = vpop.f32.mrf.mxu0  ;;  %v2653_v2 = vpop.f32.mrf.mxu1 }
 0x1c8   : > { %v1852_v31 = vmax.f32 %v1826_v34, 0.0  ;;  %v1794_v3 = vmax.f32 %v1500_v15, %v1763_v38 }
 0x1c9   : > { %v1472_v0 = vpop.f32.mrf.mxu0  ;;  %v1766_v54 = vpop.f32.mrf.mxu1 }
 0x1ca   : > { %v2352_v33 = vpack.c.bf16 %v1852_v31, %v1851_v63  ;;  %v1501_v52 = vmax.f32 %v3487_v21, %v1472_v0  ;;  %v1827_v44 = vadd.f32 %v3316_v53, %v1794_v3 }
 0x1cb   : > { %v2598_v39 = vpop.f32.mrf.mxu0  ;;  %v2654_v40 = vpop.f32.mrf.mxu1 }
 0x1cc   : > { %2369 = vst [vmem:[%s3329_s14 + $0x58] sm:$0xff] %v2352_v33   ;;  %v1795_v19 = vmax.f32 %v1501_v52, %v1766_v54  ;;  %v1853_v41 = vmax.f32 %v1827_v44, 0.0 }
 0x1ce   : > { %v1828_v20 = vadd.f32 %v3316_v53, %v1795_v19 }
 0x1d0   : > { %v1854_v56 = vmax.f32 %v1828_v20, 0.0 }
 0x1d2   : > { %v2357_v57 = vpack.c.bf16 %v1854_v56, %v1853_v41 }
 0x1d4   : > { %2370 = vst [vmem:[%s3329_s14 + $0x60] sm:$0xff] %v2357_v57  }
 0x1d5 PF: > { %p10_p9 = scmp.ge.s32.totalorder %s2800_s16, 4   ;;  %s3488_s12 = smov %s2755_s13 }
 0x1d6   : > { %s3489_s13 = smov %s2809_s19  ;;  %s3490_s14 = smov %s2800_s16 }
 0x1d7   :  { %12 = sbr.rel (!%p10_p9) target bundleno = 2 (0x2), region = 111 }

// kernel: cnn_forward.4
= control target key start
LH: loop header
LB: loop body
LE: loop exit
PB: predicated region body
PF: predicated region fallthrough
CT: control target
= control target key end

     0   :  { %s2278_s12 = smov 0   ;;  %s2280_s13 = smov 0   ;;  %s3004_s0 = inlined_call_operand.vmem [shape: bf16[4,128,512], index: 0, kind: input, shape index: {}]   ;;  %s3005_s1 = inlined_call_operand.vmem [shape: bf16[512,128], index: 1, kind: input, shape index: {}]   ;;  %s3006_s2 = inlined_call_operand.vmem [shape: f32[1,128], index: 2, kind: input, shape index: {}]   ;;  %s3007_s3 = inlined_call_operand.vmem [shape: f32[128,128], index: 3, kind: output, shape index: {}]  }
   0x1   :  { %s2282_s14 = smov 0  }
   0x2 LB: > { %s1601_s15 = sadd.s32 4294967295, %s2256_s14   ;;  %s2295_s16 = sadd.s32 1, %s2256_s14   ;;  %s2256_s14 = sphi %s2282_s14, %s3044_s14   ;;  %s2252_s13 = sphi %s2280_s13, %s3043_s13   ;;  %s2248_s12 = sphi %s2278_s12, %s3042_s12  }
   0x3   : > { %s17_s17 = ssub.s32 %s2256_s14, %s2295_s16  ;;  %s20_s18 = sadd.s32 1, %s2252_s13 }
   0x4   : > { %p18_p0 = scmp.eq.s32.totalorder %s17_s17, 0  ;;  %p27_p1 = scmp.ne.s32.totalorder %s2252_s13, %s2248_s12 }
   0x5   : > { %p28_p2 = scmp.eq.s32.totalorder %s2256_s14, 0  ;;  %p1604_p4 = scmp.ge.s32.totalorder %s2256_s14, 2 }
   0x6   : > { %s2304_s19 = scalar_select %p18_p0, %s2252_s13, %s20_s18  }
   0x7   : > { %p29_p3 = por %p28_p2, %p27_p1  ;;  %127 = sbr.rel (%p1604_p4) target bundleno = 48 (0x30), region = 24 }
   0xc   : > { %130 = sbr.rel (!%p29_p3) target bundleno = 48 (0x30), region = 28  ;;  %s132_s20 = sand.u32 (%p29_p3), 1, %s2252_s13  }
   0xd   : > { %s1761_s21 = sshll.u32 (%p29_p3), %s2256_s14, 7  ;;  %s1605_s22 = sshll.u32 (%p29_p3), %s132_s20, 9 }
   0xe   : > { %s2312_s25 = scalar_lea.vmem (%p29_p3), %s3004_s0, %s1761_s21  ;;  %s2317_s26 = scalar_lea.vmem (%p29_p3), [#allocation2], %s1605_s22 }
   0xf   : > { %v151_v0 = vld [vmem:[%s2312_s25] sm:$0xff] (%p29_p3)  ;;  %v153_v1 = vld [vmem:[%s2312_s25 + $0x8] sm:$0xff] (%p29_p3)  ;;  %v155_v2 = vld [vmem:[%s2312_s25 + $0x10] sm:$0xff] (%p29_p3) }
  0x10   : > { %152 = vst [vmem:[%s2317_s26] sm:$0xff] (%p29_p3), %v151_v0  ;;  %154 = vst [vmem:[%s2317_s26 + $0x8] sm:$0xff] (%p29_p3), %v153_v1  ;;  %v157_v3 = vld [vmem:[%s2312_s25 + $0x18] sm:$0xff] (%p29_p3)  ;;  %v159_v4 = vld [vmem:[%s2312_s25 + $0x20] sm:$0xff] (%p29_p3) }
  0x11   : > { %156 = vst [vmem:[%s2317_s26 + $0x10] sm:$0xff] %v155_v2  ;;  %v161_v5 = vld [vmem:[%s2312_s25 + $0x28] sm:$0xff]  ;;  %158 = vst [vmem:[%s2317_s26 + $0x18] sm:$0xff] %v157_v3  ;;  %v163_v6 = vld [vmem:[%s2312_s25 + $0x30] sm:$0xff] }
  0x12   : > { %160 = vst [vmem:[%s2317_s26 + $0x20] sm:$0xff] %v159_v4  ;;  %162 = vst [vmem:[%s2317_s26 + $0x28] sm:$0xff] %v161_v5  ;;  %v165_v7 = vld [vmem:[%s2312_s25 + $0x38] sm:$0xff]  ;;  %v167_v8 = vld [vmem:[%s2312_s25 + $0x40] sm:$0xff] }
  0x13   : > { %164 = vst [vmem:[%s2317_s26 + $0x30] sm:$0xff] %v163_v6  ;;  %166 = vst [vmem:[%s2317_s26 + $0x38] sm:$0xff] %v165_v7  ;;  %v169_v9 = vld [vmem:[%s2312_s25 + $0x48] sm:$0xff]  ;;  %v171_v10 = vld [vmem:[%s2312_s25 + $0x50] sm:$0xff] }
  0x14   : > { %168 = vst [vmem:[%s2317_s26 + $0x40] sm:$0xff] %v167_v8  ;;  %v173_v11 = vld [vmem:[%s2312_s25 + $0x58] sm:$0xff]  ;;  %170 = vst [vmem:[%s2317_s26 + $0x48] sm:$0xff] %v169_v9  ;;  %v175_v12 = vld [vmem:[%s2312_s25 + $0x60] sm:$0xff] }
  0x15   : > { %172 = vst [vmem:[%s2317_s26 + $0x50] sm:$0xff] %v171_v10  ;;  %174 = vst [vmem:[%s2317_s26 + $0x58] sm:$0xff] %v173_v11  ;;  %v177_v13 = vld [vmem:[%s2312_s25 + $0x68] sm:$0xff]  ;;  %v179_v14 = vld [vmem:[%s2312_s25 + $0x70] sm:$0xff] }
  0x16   : > { %176 = vst [vmem:[%s2317_s26 + $0x60] sm:$0xff] %v175_v12  ;;  %178 = vst [vmem:[%s2317_s26 + $0x68] sm:$0xff] %v177_v13  ;;  %v181_v15 = vld [vmem:[%s2312_s25 + $0x78] sm:$0xff]  ;;  %v183_v16 = vld [vmem:[%s2312_s25 + $0x100] sm:$0xff] }
  0x17   : > { %180 = vst [vmem:[%s2317_s26 + $0x70] sm:$0xff] %v179_v14  ;;  %v185_v17 = vld [vmem:[%s2312_s25 + $0x108] sm:$0xff]  ;;  %182 = vst [vmem:[%s2317_s26 + $0x78] sm:$0xff] %v181_v15  ;;  %v187_v18 = vld [vmem:[%s2312_s25 + $0x110] sm:$0xff] }
  0x18   : > { %184 = vst [vmem:[%s2317_s26 + $0x80] sm:$0xff] %v183_v16  ;;  %186 = vst [vmem:[%s2317_s26 + $0x88] sm:$0xff] %v185_v17  ;;  %v189_v19 = vld [vmem:[%s2312_s25 + $0x118] sm:$0xff]  ;;  %v191_v20 = vld [vmem:[%s2312_s25 + $0x120] sm:$0xff] }
  0x19   : > { %188 = vst [vmem:[%s2317_s26 + $0x90] sm:$0xff] %v187_v18  ;;  %190 = vst [vmem:[%s2317_s26 + $0x98] sm:$0xff] %v189_v19  ;;  %v193_v21 = vld [vmem:[%s2312_s25 + $0x128] sm:$0xff]  ;;  %v195_v22 = vld [vmem:[%s2312_s25 + $0x130] sm:$0xff] }
  0x1a   : > { %192 = vst [vmem:[%s2317_s26 + $0xa0] sm:$0xff] %v191_v20  ;;  %v197_v23 = vld [vmem:[%s2312_s25 + $0x138] sm:$0xff]  ;;  %194 = vst [vmem:[%s2317_s26 + $0xa8] sm:$0xff] %v193_v21  ;;  %v199_v24 = vld [vmem:[%s2312_s25 + $0x140] sm:$0xff] }
  0x1b   : > { %196 = vst [vmem:[%s2317_s26 + $0xb0] sm:$0xff] %v195_v22  ;;  %198 = vst [vmem:[%s2317_s26 + $0xb8] sm:$0xff] %v197_v23  ;;  %v201_v25 = vld [vmem:[%s2312_s25 + $0x148] sm:$0xff]  ;;  %v203_v26 = vld [vmem:[%s2312_s25 + $0x150] sm:$0xff] }
  0x1c   : > { %200 = vst [vmem:[%s2317_s26 + $0xc0] sm:$0xff] %v199_v24  ;;  %202 = vst [vmem:[%s2317_s26 + $0xc8] sm:$0xff] %v201_v25  ;;  %v205_v27 = vld [vmem:[%s2312_s25 + $0x158] sm:$0xff]  ;;  %v207_v28 = vld [vmem:[%s2312_s25 + $0x160] sm:$0xff] }
  0x1d   : > { %204 = vst [vmem:[%s2317_s26 + $0xd0] sm:$0xff] %v203_v26  ;;  %v209_v29 = vld [vmem:[%s2312_s25 + $0x168] sm:$0xff]  ;;  %206 = vst [vmem:[%s2317_s26 + $0xd8] sm:$0xff] %v205_v27  ;;  %v211_v30 = vld [vmem:[%s2312_s25 + $0x170] sm:$0xff] }
  0x1e   : > { %208 = vst [vmem:[%s2317_s26 + $0xe0] sm:$0xff] %v207_v28  ;;  %210 = vst [vmem:[%s2317_s26 + $0xe8] sm:$0xff] %v209_v29  ;;  %v213_v31 = vld [vmem:[%s2312_s25 + $0x178] sm:$0xff]  ;;  %v215_v32 = vld [vmem:[%s2312_s25 + $0x200] sm:$0xff] }
  0x1f   : > { %212 = vst [vmem:[%s2317_s26 + $0xf0] sm:$0xff] %v211_v30  ;;  %214 = vst [vmem:[%s2317_s26 + $0xf8] sm:$0xff] %v213_v31  ;;  %v217_v33 = vld [vmem:[%s2312_s25 + $0x208] sm:$0xff]  ;;  %v219_v34 = vld [vmem:[%s2312_s25 + $0x210] sm:$0xff] }
  0x20   : > { %216 = vst [vmem:[%s2317_s26 + $0x100] sm:$0xff] %v215_v32  ;;  %v221_v35 = vld [vmem:[%s2312_s25 + $0x218] sm:$0xff]  ;;  %218 = vst [vmem:[%s2317_s26 + $0x108] sm:$0xff] %v217_v33  ;;  %v223_v36 = vld [vmem:[%s2312_s25 + $0x220] sm:$0xff] }
  0x21   : > { %220 = vst [vmem:[%s2317_s26 + $0x110] sm:$0xff] %v219_v34  ;;  %222 = vst [vmem:[%s2317_s26 + $0x118] sm:$0xff] %v221_v35  ;;  %v225_v37 = vld [vmem:[%s2312_s25 + $0x228] sm:$0xff]  ;;  %v227_v38 = vld [vmem:[%s2312_s25 + $0x230] sm:$0xff] }
  0x22   : > { %224 = vst [vmem:[%s2317_s26 + $0x120] sm:$0xff] %v223_v36  ;;  %226 = vst [vmem:[%s2317_s26 + $0x128] sm:$0xff] %v225_v37  ;;  %v229_v39 = vld [vmem:[%s2312_s25 + $0x238] sm:$0xff]  ;;  %v231_v40 = vld [vmem:[%s2312_s25 + $0x240] sm:$0xff] }
  0x23   : > { %228 = vst [vmem:[%s2317_s26 + $0x130] sm:$0xff] %v227_v38  ;;  %v233_v41 = vld [vmem:[%s2312_s25 + $0x248] sm:$0xff]  ;;  %230 = vst [vmem:[%s2317_s26 + $0x138] sm:$0xff] %v229_v39  ;;  %v235_v42 = vld [vmem:[%s2312_s25 + $0x250] sm:$0xff] }
  0x24   : > { %232 = vst [vmem:[%s2317_s26 + $0x140] sm:$0xff] %v231_v40  ;;  %234 = vst [vmem:[%s2317_s26 + $0x148] sm:$0xff] %v233_v41  ;;  %v237_v43 = vld [vmem:[%s2312_s25 + $0x258] sm:$0xff]  ;;  %v239_v44 = vld [vmem:[%s2312_s25 + $0x260] sm:$0xff] }
  0x25   : > { %236 = vst [vmem:[%s2317_s26 + $0x150] sm:$0xff] %v235_v42  ;;  %238 = vst [vmem:[%s2317_s26 + $0x158] sm:$0xff] %v237_v43  ;;  %v241_v45 = vld [vmem:[%s2312_s25 + $0x268] sm:$0xff]  ;;  %v243_v46 = vld [vmem:[%s2312_s25 + $0x270] sm:$0xff] }
  0x26   : > { %240 = vst [vmem:[%s2317_s26 + $0x160] sm:$0xff] %v239_v44  ;;  %v245_v47 = vld [vmem:[%s2312_s25 + $0x278] sm:$0xff]  ;;  %242 = vst [vmem:[%s2317_s26 + $0x168] sm:$0xff] %v241_v45  ;;  %v247_v48 = vld [vmem:[%s2312_s25 + $0x300] sm:$0xff] }
  0x27   : > { %244 = vst [vmem:[%s2317_s26 + $0x170] sm:$0xff] %v243_v46  ;;  %246 = vst [vmem:[%s2317_s26 + $0x178] sm:$0xff] %v245_v47  ;;  %v249_v49 = vld [vmem:[%s2312_s25 + $0x308] sm:$0xff]  ;;  %v251_v50 = vld [vmem:[%s2312_s25 + $0x310] sm:$0xff] }
  0x28   : > { %248 = vst [vmem:[%s2317_s26 + $0x180] sm:$0xff] %v247_v48  ;;  %250 = vst [vmem:[%s2317_s26 + $0x188] sm:$0xff] %v249_v49  ;;  %v253_v51 = vld [vmem:[%s2312_s25 + $0x318] sm:$0xff]  ;;  %v255_v52 = vld [vmem:[%s2312_s25 + $0x320] sm:$0xff] }
  0x29   : > { %252 = vst [vmem:[%s2317_s26 + $0x190] sm:$0xff] %v251_v50  ;;  %v257_v53 = vld [vmem:[%s2312_s25 + $0x328] sm:$0xff]  ;;  %254 = vst [vmem:[%s2317_s26 + $0x198] sm:$0xff] %v253_v51  ;;  %v259_v54 = vld [vmem:[%s2312_s25 + $0x330] sm:$0xff] }
  0x2a   : > { %256 = vst [vmem:[%s2317_s26 + $0x1a0] sm:$0xff] %v255_v52  ;;  %258 = vst [vmem:[%s2317_s26 + $0x1a8] sm:$0xff] %v257_v53  ;;  %v261_v55 = vld [vmem:[%s2312_s25 + $0x338] sm:$0xff]  ;;  %v263_v56 = vld [vmem:[%s2312_s25 + $0x340] sm:$0xff] }
  0x2b   : > { %260 = vst [vmem:[%s2317_s26 + $0x1b0] sm:$0xff] %v259_v54  ;;  %262 = vst [vmem:[%s2317_s26 + $0x1b8] sm:$0xff] %v261_v55  ;;  %v265_v57 = vld [vmem:[%s2312_s25 + $0x348] sm:$0xff]  ;;  %v267_v58 = vld [vmem:[%s2312_s25 + $0x350] sm:$0xff] }
  0x2c   : > { %264 = vst [vmem:[%s2317_s26 + $0x1c0] sm:$0xff] %v263_v56  ;;  %v269_v59 = vld [vmem:[%s2312_s25 + $0x358] sm:$0xff]  ;;  %266 = vst [vmem:[%s2317_s26 + $0x1c8] sm:$0xff] %v265_v57  ;;  %v271_v60 = vld [vmem:[%s2312_s25 + $0x360] sm:$0xff] }
  0x2d   : > { %268 = vst [vmem:[%s2317_s26 + $0x1d0] sm:$0xff] %v267_v58  ;;  %270 = vst [vmem:[%s2317_s26 + $0x1d8] sm:$0xff] %v269_v59  ;;  %v273_v61 = vld [vmem:[%s2312_s25 + $0x368] sm:$0xff]  ;;  %v275_v62 = vld [vmem:[%s2312_s25 + $0x370] sm:$0xff] }
  0x2e   : > { %272 = vst [vmem:[%s2317_s26 + $0x1e0] sm:$0xff] %v271_v60  ;;  %274 = vst [vmem:[%s2317_s26 + $0x1e8] sm:$0xff] %v273_v61  ;;  %v277_v63 = vld [vmem:[%s2312_s25 + $0x378] sm:$0xff] }
  0x2f   : > { %276 = vst [vmem:[%s2317_s26 + $0x1f0] sm:$0xff] %v275_v62  ;;  %278 = vst [vmem:[%s2317_s26 + $0x1f8] sm:$0xff] %v277_v63 }
  0x30 PF: > { %p1609_p5 = scmp.ge.s32.totalorder %s2256_s14, 1  ;;  %p283_p6 = scmp.lt.s32.totalorder %s2256_s14, 3 }
  0x32   : > { %p284_p7 = pnand %p1609_p5, %p283_p6 }
  0x34   : > { %287 = sbr.rel (%p284_p7) target bundleno = 422 (0x1a6), region = 51 }
  0x39   : > { %v2449_v0 = vld [vmem:[%s3005_s1 + $0x78] sm:$0xff]   ;;  %v2472_v4 = vld [vmem:[%s3005_s1 + $0x70] sm:$0xff]   ;;  %v2496_v8 = vld [vmem:[%s3005_s1 + $0x68] sm:$0xff]   ;;  %s290_s6 = sand.u32 1, %s2248_s12   ;;  %s1611_s30 = sshll.u32 %s1601_s15, 3 }
  0x3a   : > { %v2454_v1 = vld [vmem:[%s3005_s1 + $0xf8] sm:$0xff]   ;;  %1762 = vmatprep.subr.bf16.mxu0 %v2449_v0  ;;  %v2478_v5 = vld [vmem:[%s3005_s1 + $0xf0] sm:$0xff]   ;;  %v2502_v9 = vld [vmem:[%s3005_s1 + $0xe8] sm:$0xff]   ;;  %s1610_s12 = sshll.u32 %s290_s6, 9  ;;  %p315_p8 = scmp.lt.s32.totalorder %s1611_s30, 15 }
  0x3b   : > { %v2460_v2 = vld [vmem:[%s3005_s1 + $0x38] sm:$0xff]   ;;  %1802 = vmatprep.subr.bf16.mxu1 %v2454_v1  ;;  %v2484_v6 = vld [vmem:[%s3005_s1 + $0x30] sm:$0xff]   ;;  %v2508_v10 = vld [vmem:[%s3005_s1 + $0x28] sm:$0xff]   ;;  %s2638_s29 = scalar_lea.vmem [#allocation2], %s1610_s12 }
  0x3c   : > { %v2466_v3 = vld [vmem:[%s3005_s1 + $0xb8] sm:$0xff]   ;;  %1763 = vmatpush3.bf16.msra.mxu0 %v2460_v2  ;;  %v2490_v7 = vld [vmem:[%s3005_s1 + $0xb0] sm:$0xff]   ;;  %v2514_v11 = vld [vmem:[%s3005_s1 + $0xa8] sm:$0xff]   ;;  %s3046_s30 = smov (!%p315_p8, %s1611_s30), 15 }
  0x3d   : > { %1803 = vmatpush3.bf16.msra.mxu1 %v2466_v3  ;;  %1764 = vmatprep.subr.bf16.mxu0 %v2472_v4  ;;  %v2520_v12 = vld [vmem:[%s3005_s1 + $0x60] sm:$0xff]   ;;  %v2544_v16 = vld [vmem:[%s3005_s1 + $0x58] sm:$0xff]   ;;  %v2568_v20 = vld [vmem:[%s3005_s1 + $0x50] sm:$0xff]   ;;  %s1612_s4 = sshll.u32 %s3046_s30, 3 }
  0x3e   : > { %1804 = vmatprep.subr.bf16.mxu1 %v2478_v5  ;;  %v2526_v13 = vld [vmem:[%s3005_s1 + $0xe0] sm:$0xff]   ;;  %v2550_v17 = vld [vmem:[%s3005_s1 + $0xd8] sm:$0xff]   ;;  %v2574_v21 = vld [vmem:[%s3005_s1 + $0xd0] sm:$0xff]   ;;  %s2942_s7 = scalar_lea.vmem %s3007_s3, %s1612_s4 }
  0x3f   : > { %v2532_v14 = vld [vmem:[%s3005_s1 + $0x20] sm:$0xff]   ;;  %v2556_v18 = vld [vmem:[%s3005_s1 + $0x18] sm:$0xff]   ;;  %v2580_v22 = vld [vmem:[%s3005_s1 + $0x10] sm:$0xff]  }
  0x40   : > { %1765 = vmatpush3.bf16.msra.mxu0 %v2484_v6  ;;  %v2538_v15 = vld [vmem:[%s3005_s1 + $0xa0] sm:$0xff]   ;;  %v2562_v19 = vld [vmem:[%s3005_s1 + $0x98] sm:$0xff]   ;;  %v2586_v23 = vld [vmem:[%s3005_s1 + $0x90] sm:$0xff]  }
  0x41   : > { %1805 = vmatpush3.bf16.msra.mxu1 %v2490_v7  ;;  %1766 = vmatprep.subr.bf16.mxu0 %v2496_v8  ;;  %v2593_v24 = vld [vmem:[%s3005_s1 + $0x48] sm:$0xff]   ;;  %v2617_v28 = vld [vmem:[%s3005_s1 + $0x40] sm:$0xff]  }
  0x42   : > { %1806 = vmatprep.subr.bf16.mxu1 %v2502_v9  ;;  %v2599_v25 = vld [vmem:[%s3005_s1 + $0xc8] sm:$0xff]   ;;  %v2623_v29 = vld [vmem:[%s3005_s1 + $0xc0] sm:$0xff]  }
  0x43   : > { %v2605_v26 = vld [vmem:[%s3005_s1 + $0x8] sm:$0xff]   ;;  %v2629_v30 = vld [vmem:[%s3005_s1] sm:$0xff]  }
  0x44   : > { %1767 = vmatpush3.bf16.msra.mxu0 %v2508_v10  ;;  %v2611_v27 = vld [vmem:[%s3005_s1 + $0x88] sm:$0xff]   ;;  %v2635_v31 = vld [vmem:[%s3005_s1 + $0x80] sm:$0xff]  }
  0x45   : > { %1807 = vmatpush3.bf16.msra.mxu1 %v2514_v11  ;;  %1768 = vmatprep.subr.bf16.mxu0 %v2520_v12  ;;  %v2138_v32 = vld [vmem:[%s2638_s29] ss:$16 sps:$4 sm:$0xff]   ;;  %v2140_v33 = vld [vmem:[%s2638_s29 + $0x4] ss:$16 sps:$4 sm:$0xff]   ;;  %v2141_v34 = vld [vmem:[%s2638_s29 + $0x8] ss:$16 sps:$4 sm:$0xff]  }
  0x46   : > { %1808 = vmatprep.subr.bf16.mxu1 %v2526_v13  ;;  %v2143_v35 = vld [vmem:[%s2638_s29 + $0xc] ss:$16 sps:$4 sm:$0xff]   ;;  %705 = vmatprep.mubr.bf16.mxu0 %v2140_v33  ;;  %v2144_v36 = vld [vmem:[%s2638_s29 + $0x24] ss:$16 sps:$4 sm:$0xff]   ;;  %v2148_v38 = vld [vmem:[%s2638_s29 + $0x20] ss:$16 sps:$4 sm:$0xff]  }
  0x47   : > { %770 = vmatprep.mubr.bf16.mxu1 %v2143_v35  ;;  %v2146_v37 = vld [vmem:[%s2638_s29 + $0x2c] ss:$16 sps:$4 sm:$0xff]   ;;  %v2149_v39 = vld [vmem:[%s2638_s29 + $0x28] ss:$16 sps:$4 sm:$0xff]   ;;  %v2150_v40 = vld [vmem:[%s2638_s29 + $0x44] ss:$16 sps:$4 sm:$0xff]  }
  0x48   : > { %1769 = vmatpush3.bf16.msra.mxu0 %v2532_v14  ;;  %v2152_v41 = vld [vmem:[%s2638_s29 + $0x4c] ss:$16 sps:$4 sm:$0xff]   ;;  %v2154_v42 = vld [vmem:[%s2638_s29 + $0x40] ss:$16 sps:$4 sm:$0xff]   ;;  %v2155_v43 = vld [vmem:[%s2638_s29 + $0x48] ss:$16 sps:$4 sm:$0xff]  }
  0x49   : > { %1809 = vmatpush3.bf16.msra.mxu1 %v2538_v15  ;;  %1770 = vmatprep.subr.bf16.mxu0 %v2544_v16  ;;  %v2156_v44 = vld [vmem:[%s2638_s29 + $0x64] ss:$16 sps:$4 sm:$0xff]   ;;  %v2158_v45 = vld [vmem:[%s2638_s29 + $0x6c] ss:$16 sps:$4 sm:$0xff]   ;;  %v2160_v46 = vld [vmem:[%s2638_s29 + $0x60] ss:$16 sps:$4 sm:$0xff]  }
  0x4a   : > { %1810 = vmatprep.subr.bf16.mxu1 %v2550_v17  ;;  %v2161_v47 = vld [vmem:[%s2638_s29 + $0x68] ss:$16 sps:$4 sm:$0xff]   ;;  %v2164_v48 = vld [vmem:[%s2638_s29 + $0x84] ss:$16 sps:$4 sm:$0xff]   ;;  %v2167_v49 = vld [vmem:[%s2638_s29 + $0x8c] ss:$16 sps:$4 sm:$0xff]  }
  0x4b   : > { %v2162_v50 = vld [vmem:[%s2638_s29 + $0x80] ss:$16 sps:$4 sm:$0xff]   ;;  %v2165_v51 = vld [vmem:[%s2638_s29 + $0x88] ss:$16 sps:$4 sm:$0xff]   ;;  %v2168_v52 = vld [vmem:[%s2638_s29 + $0xa4] ss:$16 sps:$4 sm:$0xff]  }
  0x4c   : > { %1771 = vmatpush3.bf16.msra.mxu0 %v2556_v18  ;;  %v2170_v53 = vld [vmem:[%s2638_s29 + $0xac] ss:$16 sps:$4 sm:$0xff]   ;;  %v2172_v54 = vld [vmem:[%s2638_s29 + $0xa0] ss:$16 sps:$4 sm:$0xff]   ;;  %v2173_v55 = vld [vmem:[%s2638_s29 + $0xa8] ss:$16 sps:$4 sm:$0xff]  }
  0x4d   : > { %1811 = vmatpush3.bf16.msra.mxu1 %v2562_v19  ;;  %1772 = vmatprep.subr.bf16.mxu0 %v2568_v20  ;;  %v2174_v56 = vld [vmem:[%s2638_s29 + $0xc4] ss:$16 sps:$4 sm:$0xff]   ;;  %v2176_v57 = vld [vmem:[%s2638_s29 + $0xcc] ss:$16 sps:$4 sm:$0xff]   ;;  %v2178_v58 = vld [vmem:[%s2638_s29 + $0xc0] ss:$16 sps:$4 sm:$0xff]  }
  0x4e   : > { %1812 = vmatprep.subr.bf16.mxu1 %v2574_v21  ;;  %v2179_v59 = vld [vmem:[%s2638_s29 + $0xc8] ss:$16 sps:$4 sm:$0xff]   ;;  %v2180_v60 = vld [vmem:[%s2638_s29 + $0xe4] ss:$16 sps:$4 sm:$0xff]   ;;  %v2182_v61 = vld [vmem:[%s2638_s29 + $0xec] ss:$16 sps:$4 sm:$0xff]  }
  0x4f   : > { %v2184_v62 = vld [vmem:[%s2638_s29 + $0xe0] ss:$16 sps:$4 sm:$0xff]   ;;  %v2185_v63 = vld [vmem:[%s2638_s29 + $0xe8] ss:$16 sps:$4 sm:$0xff]   ;;  %v2191_v33 = vld [vmem:[%s2638_s29 + $0x10c] ss:$16 sps:$4 sm:$0xff]  }
  0x50   : > { %1773 = vmatpush3.bf16.msra.mxu0 %v2580_v22  ;;  %v2189_v35 = vld [vmem:[%s2638_s29 + $0x108] ss:$16 sps:$4 sm:$0xff]  }
  0x51   : > { %1813 = vmatpush3.bf16.msra.mxu1 %v2586_v23  ;;  %1774 = vmatprep.subr.bf16.mxu0 %v2593_v24 }
  0x52   : > { %1814 = vmatprep.subr.bf16.mxu1 %v2599_v25 }
  0x54   : > { %1775 = vmatpush3.bf16.msra.mxu0 %v2605_v26 }
  0x55   : > { %1815 = vmatpush3.bf16.msra.mxu1 %v2611_v27  ;;  %1776 = vmatprep.subr.bf16.mxu0 %v2617_v28 }
  0x56   : > { %1816 = vmatprep.subr.bf16.mxu1 %v2623_v29 }
  0x58   : > { %1777 = vmatpush3.bf16.msra.mxu0 %v2629_v30 }
  0x59   : > { %1817 = vmatpush3.bf16.msra.mxu1 %v2635_v31  ;;  %1842 = vmatprep.subr.bf16.mxu0 %v2449_v0 }
  0x5a   : > { %1882 = vmatprep.subr.bf16.mxu1 %v2454_v1 }
  0x5b   : > { %706 = vmatmul.mubr.bf16.vlgmr.msra.gmra.mxu0 %v2138_v32  ;;  %v2188_v32 = vld [vmem:[%s2638_s29 + $0x104] ss:$16 sps:$4 sm:$0xff]  }
  0x5c   : > { %771 = vmatmul.mubr.bf16.vlgmr.msra.gmra.mxu1 %v2141_v34  ;;  %1843 = vmatpush3.bf16.msra.mxu0 %v2460_v2  ;;  %v2186_v34 = vld [vmem:[%s2638_s29 + $0x100] ss:$16 sps:$4 sm:$0xff]  }
  0x5d   : > { %1883 = vmatpush3.bf16.msra.mxu1 %v2466_v3  ;;  %1844 = vmatprep.subr.bf16.mxu0 %v2472_v4 }
  0x5e   : > { %1884 = vmatprep.subr.bf16.mxu1 %v2478_v5  ;;  %713 = vmatprep.mubr.bf16.mxu0 %v2144_v36  ;;  %v2192_v36 = vld [vmem:[%s2638_s29 + $0x124] ss:$16 sps:$4 sm:$0xff]  }
  0x5f   : > { %778 = vmatprep.mubr.bf16.mxu1 %v2146_v37  ;;  %v2194_v37 = vld [vmem:[%s2638_s29 + $0x12c] ss:$16 sps:$4 sm:$0xff]  }
  0x60   : > { %1845 = vmatpush3.bf16.msra.mxu0 %v2484_v6 }
  0x61   : > { %1885 = vmatpush3.bf16.msra.mxu1 %v2490_v7  ;;  %1846 = vmatprep.subr.bf16.mxu0 %v2496_v8 }
  0x62   : > { %1886 = vmatprep.subr.bf16.mxu1 %v2502_v9 }
  0x63   : > { %714 = vmatmul.mubr.bf16.gmra.mxu0 %v2148_v38  ;;  %v2196_v38 = vld [vmem:[%s2638_s29 + $0x120] ss:$16 sps:$4 sm:$0xff]  }
  0x64   : > { %779 = vmatmul.mubr.bf16.gmra.mxu1 %v2149_v39  ;;  %1847 = vmatpush3.bf16.msra.mxu0 %v2508_v10 }
  0x65   : > { %1887 = vmatpush3.bf16.msra.mxu1 %v2514_v11  ;;  %1848 = vmatprep.subr.bf16.mxu0 %v2520_v12 }
  0x66   : > { %1888 = vmatprep.subr.bf16.mxu1 %v2526_v13  ;;  %721 = vmatprep.mubr.bf16.mxu0 %v2150_v40 }
  0x67   : > { %786 = vmatprep.mubr.bf16.mxu1 %v2152_v41 }
  0x68   : > { %1849 = vmatpush3.bf16.msra.mxu0 %v2532_v14 }
  0x69   : > { %1889 = vmatpush3.bf16.msra.mxu1 %v2538_v15  ;;  %1850 = vmatprep.subr.bf16.mxu0 %v2544_v16 }
  0x6a   : > { %1890 = vmatprep.subr.bf16.mxu1 %v2550_v17 }
  0x6b   : > { %722 = vmatmul.mubr.bf16.gmra.mxu0 %v2154_v42 }
  0x6c   : > { %787 = vmatmul.mubr.bf16.gmra.mxu1 %v2155_v43  ;;  %1851 = vmatpush3.bf16.msra.mxu0 %v2556_v18 }
  0x6d   : > { %1891 = vmatpush3.bf16.msra.mxu1 %v2562_v19  ;;  %1852 = vmatprep.subr.bf16.mxu0 %v2568_v20 }
  0x6e   : > { %1892 = vmatprep.subr.bf16.mxu1 %v2574_v21  ;;  %729 = vmatprep.mubr.bf16.mxu0 %v2156_v44 }
  0x6f   : > { %794 = vmatprep.mubr.bf16.mxu1 %v2158_v45 }
  0x70   : > { %1853 = vmatpush3.bf16.msra.mxu0 %v2580_v22 }
  0x71   : > { %1893 = vmatpush3.bf16.msra.mxu1 %v2586_v23  ;;  %1854 = vmatprep.subr.bf16.mxu0 %v2593_v24 }
  0x72   : > { %1894 = vmatprep.subr.bf16.mxu1 %v2599_v25 }
  0x73   : > { %730 = vmatmul.mubr.bf16.gmra.mxu0 %v2160_v46 }
  0x74   : > { %795 = vmatmul.mubr.bf16.gmra.mxu1 %v2161_v47  ;;  %1855 = vmatpush3.bf16.msra.mxu0 %v2605_v26 }
  0x75   : > { %1895 = vmatpush3.bf16.msra.mxu1 %v2611_v27  ;;  %1856 = vmatprep.subr.bf16.mxu0 %v2617_v28 }
  0x76   : > { %1896 = vmatprep.subr.bf16.mxu1 %v2623_v29  ;;  %932 = vmatprep.mubr.bf16.mxu0 %v2164_v48 }
  0x77   : > { %997 = vmatprep.mubr.bf16.mxu1 %v2167_v49 }
  0x78   : > { %1857 = vmatpush3.bf16.msra.mxu0 %v2629_v30 }
  0x79   : > { %1897 = vmatpush3.bf16.msra.mxu1 %v2635_v31  ;;  %1922 = vmatprep.subr.bf16.mxu0 %v2449_v0 }
  0x7a   : > { %1962 = vmatprep.subr.bf16.mxu1 %v2454_v1 }
  0x7b   : > { %933 = vmatmul.mubr.bf16.vlgmr.msra.gmra.mxu0 %v2162_v50 }
  0x7c   : > { %998 = vmatmul.mubr.bf16.vlgmr.msra.gmra.mxu1 %v2165_v51  ;;  %1923 = vmatpush3.bf16.msra.mxu0 %v2460_v2 }
  0x7d   : > { %1963 = vmatpush3.bf16.msra.mxu1 %v2466_v3  ;;  %1924 = vmatprep.subr.bf16.mxu0 %v2472_v4 }
  0x7e   : > { %1964 = vmatprep.subr.bf16.mxu1 %v2478_v5  ;;  %940 = vmatprep.mubr.bf16.mxu0 %v2168_v52 }
  0x7f   : > { %1005 = vmatprep.mubr.bf16.mxu1 %v2170_v53 }
  0x80   : > { %1925 = vmatpush3.bf16.msra.mxu0 %v2484_v6 }
  0x81   : > { %1965 = vmatpush3.bf16.msra.mxu1 %v2490_v7  ;;  %1926 = vmatprep.subr.bf16.mxu0 %v2496_v8 }
  0x82   : > { %1966 = vmatprep.subr.bf16.mxu1 %v2502_v9 }
  0x83   : > { %941 = vmatmul.mubr.bf16.gmra.mxu0 %v2172_v54 }
  0x84   : > { %1006 = vmatmul.mubr.bf16.gmra.mxu1 %v2173_v55  ;;  %1927 = vmatpush3.bf16.msra.mxu0 %v2508_v10 }
  0x85   : > { %1967 = vmatpush3.bf16.msra.mxu1 %v2514_v11  ;;  %1928 = vmatprep.subr.bf16.mxu0 %v2520_v12 }
  0x86   : > { %1968 = vmatprep.subr.bf16.mxu1 %v2526_v13  ;;  %948 = vmatprep.mubr.bf16.mxu0 %v2174_v56 }
  0x87   : > { %1013 = vmatprep.mubr.bf16.mxu1 %v2176_v57 }
  0x88   : > { %1929 = vmatpush3.bf16.msra.mxu0 %v2532_v14 }
  0x89   : > { %1969 = vmatpush3.bf16.msra.mxu1 %v2538_v15  ;;  %1930 = vmatprep.subr.bf16.mxu0 %v2544_v16 }
  0x8a   : > { %1970 = vmatprep.subr.bf16.mxu1 %v2550_v17 }
  0x8b   : > { %949 = vmatmul.mubr.bf16.gmra.mxu0 %v2178_v58 }
  0x8c   : > { %1014 = vmatmul.mubr.bf16.gmra.mxu1 %v2179_v59  ;;  %1931 = vmatpush3.bf16.msra.mxu0 %v2556_v18 }
  0x8d   : > { %1971 = vmatpush3.bf16.msra.mxu1 %v2562_v19  ;;  %1932 = vmatprep.subr.bf16.mxu0 %v2568_v20 }
  0x8e   : > { %1972 = vmatprep.subr.bf16.mxu1 %v2574_v21  ;;  %956 = vmatprep.mubr.bf16.mxu0 %v2180_v60 }
  0x8f   : > { %1021 = vmatprep.mubr.bf16.mxu1 %v2182_v61 }
  0x90   : > { %1933 = vmatpush3.bf16.msra.mxu0 %v2580_v22 }
  0x91   : > { %1973 = vmatpush3.bf16.msra.mxu1 %v2586_v23  ;;  %1934 = vmatprep.subr.bf16.mxu0 %v2593_v24 }
  0x92   : > { %1974 = vmatprep.subr.bf16.mxu1 %v2599_v25 }
  0x93   : > { %957 = vmatmul.mubr.bf16.gmra.mxu0 %v2184_v62 }
  0x94   : > { %1022 = vmatmul.mubr.bf16.gmra.mxu1 %v2185_v63  ;;  %1935 = vmatpush3.bf16.msra.mxu0 %v2605_v26 }
  0x95   : > { %1975 = vmatpush3.bf16.msra.mxu1 %v2611_v27  ;;  %1936 = vmatprep.subr.bf16.mxu0 %v2617_v28 }
  0x96   : > { %1976 = vmatprep.subr.bf16.mxu1 %v2623_v29  ;;  %1167 = vmatprep.mubr.bf16.mxu0 %v2188_v32 }
  0x97   : > { %1232 = vmatprep.mubr.bf16.mxu1 %v2191_v33 }
  0x98   : > { %1937 = vmatpush3.bf16.msra.mxu0 %v2629_v30 }
  0x99   : > { %1977 = vmatpush3.bf16.msra.mxu1 %v2635_v31  ;;  %2002 = vmatprep.subr.bf16.mxu0 %v2449_v0  ;;  %v2197_v0 = vld [vmem:[%s2638_s29 + $0x128] ss:$16 sps:$4 sm:$0xff]  }
  0x9a   : > { %2042 = vmatprep.subr.bf16.mxu1 %v2454_v1  ;;  %v2198_v1 = vld [vmem:[%s2638_s29 + $0x144] ss:$16 sps:$4 sm:$0xff]  }
  0x9b   : > { %1168 = vmatmul.mubr.bf16.vlgmr.msra.gmra.mxu0 %v2186_v34 }
  0x9c   : > { %1233 = vmatmul.mubr.bf16.vlgmr.msra.gmra.mxu1 %v2189_v35  ;;  %2003 = vmatpush3.bf16.msra.mxu0 %v2460_v2  ;;  %v2200_v2 = vld [vmem:[%s2638_s29 + $0x14c] ss:$16 sps:$4 sm:$0xff]  }
  0x9d   : > { %2043 = vmatpush3.bf16.msra.mxu1 %v2466_v3  ;;  %2004 = vmatprep.subr.bf16.mxu0 %v2472_v4  ;;  %v2202_v3 = vld [vmem:[%s2638_s29 + $0x140] ss:$16 sps:$4 sm:$0xff]   ;;  %v2203_v4 = vld [vmem:[%s2638_s29 + $0x148] ss:$16 sps:$4 sm:$0xff]  }
  0x9e   : > { %2044 = vmatprep.subr.bf16.mxu1 %v2478_v5  ;;  %1175 = vmatprep.mubr.bf16.mxu0 %v2192_v36  ;;  %v2204_v5 = vld [vmem:[%s2638_s29 + $0x164] ss:$16 sps:$4 sm:$0xff]  }
  0x9f   : > { %1240 = vmatprep.mubr.bf16.mxu1 %v2194_v37 }
  0xa0   : > { %2005 = vmatpush3.bf16.msra.mxu0 %v2484_v6  ;;  %v2206_v6 = vld [vmem:[%s2638_s29 + $0x16c] ss:$16 sps:$4 sm:$0xff]  }
  0xa1   : > { %2045 = vmatpush3.bf16.msra.mxu1 %v2490_v7  ;;  %2006 = vmatprep.subr.bf16.mxu0 %v2496_v8  ;;  %v2208_v7 = vld [vmem:[%s2638_s29 + $0x160] ss:$16 sps:$4 sm:$0xff]   ;;  %v2209_v8 = vld [vmem:[%s2638_s29 + $0x168] ss:$16 sps:$4 sm:$0xff]  }
  0xa2   : > { %2046 = vmatprep.subr.bf16.mxu1 %v2502_v9  ;;  %v2212_v9 = vld [vmem:[%s2638_s29 + $0x184] ss:$16 sps:$4 sm:$0xff]  }
  0xa3   : > { %1176 = vmatmul.mubr.bf16.gmra.mxu0 %v2196_v38 }
  0xa4   : > { %1241 = vmatmul.mubr.bf16.gmra.mxu1 %v2197_v0  ;;  %2007 = vmatpush3.bf16.msra.mxu0 %v2508_v10  ;;  %v2215_v10 = vld [vmem:[%s2638_s29 + $0x18c] ss:$16 sps:$4 sm:$0xff]  }
  0xa5   : > { %2047 = vmatpush3.bf16.msra.mxu1 %v2514_v11  ;;  %2008 = vmatprep.subr.bf16.mxu0 %v2520_v12  ;;  %v2210_v11 = vld [vmem:[%s2638_s29 + $0x180] ss:$16 sps:$4 sm:$0xff]   ;;  %v2213_v12 = vld [vmem:[%s2638_s29 + $0x188] ss:$16 sps:$4 sm:$0xff]  }
  0xa6   : > { %2048 = vmatprep.subr.bf16.mxu1 %v2526_v13  ;;  %1183 = vmatprep.mubr.bf16.mxu0 %v2198_v1  ;;  %v2216_v13 = vld [vmem:[%s2638_s29 + $0x1a4] ss:$16 sps:$4 sm:$0xff]  }
  0xa7   : > { %1248 = vmatprep.mubr.bf16.mxu1 %v2200_v2 }
  0xa8   : > { %2009 = vmatpush3.bf16.msra.mxu0 %v2532_v14  ;;  %v2218_v14 = vld [vmem:[%s2638_s29 + $0x1ac] ss:$16 sps:$4 sm:$0xff]  }
  0xa9   : > { %2049 = vmatpush3.bf16.msra.mxu1 %v2538_v15  ;;  %2010 = vmatprep.subr.bf16.mxu0 %v2544_v16  ;;  %v2220_v15 = vld [vmem:[%s2638_s29 + $0x1a0] ss:$16 sps:$4 sm:$0xff]   ;;  %v2221_v16 = vld [vmem:[%s2638_s29 + $0x1a8] ss:$16 sps:$4 sm:$0xff]  }
  0xaa   : > { %2050 = vmatprep.subr.bf16.mxu1 %v2550_v17  ;;  %v2222_v17 = vld [vmem:[%s2638_s29 + $0x1c4] ss:$16 sps:$4 sm:$0xff]  }
  0xab   : > { %1184 = vmatmul.mubr.bf16.gmra.mxu0 %v2202_v3 }
  0xac   : > { %1249 = vmatmul.mubr.bf16.gmra.mxu1 %v2203_v4  ;;  %2011 = vmatpush3.bf16.msra.mxu0 %v2556_v18  ;;  %v2224_v18 = vld [vmem:[%s2638_s29 + $0x1cc] ss:$16 sps:$4 sm:$0xff]  }
  0xad   : > { %2051 = vmatpush3.bf16.msra.mxu1 %v2562_v19  ;;  %2012 = vmatprep.subr.bf16.mxu0 %v2568_v20  ;;  %v2226_v19 = vld [vmem:[%s2638_s29 + $0x1c0] ss:$16 sps:$4 sm:$0xff]   ;;  %v2227_v20 = vld [vmem:[%s2638_s29 + $0x1c8] ss:$16 sps:$4 sm:$0xff]  }
  0xae   : > { %2052 = vmatprep.subr.bf16.mxu1 %v2574_v21  ;;  %1191 = vmatprep.mubr.bf16.mxu0 %v2204_v5  ;;  %v2228_v21 = vld [vmem:[%s2638_s29 + $0x1e4] ss:$16 sps:$4 sm:$0xff]  }
  0xaf   : > { %1256 = vmatprep.mubr.bf16.mxu1 %v2206_v6 }
  0xb0   : > { %2013 = vmatpush3.bf16.msra.mxu0 %v2580_v22  ;;  %v2230_v22 = vld [vmem:[%s2638_s29 + $0x1ec] ss:$16 sps:$4 sm:$0xff]  }
  0xb1   : > { %2053 = vmatpush3.bf16.msra.mxu1 %v2586_v23  ;;  %2014 = vmatprep.subr.bf16.mxu0 %v2593_v24  ;;  %v2232_v23 = vld [vmem:[%s2638_s29 + $0x1e0] ss:$16 sps:$4 sm:$0xff]   ;;  %v2233_v24 = vld [vmem:[%s2638_s29 + $0x1e8] ss:$16 sps:$4 sm:$0xff]  }
  0xb2   : > { %2054 = vmatprep.subr.bf16.mxu1 %v2599_v25 }
  0xb3   : > { %1192 = vmatmul.mubr.bf16.gmra.mxu0 %v2208_v7 }
  0xb4   : > { %1257 = vmatmul.mubr.bf16.gmra.mxu1 %v2209_v8  ;;  %2015 = vmatpush3.bf16.msra.mxu0 %v2605_v26 }
  0xb5   : > { %2055 = vmatpush3.bf16.msra.mxu1 %v2611_v27  ;;  %2016 = vmatprep.subr.bf16.mxu0 %v2617_v28 }
  0xb6   : > { %2056 = vmatprep.subr.bf16.mxu1 %v2623_v29  ;;  %1402 = vmatprep.mubr.bf16.mxu0 %v2212_v9 }
  0xb7   : > { %1467 = vmatprep.mubr.bf16.mxu1 %v2215_v10 }
  0xb8   : > { %2017 = vmatpush3.bf16.msra.mxu0 %v2629_v30 }
  0xb9   : > { %2057 = vmatpush3.bf16.msra.mxu1 %v2635_v31 }
  0xbb   : > { %1403 = vmatmul.mubr.bf16.vlgmr.msra.gmra.mxu0 %v2210_v11 }
  0xbc   : > { %1468 = vmatmul.mubr.bf16.vlgmr.msra.gmra.mxu1 %v2213_v12  ;;  %1410 = vmatprep.mubr.bf16.mxu0 %v2216_v13 }
  0xbd   : > { %1475 = vmatprep.mubr.bf16.mxu1 %v2218_v14 }
  0xc3   : > { %1411 = vmatmul.mubr.bf16.gmra.mxu0 %v2220_v15 }
  0xc4   : > { %1476 = vmatmul.mubr.bf16.gmra.mxu1 %v2221_v16  ;;  %1418 = vmatprep.mubr.bf16.mxu0 %v2222_v17 }
  0xc5   : > { %1483 = vmatprep.mubr.bf16.mxu1 %v2224_v18 }
  0xcb   : > { %1419 = vmatmul.mubr.bf16.gmra.mxu0 %v2226_v19 }
  0xcc   : > { %1484 = vmatmul.mubr.bf16.gmra.mxu1 %v2227_v20  ;;  %1426 = vmatprep.mubr.bf16.mxu0 %v2228_v21 }
  0xcd   : > { %1491 = vmatprep.mubr.bf16.mxu1 %v2230_v22 }
  0xd3   : > { %1427 = vmatmul.mubr.bf16.gmra.mxu0 %v2232_v23 }
  0xd4   : > { %1492 = vmatmul.mubr.bf16.gmra.mxu1 %v2233_v24 }
 0x11b   : > { %v1778_v25 = vpop.f32.mrf.mxu0 }
 0x11c   : > { %v1818_v26 = vpop.f32.mrf.mxu1 }
 0x11d   : > { %v1779_v27 = vpop.f32.mrf.mxu0 }
 0x11e   : > { %v1780_v28 = vadd.f32 %v1779_v27, %v1778_v25  ;;  %v1819_v29 = vpop.f32.mrf.mxu1 }
 0x11f   : > { %v1820_v30 = vadd.f32 %v1819_v29, %v1818_v26  ;;  %v1781_v31 = vpop.f32.mrf.mxu0 }
 0x120   : > { %v1821_v39 = vpop.f32.mrf.mxu1 }
 0x121   : > { %v2801_v40 = vadd.f32 %v1820_v30, %v1780_v28  ;;  %v1782_v41 = vpop.f32.mrf.mxu0 }
 0x122   : > { %v1783_v42 = vadd.f32 %v1782_v41, %v1781_v31  ;;  %v1822_v43 = vpop.f32.mrf.mxu1 }
 0x123   : > { %v1823_v44 = vadd.f32 %v1822_v43, %v1821_v39  ;;  %v1784_v45 = vpop.f32.mrf.mxu0 }
 0x124   : > { %v1824_v46 = vpop.f32.mrf.mxu1 }
 0x125   : > { %v2803_v47 = vadd.f32 %v1823_v44, %v1783_v42  ;;  %v1785_v48 = vpop.f32.mrf.mxu0 }
 0x126   : > { %v1786_v49 = vadd.f32 %v1785_v48, %v1784_v45  ;;  %v1825_v50 = vpop.f32.mrf.mxu1 }
 0x127   : > { %v1826_v51 = vadd.f32 %v1825_v50, %v1824_v46  ;;  %v1787_v52 = vpop.f32.mrf.mxu0 }
 0x128   : > { %v1827_v53 = vpop.f32.mrf.mxu1 }
 0x129   : > { %v2805_v54 = vadd.f32 %v1826_v51, %v1786_v49  ;;  %v1788_v55 = vpop.f32.mrf.mxu0 }
 0x12a   : > { %v1789_v56 = vadd.f32 %v1788_v55, %v1787_v52  ;;  %v1828_v57 = vpop.f32.mrf.mxu1 }
 0x12b   : > { %v1829_v58 = vadd.f32 %v1828_v57, %v1827_v53  ;;  %v1790_v59 = vpop.f32.mrf.mxu0 }
 0x12c   : > { %v1830_v60 = vpop.f32.mrf.mxu1 }
 0x12d   : > { %v2807_v61 = vadd.f32 %v1829_v58, %v1789_v56  ;;  %v1791_v62 = vpop.f32.mrf.mxu0 }
 0x12e   : > { %v1792_v63 = vadd.f32 %v1791_v62, %v1790_v59  ;;  %v1831_v32 = vpop.f32.mrf.mxu1 }
 0x12f   : > { %v1832_v33 = vadd.f32 %v1831_v32, %v1830_v60  ;;  %v1793_v34 = vpop.f32.mrf.mxu0 }
 0x130   : > { %v1833_v35 = vpop.f32.mrf.mxu1 }
 0x131   : > { %v2809_v36 = vadd.f32 %v1832_v33, %v1792_v63  ;;  %v1794_v37 = vpop.f32.mrf.mxu0 }
 0x132   : > { %v1795_v38 = vadd.f32 %v1794_v37, %v1793_v34  ;;  %v1834_v0 = vpop.f32.mrf.mxu1 }
 0x133   : > { %3008 = vst [vmem:[#allocation3_spill] sm:$0xff] %v2809_v36  ;;  %v1835_v1 = vadd.f32 %v1834_v0, %v1833_v35  ;;  %v1796_v2 = vpop.f32.mrf.mxu0 }
 0x134   : > { %v1836_v3 = vpop.f32.mrf.mxu1 }
 0x135   : > { %v2811_v4 = vadd.f32 %v1835_v1, %v1795_v38  ;;  %v1797_v5 = vpop.f32.mrf.mxu0 }
 0x136   : > { %v1798_v6 = vadd.f32 %v1797_v5, %v1796_v2  ;;  %v1837_v7 = vpop.f32.mrf.mxu1 }
 0x137   : > { %3009 = vst [vmem:[#allocation4_spill] sm:$0xff] %v2811_v4  ;;  %v1838_v8 = vadd.f32 %v1837_v7, %v1836_v3  ;;  %v1799_v9 = vpop.f32.mrf.mxu0 }
 0x138   : > { %v1839_v10 = vpop.f32.mrf.mxu1 }
 0x139   : > { %v2813_v11 = vadd.f32 %v1838_v8, %v1798_v6  ;;  %v1800_v12 = vpop.f32.mrf.mxu0 }
 0x13a   : > { %v1801_v13 = vadd.f32 %v1800_v12, %v1799_v9  ;;  %v1840_v14 = vpop.f32.mrf.mxu1 }
 0x13b   : > { %3010 = vst [vmem:[#allocation5_spill] sm:$0xff] %v2813_v11  ;;  %v1841_v15 = vadd.f32 %v1840_v14, %v1839_v10  ;;  %v1858_v16 = vpop.f32.mrf.mxu0 }
 0x13c   : > { %v1898_v17 = vpop.f32.mrf.mxu1 }
 0x13d   : > { %v2815_v18 = vadd.f32 %v1841_v15, %v1801_v13  ;;  %v1859_v19 = vpop.f32.mrf.mxu0 }
 0x13e   : > { %v1899_v20 = vpop.f32.mrf.mxu1 }
 0x13f   : > { %3011 = vst [vmem:[#allocation6_spill] sm:$0xff] %v2815_v18  ;;  %v2817_v21 = vpop.f32.mrf.mxu0 }
 0x140   : > { %v2819_v22 = vpop.f32.mrf.mxu1 }
 0x141   : > { %v2821_v23 = vpop.f32.mrf.mxu0 }
 0x142   : > { %v2823_v24 = vpop.f32.mrf.mxu1 }
 0x143   : > { %v2825_v25 = vpop.f32.mrf.mxu0 }
 0x144   : > { %v2827_v26 = vpop.f32.mrf.mxu1 }
 0x145   : > { %v2829_v27 = vpop.f32.mrf.mxu0 }
 0x146   : > { %v2831_v28 = vpop.f32.mrf.mxu1 }
 0x147   : > { %v2833_v29 = vpop.f32.mrf.mxu0 }
 0x148   : > { %v2835_v30 = vpop.f32.mrf.mxu1 }
 0x149   : > { %v2837_v31 = vpop.f32.mrf.mxu0 }
 0x14a   : > { %v2839_v39 = vpop.f32.mrf.mxu1 }
 0x14b   : > { %v2841_v41 = vpop.f32.mrf.mxu0 }
 0x14c   : > { %v2843_v42 = vpop.f32.mrf.mxu1 }
 0x14d   : > { %v2845_v43 = vpop.f32.mrf.mxu0 }
 0x14e   : > { %v2847_v44 = vpop.f32.mrf.mxu1 }
 0x14f   : > { %v2849_v45 = vpop.f32.mrf.mxu0 }
 0x150   : > { %v2851_v46 = vpop.f32.mrf.mxu1 }
 0x151   : > { %v2853_v48 = vpop.f32.mrf.mxu0 }
 0x152   : > { %v2855_v49 = vpop.f32.mrf.mxu1 }
 0x153   : > { %v2857_v50 = vpop.f32.mrf.mxu0 }
 0x154   : > { %3012 = vst [vmem:[#allocation7_spill] sm:$0xff] %v2857_v50  ;;  %v2859_v51 = vpop.f32.mrf.mxu1 }
 0x155   : > { %3013 = vst [vmem:[#allocation8_spill] sm:$0xff] %v2859_v51  ;;  %v2861_v52 = vpop.f32.mrf.mxu0 }
 0x156   : > { %3014 = vst [vmem:[#allocation9_spill] sm:$0xff] %v2861_v52  ;;  %v2863_v53 = vpop.f32.mrf.mxu1 }
 0x157   : > { %3015 = vst [vmem:[#allocation10_spill] sm:$0xff] %v2863_v53  ;;  %v2865_v55 = vpop.f32.mrf.mxu0 }
 0x158   : > { %3016 = vst [vmem:[#allocation11_spill] sm:$0xff] %v2865_v55  ;;  %v2867_v56 = vpop.f32.mrf.mxu1  ;;  %v1900_v55 = vadd.f32 %v1899_v20, %v1898_v17 }
 0x159   : > { %3017 = vst [vmem:[#allocation12_spill] sm:$0xff] %v2867_v56  ;;  %v2869_v57 = vpop.f32.mrf.mxu0 }
 0x15a   : > { %3018 = vst [vmem:[#allocation13_spill] sm:$0xff] %v2869_v57  ;;  %v2871_v58 = vpop.f32.mrf.mxu1  ;;  %v1860_v57 = vadd.f32 %v1859_v19, %v1858_v16  ;;  %v1903_v16 = vadd.f32 %v2823_v24, %v2819_v22 }
 0x15b   : > { %3019 = vst [vmem:[#allocation14_spill] sm:$0xff] %v2871_v58  ;;  %v1938_v59 = vpop.f32.mrf.mxu0 }
 0x15c   : > { %v1978_v60 = vpop.f32.mrf.mxu1 }
 0x15d   : > { %v1939_v62 = vpop.f32.mrf.mxu0 }
 0x15e   : > { %v1979_v63 = vpop.f32.mrf.mxu1  ;;  %v1940_v53 = vadd.f32 %v1939_v62, %v1938_v59  ;;  %v1866_v59 = vadd.f32 %v2829_v27, %v2825_v25 }
 0x15f   : > { %v1941_v32 = vpop.f32.mrf.mxu0  ;;  %v1980_v51 = vadd.f32 %v1979_v63, %v1978_v60  ;;  %v1906_v60 = vadd.f32 %v2831_v28, %v2827_v26  ;;  %v1869_v26 = vadd.f32 %v2837_v31, %v2833_v29 }
 0x160   : > { %v1981_v33 = vpop.f32.mrf.mxu1 }
 0x161   : > { %v1942_v34 = vpop.f32.mrf.mxu0  ;;  %v1235_v20 = vadd.f32 %v1980_v51, %v1940_v53  ;;  %v1008_v27 = vadd.f32 %v1906_v60, %v1866_v59 }
 0x162   : > { %v1982_v35 = vpop.f32.mrf.mxu1 }
 0x163   : > { %v1944_v37 = vpop.f32.mrf.mxu0 }
 0x164   : > { %v1984_v38 = vpop.f32.mrf.mxu1 }
 0x165   : > { %v1945_v0 = vpop.f32.mrf.mxu0 }
 0x166   : > { %v1985_v1 = vpop.f32.mrf.mxu1  ;;  %v1946_v51 = vadd.f32 %v1945_v0, %v1944_v37 }
 0x167   : > { %v2873_v2 = vpop.f32.mrf.mxu0  ;;  %v1986_v53 = vadd.f32 %v1985_v1, %v1984_v38  ;;  %v1032_v1 = vmax.f32 %v2805_v54, %v1008_v27 }
 0x168   : > { %v2875_v3 = vpop.f32.mrf.mxu1 }
 0x169   : > { %v1948_v5 = vpop.f32.mrf.mxu0 }
 0x16a   : > { %v1988_v6 = vpop.f32.mrf.mxu1  ;;  %v1949_v37 = vadd.f32 %v1948_v5, %v2873_v2  ;;  %v1912_v5 = vadd.f32 %v2847_v44, %v2843_v42  ;;  %v1875_v44 = vadd.f32 %v2853_v48, %v2849_v45 }
 0x16b   : > { %v2877_v7 = vpop.f32.mrf.mxu0  ;;  %v1989_v29 = vadd.f32 %v1988_v6, %v2875_v3 }
 0x16c   : > { %v2879_v8 = vpop.f32.mrf.mxu1 }
 0x16d   : > { %v2881_v9 = vpop.f32.mrf.mxu0  ;;  %v1246_v59 = vadd.f32 %v1989_v29, %v1949_v37 }
 0x16e   : > { %v2883_v10 = vpop.f32.mrf.mxu1 }
 0x16f   : > { %v2885_v12 = vpop.f32.mrf.mxu0 }
 0x170   : > { %v2887_v13 = vpop.f32.mrf.mxu1 }
 0x171   : > { %v2889_v14 = vpop.f32.mrf.mxu0 }
 0x172   : > { %v2891_v15 = vpop.f32.mrf.mxu1 }
 0x173   : > { %v2893_v18 = vpop.f32.mrf.mxu0 }
 0x174   : > { %3020 = vst [vmem:[#allocation15_spill] sm:$0xff] %v2893_v18  ;;  %v2895_v11 = vpop.f32.mrf.mxu1  ;;  %v1000_v18 = vadd.f32 %v1900_v55, %v1860_v57 }
 0x175   : > { %3021 = vst [vmem:[#allocation16_spill] sm:$0xff] %v2895_v11  ;;  %v2897_v58 = vpop.f32.mrf.mxu0  ;;  %v1863_v11 = vadd.f32 %v2821_v23, %v2817_v21 }
 0x176   : > { %v2899_v56 = vpop.f32.mrf.mxu1  ;;  %v1030_v21 = vmax.f32 %v2801_v40, %v1000_v18  ;;  %v1909_v40 = vadd.f32 %v2839_v39, %v2835_v30 }
 0x177   : > { %3022 = vst [vmem:[#allocation17_spill] sm:$0xff] %v2899_v56  ;;  %v2901_v4 = vpop.f32.mrf.mxu0  ;;  %v1003_v23 = vadd.f32 %v1903_v16, %v1863_v11  ;;  %v2929_v11 = vld [vmem:[%s3006_s2] ss:$0 sm:$0xff] }
 0x178   : > { %3023 = vst [vmem:[#allocation18_spill] sm:$0xff] %v2901_v4  ;;  %v2903_v36 = vpop.f32.mrf.mxu1  ;;  %v1983_v4 = vadd.f32 %v1982_v35, %v1981_v33  ;;  %v1265_v63 = vmax.f32 %v1030_v21, %v1235_v20  ;;  %v1243_v35 = vadd.f32 %v1986_v53, %v1946_v51  ;;  %v1011_v16 = vadd.f32 %v1909_v40, %v1869_v26  ;;  %v3027_v26 = vld [vmem:[#allocation8_spill] sm:$0xff]  ;;  %v3028_v40 = vld [vmem:[#allocation10_spill] sm:$0xff] }
 0x179   : > { %3024 = vst [vmem:[#allocation19_spill] sm:$0xff] %v2903_v36  ;;  %v2907_v52 = vpop.f32.mrf.mxu0  ;;  %v1943_v36 = vadd.f32 %v1942_v34, %v1941_v32  ;;  %v1955_v53 = vadd.f32 %v2889_v14, %v2885_v12 }
 0x17a   : > { %v2909_v50 = vpop.f32.mrf.mxu1  ;;  %v1267_v54 = vmax.f32 %v1032_v1, %v1243_v35  ;;  %v1033_v42 = vmax.f32 %v2807_v61, %v1011_v16 }
 0x17b   : > { %v2018_v17 = vpop.f32.mrf.mxu0  ;;  %v1238_v32 = vadd.f32 %v1983_v4, %v1943_v36  ;;  %v3030_v35 = vld [vmem:[#allocation15_spill] sm:$0xff] }
 0x17c   : > { %v2058_v19 = vpop.f32.mrf.mxu1  ;;  %v1958_v37 = vadd.f32 %v2897_v58, %v3030_v35  ;;  %v3031_v29 = vld [vmem:[#allocation16_spill] sm:$0xff] }
 0x17d   : > { %v2019_v56 = vpop.f32.mrf.mxu0  ;;  %v3036_v58 = vld [vmem:[#allocation12_spill] sm:$0xff] }
 0x17e   : > { %v2020_v55 = vadd.f32 %v2019_v56, %v2018_v17  ;;  %v2059_v57 = vpop.f32.mrf.mxu1  ;;  %v1031_v56 = vmax.f32 %v2803_v47, %v1003_v23  ;;  %v1872_v47 = vadd.f32 %v2845_v43, %v2841_v41  ;;  %v1952_v41 = vadd.f32 %v2881_v9, %v2877_v7 }
 0x17f   : > { %v2060_v22 = vadd.f32 %v2059_v57, %v2058_v19  ;;  %v2021_v24 = vpop.f32.mrf.mxu0  ;;  %v1992_v43 = vadd.f32 %v2883_v10, %v2879_v8  ;;  %v1915_v23 = vadd.f32 %v2855_v49, %v2851_v46 }
 0x180   : > { %v2061_v62 = vpop.f32.mrf.mxu1  ;;  %v1266_v30 = vmax.f32 %v1031_v56, %v1238_v32  ;;  %v1016_v7 = vadd.f32 %v1912_v5, %v1872_v47  ;;  %v3033_v47 = vld [vmem:[#allocation4_spill] sm:$0xff]  ;;  %v3034_v5 = vld [vmem:[#allocation11_spill] sm:$0xff] }
 0x181   : > { %v1470_v33 = vadd.f32 %v2060_v22, %v2020_v55  ;;  %v2022_v25 = vpop.f32.mrf.mxu0  ;;  %v1251_v32 = vadd.f32 %v1992_v43, %v1952_v41  ;;  %v1019_v49 = vadd.f32 %v1915_v23, %v1875_v44  ;;  %v3038_v44 = vld [vmem:[#allocation18_spill] sm:$0xff] }
 0x182   : > { %v2023_v18 = vadd.f32 %v2022_v25, %v2021_v24  ;;  %v2062_v28 = vpop.f32.mrf.mxu1  ;;  %v3026_v25 = vld [vmem:[#allocation9_spill] sm:$0xff]  ;;  %v1961_v23 = vadd.f32 %v2907_v52, %v3038_v44 }
 0x183   : > { %v1500_v36 = vmax.f32 %v1265_v63, %v1470_v33  ;;  %v2063_v4 = vadd.f32 %v2062_v28, %v2061_v62  ;;  %v2024_v34 = vpop.f32.mrf.mxu0  ;;  %v1995_v62 = vadd.f32 %v2891_v15, %v2887_v13  ;;  %v1268_v63 = vmax.f32 %v1033_v42, %v1246_v59  ;;  %v3025_v33 = vld [vmem:[#allocation7_spill] sm:$0xff] }
 0x184   : > { %v2064_v31 = vpop.f32.mrf.mxu1  ;;  %v1878_v27 = vadd.f32 %v3026_v25, %v3025_v33  ;;  %v3029_v28 = vld [vmem:[#allocation3_spill] sm:$0xff] }
 0x185   : > { %v1515_v39 = vadd.f32 %v2929_v11, %v1500_v36  ;;  %v1473_v38 = vadd.f32 %v2063_v4, %v2023_v18  ;;  %v2025_v0 = vpop.f32.mrf.mxu0  ;;  %v1918_v18 = vadd.f32 %v3028_v40, %v3027_v26  ;;  %v1034_v13 = vmax.f32 %v3029_v28, %v1016_v7  ;;  %v3041_v40 = vld [vmem:[#allocation6_spill] sm:$0xff] }
 0x186   : > { %v2026_v2 = vadd.f32 %v2025_v0, %v2024_v34  ;;  %v2065_v3 = vpop.f32.mrf.mxu1  ;;  %v1254_v34 = vadd.f32 %v1995_v62, %v1955_v53 }
 0x187   : > { %v1523_v6 = vmax.f32 %v1515_v39, 0.0  ;;  %v1501_v17 = vmax.f32 %v1266_v30, %v1473_v38  ;;  %v2066_v19 = vadd.f32 %v2065_v3, %v2064_v31  ;;  %v2027_v20 = vpop.f32.mrf.mxu0  ;;  %v3032_v31 = vld [vmem:[#allocation17_spill] sm:$0xff]  ;;  %v1269_v38 = vmax.f32 %v1034_v13, %v1251_v32 }
 0x188   : > { %v2067_v60 = vpop.f32.mrf.mxu1  ;;  %v1998_v30 = vadd.f32 %v3032_v31, %v3031_v29  ;;  %v1024_v3 = vadd.f32 %v1918_v18, %v1878_v27 }
 0x189   : > { %1531 = vst [vmem:[%s2942_s7] sm:$0xff] %v1523_v6  ;;  %v1516_v55 = vadd.f32 %v2929_v11, %v1501_v17  ;;  %v1478_v57 = vadd.f32 %v2066_v19, %v2026_v2  ;;  %v2028_v21 = vpop.f32.mrf.mxu0  ;;  %v1035_v2 = vmax.f32 %v3033_v47, %v1019_v49  ;;  %v3035_v6 = vld [vmem:[#allocation13_spill] sm:$0xff] }
 0x18a   : > { %v2029_v22 = vadd.f32 %v2028_v21, %v2027_v20  ;;  %v2068_v24 = vpop.f32.mrf.mxu1  ;;  %v1881_v17 = vadd.f32 %v3035_v6, %v3034_v5  ;;  %v1259_v21 = vadd.f32 %v1998_v30, %v1958_v37 }
 0x18b   : > { %v1524_v9 = vmax.f32 %v1516_v55, 0.0  ;;  %v1502_v51 = vmax.f32 %v1267_v54, %v1478_v57  ;;  %v2069_v8 = vadd.f32 %v2068_v24, %v2067_v60  ;;  %v2030_v10 = vpop.f32.mrf.mxu0  ;;  %v3037_v54 = vld [vmem:[#allocation14_spill] sm:$0xff]  ;;  %v1270_v57 = vmax.f32 %v1035_v2, %v1254_v34 }
 0x18c   : > { %v2070_v61 = vpop.f32.mrf.mxu1  ;;  %v1921_v59 = vadd.f32 %v3037_v54, %v3036_v58 }
 0x18d   : > { %1532 = vst [vmem:[%s2942_s7 + $0x8] sm:$0xff] %v1524_v9  ;;  %v1517_v45 = vadd.f32 %v2929_v11, %v1502_v51  ;;  %v1481_v46 = vadd.f32 %v2069_v8, %v2029_v22  ;;  %v2031_v48 = vpop.f32.mrf.mxu0  ;;  %v3039_v22 = vld [vmem:[#allocation19_spill] sm:$0xff]  ;;  %v3040_v8 = vld [vmem:[#allocation5_spill] sm:$0xff] }
 0x18e   : > { %v2032_v12 = vadd.f32 %v2031_v48, %v2030_v10  ;;  %v2071_v14 = vpop.f32.mrf.mxu1  ;;  %v2001_v24 = vadd.f32 %v2909_v50, %v3039_v22  ;;  %v1036_v10 = vmax.f32 %v3040_v8, %v1024_v3 }
 0x18f   : > { %v1525_v15 = vmax.f32 %v1517_v45, 0.0  ;;  %v1503_v56 = vmax.f32 %v1268_v63, %v1481_v46  ;;  %v2072_v36 = vadd.f32 %v2071_v14, %v2070_v61  ;;  %v2033_v4 = vpop.f32.mrf.mxu0  ;;  %v1027_v61 = vadd.f32 %v1921_v59, %v1881_v17 }
 0x190   : > { %v2073_v39 = vpop.f32.mrf.mxu1  ;;  %v1271_v48 = vmax.f32 %v1036_v10, %v1259_v21  ;;  %v1262_v49 = vadd.f32 %v2001_v24, %v1961_v23 }
 0x191   : > { %1533 = vst [vmem:[%s2942_s7 + $0x10] sm:$0xff] %v1525_v15  ;;  %v1518_v0 = vadd.f32 %v2929_v11, %v1503_v56  ;;  %v1486_v1 = vadd.f32 %v2072_v36, %v2032_v12  ;;  %v2034_v16 = vpop.f32.mrf.mxu0  ;;  %v1037_v18 = vmax.f32 %v3041_v40, %v1027_v61 }
 0x192   : > { %v2035_v19 = vadd.f32 %v2034_v16, %v2033_v4  ;;  %v2074_v20 = vpop.f32.mrf.mxu1 }
 0x193   : > { %v1526_v60 = vmax.f32 %v1518_v0, 0.0  ;;  %v1504_v41 = vmax.f32 %v1269_v38, %v1486_v1  ;;  %v2075_v43 = vadd.f32 %v2074_v20, %v2073_v39  ;;  %v2036_v55 = vpop.f32.mrf.mxu0  ;;  %v1272_v13 = vmax.f32 %v1037_v18, %v1262_v49 }
 0x194   : > { %v2076_v42 = vpop.f32.mrf.mxu1 }
 0x195   : > { %1534 = vst [vmem:[%s2942_s7 + $0x18] sm:$0xff] %v1526_v60  ;;  %v1519_v7 = vadd.f32 %v2929_v11, %v1504_v41  ;;  %v1489_v9 = vadd.f32 %v2075_v43, %v2035_v19  ;;  %v2037_v51 = vpop.f32.mrf.mxu0 }
 0x196   : > { %v2038_v53 = vadd.f32 %v2037_v51, %v2036_v55  ;;  %v2077_v62 = vpop.f32.mrf.mxu1 }
 0x197   : > { %v1527_v63 = vmax.f32 %v1519_v7, 0.0  ;;  %v1505_v32 = vmax.f32 %v1270_v57, %v1489_v9  ;;  %v2078_v45 = vadd.f32 %v2077_v62, %v2076_v42  ;;  %v2039_v46 = vpop.f32.mrf.mxu0 }
 0x198   : > { %v2079_v52 = vpop.f32.mrf.mxu1 }
 0x199   : > { %1535 = vst [vmem:[%s2942_s7 + $0x20] sm:$0xff] %v1527_v63  ;;  %v1520_v50 = vadd.f32 %v2929_v11, %v1505_v32  ;;  %v1494_v33 = vadd.f32 %v2078_v45, %v2038_v53  ;;  %v2040_v25 = vpop.f32.mrf.mxu0 }
 0x19a   : > { %v2041_v27 = vadd.f32 %v2040_v25, %v2039_v46  ;;  %v2080_v26 = vpop.f32.mrf.mxu1 }
 0x19b   : > { %v1528_v12 = vmax.f32 %v1520_v50, 0.0  ;;  %v1506_v14 = vmax.f32 %v1271_v48, %v1494_v33  ;;  %v2081_v28 = vadd.f32 %v2080_v26, %v2079_v52 }
 0x19d   : > { %1536 = vst [vmem:[%s2942_s7 + $0x28] sm:$0xff] %v1528_v12  ;;  %v1521_v15 = vadd.f32 %v2929_v11, %v1506_v14  ;;  %v1497_v56 = vadd.f32 %v2081_v28, %v2041_v27 }
 0x19f   : > { %v1529_v36 = vmax.f32 %v1521_v15, 0.0  ;;  %v1507_v4 = vmax.f32 %v1272_v13, %v1497_v56 }
 0x1a1   : > { %1537 = vst [vmem:[%s2942_s7 + $0x30] sm:$0xff] %v1529_v36  ;;  %v1522_v34 = vadd.f32 %v2929_v11, %v1507_v4 }
 0x1a3   : > { %v1530_v35 = vmax.f32 %v1522_v34, 0.0 }
 0x1a5   : > { %1538 = vst [vmem:[%s2942_s7 + $0x38] sm:$0xff] %v1530_v35 }
 0x1a6 PF: > { %p10_p9 = scmp.ge.s32.totalorder %s2295_s16, 4   ;;  %s3042_s12 = smov %s2252_s13 }
 0x1a7   : > { %s3043_s13 = smov %s2304_s19  ;;  %s3044_s14 = smov %s2295_s16 }
 0x1a8   :  { %12 = sbr.rel (!%p10_p9) target bundleno = 2 (0x2), region = 93 }

// kernel: cnn_forward.5
= control target key start
LH: loop header
LB: loop body
LE: loop exit
PB: predicated region body
PF: predicated region fallthrough
CT: control target
= control target key end

     0   :  { %v52_v28 = vlaneseq  ;;  %v7615_v36 = vmov 1983009808   ;;  %s9288_s0 = inlined_call_operand.vmem [shape: f32[2,8192], index: 0, kind: input, shape index: {}]   ;;  %s9289_s1 = inlined_call_operand.vmem [shape: bf16[8192,128], index: 1, kind: input, shape index: {}]   ;;  %s9290_s2 = inlined_call_operand.vmem [shape: f32[1,128], index: 2, kind: input, shape index: {}]   ;;  %s9291_s3 = inlined_call_operand.hbm [shape: f32[2,128], index: 3, kind: output, shape index: {}]  }
   0x1   :  { %v7065_v0 = vld [vmem:[%s9289_s1 + $0x78] sm:$0xff]   ;;  %v7069_v4 = vld [vmem:[%s9289_s1 + $0x70] sm:$0xff]   ;;  %v7073_v8 = vld [vmem:[%s9289_s1 + $0x68] sm:$0xff]   ;;  %v50_v37 = vunpack.c.l.s4 %v7615_v36 }
   0x2   :  { %v7066_v1 = vld [vmem:[%s9289_s1 + $0xf8] sm:$0xff]   ;;  %6359 = vmatprep.subr.bf16.mxu0 %v7065_v0  ;;  %v7070_v5 = vld [vmem:[%s9289_s1 + $0xf0] sm:$0xff]   ;;  %v7074_v9 = vld [vmem:[%s9289_s1 + $0xe8] sm:$0xff]   ;;  %v53_v33 = vshrl.u32 %v52_v28, 7 }
   0x3   :  { %v7067_v2 = vld [vmem:[%s9289_s1 + $0x38] sm:$0xff]   ;;  %6381 = vmatprep.subr.bf16.mxu1 %v7066_v1  ;;  %v7071_v6 = vld [vmem:[%s9289_s1 + $0x30] sm:$0xff]   ;;  %v7075_v10 = vld [vmem:[%s9289_s1 + $0x28] sm:$0xff]   ;;  %v51_v39 = vunpack.c.0.s8 %v50_v37 }
   0x4   :  { %v7068_v3 = vld [vmem:[%s9289_s1 + $0xb8] sm:$0xff]   ;;  %6360 = vmatpush3.bf16.msra.mxu0 %v7067_v2  ;;  %v7072_v7 = vld [vmem:[%s9289_s1 + $0xb0] sm:$0xff]   ;;  %v7076_v11 = vld [vmem:[%s9289_s1 + $0xa8] sm:$0xff]  }
   0x5   :  { %6382 = vmatpush3.bf16.msra.mxu1 %v7068_v3  ;;  %6361 = vmatprep.subr.bf16.mxu0 %v7069_v4  ;;  %v7077_v12 = vld [vmem:[%s9289_s1 + $0x60] sm:$0xff]   ;;  %v7081_v16 = vld [vmem:[%s9289_s1 + $0x58] sm:$0xff]   ;;  %v7085_v20 = vld [vmem:[%s9289_s1 + $0x50] sm:$0xff]   ;;  %v7742_v41 = vsub.s32 %v51_v39, %v53_v33 }
   0x6   :  { %6383 = vmatprep.subr.bf16.mxu1 %v7070_v5  ;;  %v7078_v13 = vld [vmem:[%s9289_s1 + $0xe0] sm:$0xff]   ;;  %v7082_v17 = vld [vmem:[%s9289_s1 + $0xd8] sm:$0xff]   ;;  %v7086_v21 = vld [vmem:[%s9289_s1 + $0xd0] sm:$0xff]  }
   0x7   :  { %v7079_v14 = vld [vmem:[%s9289_s1 + $0x20] sm:$0xff]   ;;  %v7083_v18 = vld [vmem:[%s9289_s1 + $0x18] sm:$0xff]   ;;  %v7087_v22 = vld [vmem:[%s9289_s1 + $0x10] sm:$0xff]  }
   0x8   :  { %6362 = vmatpush3.bf16.msra.mxu0 %v7071_v6  ;;  %v7080_v15 = vld [vmem:[%s9289_s1 + $0xa0] sm:$0xff]   ;;  %v7084_v19 = vld [vmem:[%s9289_s1 + $0x98] sm:$0xff]   ;;  %v7088_v23 = vld [vmem:[%s9289_s1 + $0x90] sm:$0xff]  }
   0x9   :  { %6384 = vmatpush3.bf16.msra.mxu1 %v7072_v7  ;;  %6363 = vmatprep.subr.bf16.mxu0 %v7073_v8  ;;  %v7089_v24 = vld [vmem:[%s9289_s1 + $0x48] sm:$0xff]   ;;  %v7093_v29 = vld [vmem:[%s9289_s1 + $0x40] sm:$0xff]   ;;  %v7098_v35 = vld [vmem:[%s9289_s1 + $0x178] sm:$0xff]  }
   0xa   :  { %6385 = vmatprep.subr.bf16.mxu1 %v7074_v9  ;;  %v7090_v25 = vld [vmem:[%s9289_s1 + $0xc8] sm:$0xff]   ;;  %v7094_v30 = vld [vmem:[%s9289_s1 + $0xc0] sm:$0xff]   ;;  %v7099_v38 = vld [vmem:[%s9289_s1 + $0x1f8] sm:$0xff]  }
   0xb   :  { %v7091_v26 = vld [vmem:[%s9289_s1 + $0x8] sm:$0xff]   ;;  %v7095_v31 = vld [vmem:[%s9289_s1] sm:$0xff]   ;;  %v7100_v46 = vld [vmem:[%s9289_s1 + $0x138] sm:$0xff]  }
   0xc   :  { %6364 = vmatpush3.bf16.msra.mxu0 %v7075_v10  ;;  %v7092_v27 = vld [vmem:[%s9289_s1 + $0x88] sm:$0xff]   ;;  %v7096_v32 = vld [vmem:[%s9289_s1 + $0x80] sm:$0xff]   ;;  %v7101_v49 = vld [vmem:[%s9289_s1 + $0x1b8] sm:$0xff]  }
   0xd   :  { %6386 = vmatpush3.bf16.msra.mxu1 %v7076_v11  ;;  %6365 = vmatprep.subr.bf16.mxu0 %v7077_v12  ;;  %v16_v34 = vld [vmem:[%s9288_s0] sm:$0xff]  ;;  %v7102_v52 = vld [vmem:[%s9289_s1 + $0x170] sm:$0xff]   ;;  %v7106_v56 = vld [vmem:[%s9289_s1 + $0x168] sm:$0xff]  }
   0xe   :  { %6387 = vmatprep.subr.bf16.mxu1 %v7078_v13  ;;  %v48_v40 = vcombine.high %v16_v34, %v16_v34  ;;  %v55_v42 = vrot.slane %v16_v34, %v7742_v41  ;;  %v7103_v53 = vld [vmem:[%s9289_s1 + $0x1f0] sm:$0xff]   ;;  %v7107_v57 = vld [vmem:[%s9289_s1 + $0x1e8] sm:$0xff]   ;;  %v7110_v60 = vld [vmem:[%s9289_s1 + $0x160] sm:$0xff]  }
   0xf   :  { %v7104_v54 = vld [vmem:[%s9289_s1 + $0x130] sm:$0xff]   ;;  %v7108_v58 = vld [vmem:[%s9289_s1 + $0x128] sm:$0xff]   ;;  %v7111_v61 = vld [vmem:[%s9289_s1 + $0x1e0] sm:$0xff]  }
  0x10   :  { %6366 = vmatpush3.bf16.msra.mxu0 %v7079_v14  ;;  %v62_v43 = vrot.slane %v48_v40, %v7742_v41  ;;  %v63_v44 = vcombine.high %v55_v42, %v55_v42  ;;  %v384_v47 = vpack.c.bf16 %v55_v42, %v55_v42  ;;  %v7105_v55 = vld [vmem:[%s9289_s1 + $0x1b0] sm:$0xff]   ;;  %v7109_v59 = vld [vmem:[%s9289_s1 + $0x1a8] sm:$0xff]   ;;  %v7112_v62 = vld [vmem:[%s9289_s1 + $0x120] sm:$0xff]  }
  0x11   :  { %6388 = vmatpush3.bf16.msra.mxu1 %v7080_v15  ;;  %6367 = vmatprep.subr.bf16.mxu0 %v7081_v16  ;;  %v7113_v63 = vld [vmem:[%s9289_s1 + $0x1a0] sm:$0xff]   ;;  %v7114_v0 = vld [vmem:[%s9289_s1 + $0x158] sm:$0xff]   ;;  %v7118_v4 = vld [vmem:[%s9289_s1 + $0x150] sm:$0xff]  }
  0x12   :  { %6389 = vmatprep.subr.bf16.mxu1 %v7082_v17  ;;  %v64_v45 = vcombine.high %v62_v43, %v62_v43  ;;  %v386_v48 = vpack.c.bf16 %v62_v43, %v62_v43  ;;  %v385_v50 = vpack.c.bf16 %v63_v44, %v63_v44  ;;  %v7115_v1 = vld [vmem:[%s9289_s1 + $0x1d8] sm:$0xff]   ;;  %v7119_v5 = vld [vmem:[%s9289_s1 + $0x1d0] sm:$0xff]   ;;  %v7122_v8 = vld [vmem:[%s9289_s1 + $0x148] sm:$0xff]  }
  0x13   :  { %v7116_v2 = vld [vmem:[%s9289_s1 + $0x118] sm:$0xff]   ;;  %v7120_v6 = vld [vmem:[%s9289_s1 + $0x110] sm:$0xff]   ;;  %v7123_v9 = vld [vmem:[%s9289_s1 + $0x1c8] sm:$0xff]  }
  0x14   :  { %6368 = vmatpush3.bf16.msra.mxu0 %v7083_v18  ;;  %v387_v51 = vpack.c.bf16 %v64_v45, %v64_v45  ;;  %4583 = vmatprep.mubr.bf16.mxu0 %v385_v50  ;;  %v7117_v3 = vld [vmem:[%s9289_s1 + $0x198] sm:$0xff]   ;;  %v7121_v7 = vld [vmem:[%s9289_s1 + $0x190] sm:$0xff]   ;;  %v17_v10 = vld [vmem:[%s9288_s0 + $0x8] sm:$0xff] }
  0x15   :  { %6390 = vmatpush3.bf16.msra.mxu1 %v7084_v19  ;;  %6369 = vmatprep.subr.bf16.mxu0 %v7085_v20  ;;  %v7124_v11 = vld [vmem:[%s9289_s1 + $0x108] sm:$0xff]   ;;  %v72_v12 = vrot.slane %v17_v10, %v7742_v41  ;;  %v65_v13 = vcombine.high %v17_v10, %v17_v10  ;;  %v7126_v15 = vld [vmem:[%s9289_s1 + $0x140] sm:$0xff]   ;;  %v7138_v33 = vld [vmem:[%s9289_s1 + $0x2b0] sm:$0xff]  }
  0x16   :  { %6391 = vmatprep.subr.bf16.mxu1 %v7086_v21  ;;  %4623 = vmatprep.mubr.bf16.mxu1 %v387_v51  ;;  %v7125_v14 = vld [vmem:[%s9289_s1 + $0x188] sm:$0xff]   ;;  %v7127_v18 = vld [vmem:[%s9289_s1 + $0x1c0] sm:$0xff]   ;;  %v7147_v43 = vld [vmem:[%s9289_s1 + $0x258] sm:$0xff]  }
  0x17   :  { %v80_v16 = vcombine.high %v72_v12, %v72_v12  ;;  %v79_v17 = vrot.slane %v65_v13, %v7742_v41  ;;  %v7128_v19 = vld [vmem:[%s9289_s1 + $0x100] sm:$0xff]   ;;  %v7139_v34 = vld [vmem:[%s9289_s1 + $0x268] sm:$0xff]   ;;  %v7148_v44 = vld [vmem:[%s9289_s1 + $0x2d8] sm:$0xff]  }
  0x18   :  { %6370 = vmatpush3.bf16.msra.mxu0 %v7087_v22  ;;  %v7129_v22 = vld [vmem:[%s9289_s1 + $0x180] sm:$0xff]   ;;  %v7141_v36 = vld [vmem:[%s9289_s1 + $0x228] sm:$0xff]   ;;  %v7149_v45 = vld [vmem:[%s9289_s1 + $0x218] sm:$0xff]  }
  0x19   :  { %6392 = vmatpush3.bf16.msra.mxu1 %v7088_v23  ;;  %6371 = vmatprep.subr.bf16.mxu0 %v7089_v24  ;;  %v389_v20 = vpack.c.bf16 %v80_v16, %v80_v16  ;;  %v81_v21 = vcombine.high %v79_v17, %v79_v17  ;;  %v7131_v24 = vld [vmem:[%s9289_s1 + $0x278] sm:$0xff]   ;;  %v390_v28 = vpack.c.bf16 %v79_v17, %v79_v17  ;;  %v7142_v37 = vld [vmem:[%s9289_s1 + $0x2a8] sm:$0xff]   ;;  %v7144_v39 = vld [vmem:[%s9289_s1 + $0x2e0] sm:$0xff]  }
  0x1a   :  { %6393 = vmatprep.subr.bf16.mxu1 %v7090_v25  ;;  %v7132_v25 = vld [vmem:[%s9289_s1 + $0x2f8] sm:$0xff]   ;;  %v7145_v40 = vld [vmem:[%s9289_s1 + $0x220] sm:$0xff]   ;;  %v7154_v50 = vld [vmem:[%s9289_s1 + $0x290] sm:$0xff]  }
  0x1b   :  { %v391_v23 = vpack.c.bf16 %v81_v21, %v81_v21  ;;  %v7146_v42 = vld [vmem:[%s9289_s1 + $0x2a0] sm:$0xff]   ;;  %v7155_v51 = vld [vmem:[%s9289_s1 + $0x248] sm:$0xff]   ;;  %v7169_v10 = vld [vmem:[%s9289_s1 + $0x3f0] sm:$0xff]  }
  0x1c   :  { %6372 = vmatpush3.bf16.msra.mxu0 %v7091_v26  ;;  %v7133_v26 = vld [vmem:[%s9289_s1 + $0x238] sm:$0xff]   ;;  %v7172_v13 = vld [vmem:[%s9289_s1 + $0x368] sm:$0xff]   ;;  %v7176_v17 = vld [vmem:[%s9289_s1 + $0x360] sm:$0xff]  }
  0x1d   :  { %6394 = vmatpush3.bf16.msra.mxu1 %v7092_v27  ;;  %6373 = vmatprep.subr.bf16.mxu0 %v7093_v29  ;;  %v388_v27 = vpack.c.bf16 %v72_v12, %v72_v12  ;;  %v7134_v29 = vld [vmem:[%s9289_s1 + $0x2b8] sm:$0xff]   ;;  %v7171_v12 = vld [vmem:[%s9289_s1 + $0x3b0] sm:$0xff]   ;;  %v7175_v16 = vld [vmem:[%s9289_s1 + $0x3a8] sm:$0xff]  }
  0x1e   :  { %6395 = vmatprep.subr.bf16.mxu1 %v7094_v30  ;;  %v7135_v30 = vld [vmem:[%s9289_s1 + $0x270] sm:$0xff]   ;;  %v7180_v21 = vld [vmem:[%s9289_s1 + $0x358] sm:$0xff]  }
  0x20   :  { %6374 = vmatpush3.bf16.msra.mxu0 %v7095_v31  ;;  %v7136_v31 = vld [vmem:[%s9289_s1 + $0x2f0] sm:$0xff]  }
  0x21   :  { %6396 = vmatpush3.bf16.msra.mxu1 %v7096_v32  ;;  %6403 = vmatprep.subr.bf16.mxu0 %v7098_v35  ;;  %v7137_v32 = vld [vmem:[%s9289_s1 + $0x230] sm:$0xff]   ;;  %v7140_v35 = vld [vmem:[%s9289_s1 + $0x2e8] sm:$0xff]  }
  0x22   :  { %6425 = vmatprep.subr.bf16.mxu1 %v7099_v38  ;;  %v7143_v38 = vld [vmem:[%s9289_s1 + $0x260] sm:$0xff]  }
  0x23   :  { %4584 = vmatmul.mubr.bf16.vlgmr.msra.gmra.mxu0 %v384_v47  ;;  %v7151_v47 = vld [vmem:[%s9289_s1 + $0x250] sm:$0xff]  }
  0x24   :  { %4624 = vmatmul.mubr.bf16.vlgmr.msra.gmra.mxu1 %v386_v48  ;;  %6404 = vmatpush3.bf16.msra.mxu0 %v7100_v46  ;;  %v7150_v46 = vld [vmem:[%s9289_s1 + $0x298] sm:$0xff]   ;;  %v7152_v48 = vld [vmem:[%s9289_s1 + $0x2d0] sm:$0xff]  }
  0x25   :  { %6426 = vmatpush3.bf16.msra.mxu1 %v7101_v49  ;;  %6405 = vmatprep.subr.bf16.mxu0 %v7102_v52  ;;  %v7153_v49 = vld [vmem:[%s9289_s1 + $0x210] sm:$0xff]   ;;  %v7156_v52 = vld [vmem:[%s9289_s1 + $0x2c8] sm:$0xff]  }
  0x26   :  { %6427 = vmatprep.subr.bf16.mxu1 %v7103_v53  ;;  %4663 = vmatprep.mubr.bf16.mxu0 %v389_v20  ;;  %v18_v53 = vld [vmem:[%s9288_s0 + $0x10] sm:$0xff]  ;;  %v7179_v20 = vld [vmem:[%s9289_s1 + $0x3a0] sm:$0xff]  }
  0x27   :  { %4703 = vmatprep.mubr.bf16.mxu1 %v391_v23  ;;  %v7182_v23 = vld [vmem:[%s9289_s1 + $0x318] sm:$0xff]  }
  0x28   :  { %6406 = vmatpush3.bf16.msra.mxu0 %v7104_v54  ;;  %v7157_v54 = vld [vmem:[%s9289_s1 + $0x208] sm:$0xff]  }
  0x29   :  { %6428 = vmatpush3.bf16.msra.mxu1 %v7105_v55  ;;  %6407 = vmatprep.subr.bf16.mxu0 %v7106_v56  ;;  %v89_v55 = vrot.slane %v18_v53, %v7742_v41  ;;  %v82_v56 = vcombine.high %v18_v53, %v18_v53  ;;  %v7202_v53 = vld [vmem:[%s9289_s1 + $0x4f0] sm:$0xff]  }
  0x2a   :  { %6429 = vmatprep.subr.bf16.mxu1 %v7107_v57  ;;  %v7158_v57 = vld [vmem:[%s9289_s1 + $0x288] sm:$0xff]  }
  0x2c   :  { %6408 = vmatpush3.bf16.msra.mxu0 %v7108_v58  ;;  %v7159_v58 = vld [vmem:[%s9289_s1 + $0x240] sm:$0xff]  }
  0x2d   :  { %6430 = vmatpush3.bf16.msra.mxu1 %v7109_v59  ;;  %6409 = vmatprep.subr.bf16.mxu0 %v7110_v60  ;;  %v97_v59 = vcombine.high %v89_v55, %v89_v55  ;;  %v96_v60 = vrot.slane %v82_v56, %v7742_v41  ;;  %v7205_v56 = vld [vmem:[%s9289_s1 + $0x468] sm:$0xff]  }
  0x2e   :  { %6431 = vmatprep.subr.bf16.mxu1 %v7111_v61  ;;  %v7160_v61 = vld [vmem:[%s9289_s1 + $0x2c0] sm:$0xff]  }
  0x30   :  { %6410 = vmatpush3.bf16.msra.mxu0 %v7112_v62  ;;  %v7161_v62 = vld [vmem:[%s9289_s1 + $0x200] sm:$0xff]  }
  0x31   :  { %6432 = vmatpush3.bf16.msra.mxu1 %v7113_v63  ;;  %6411 = vmatprep.subr.bf16.mxu0 %v7114_v0  ;;  %v393_v63 = vpack.c.bf16 %v97_v59, %v97_v59  ;;  %v98_v0 = vcombine.high %v96_v60, %v96_v60  ;;  %v7208_v59 = vld [vmem:[%s9289_s1 + $0x4a8] sm:$0xff]  }
  0x32   :  { %6433 = vmatprep.subr.bf16.mxu1 %v7115_v1  ;;  %v7162_v1 = vld [vmem:[%s9289_s1 + $0x280] sm:$0xff]  }
  0x34   :  { %6412 = vmatpush3.bf16.msra.mxu0 %v7116_v2  ;;  %v395_v2 = vpack.c.bf16 %v98_v0, %v98_v0  ;;  %v7213_v0 = vld [vmem:[%s9289_s1 + $0x458] sm:$0xff]  }
  0x35   :  { %6434 = vmatpush3.bf16.msra.mxu1 %v7117_v3  ;;  %6413 = vmatprep.subr.bf16.mxu0 %v7118_v4  ;;  %v7164_v3 = vld [vmem:[%s9289_s1 + $0x378] sm:$0xff]  }
  0x36   :  { %6435 = vmatprep.subr.bf16.mxu1 %v7119_v5  ;;  %v7165_v4 = vld [vmem:[%s9289_s1 + $0x3f8] sm:$0xff]  }
  0x37   :  { %v7166_v5 = vld [vmem:[%s9289_s1 + $0x338] sm:$0xff]  }
  0x38   :  { %6414 = vmatpush3.bf16.msra.mxu0 %v7120_v6  ;;  %v392_v6 = vpack.c.bf16 %v89_v55, %v89_v55  ;;  %v7204_v55 = vld [vmem:[%s9289_s1 + $0x4b0] sm:$0xff]  }
  0x39   :  { %6436 = vmatpush3.bf16.msra.mxu1 %v7121_v7  ;;  %6415 = vmatprep.subr.bf16.mxu0 %v7122_v8  ;;  %v394_v7 = vpack.c.bf16 %v96_v60, %v96_v60  ;;  %v7167_v8 = vld [vmem:[%s9289_s1 + $0x3b8] sm:$0xff]   ;;  %v7209_v60 = vld [vmem:[%s9289_s1 + $0x460] sm:$0xff]  }
  0x3a   :  { %6437 = vmatprep.subr.bf16.mxu1 %v7123_v9  ;;  %v7168_v9 = vld [vmem:[%s9289_s1 + $0x370] sm:$0xff]  }
  0x3c   :  { %6416 = vmatpush3.bf16.msra.mxu0 %v7124_v11  ;;  %v7170_v11 = vld [vmem:[%s9289_s1 + $0x330] sm:$0xff]  }
  0x3d   :  { %6438 = vmatpush3.bf16.msra.mxu1 %v7125_v14  ;;  %6417 = vmatprep.subr.bf16.mxu0 %v7126_v15  ;;  %v7173_v14 = vld [vmem:[%s9289_s1 + $0x3e8] sm:$0xff]  }
  0x3e   :  { %6439 = vmatprep.subr.bf16.mxu1 %v7127_v18  ;;  %v7174_v15 = vld [vmem:[%s9289_s1 + $0x328] sm:$0xff]   ;;  %v7177_v18 = vld [vmem:[%s9289_s1 + $0x3e0] sm:$0xff]  }
  0x40   :  { %6418 = vmatpush3.bf16.msra.mxu0 %v7128_v19  ;;  %v7178_v19 = vld [vmem:[%s9289_s1 + $0x320] sm:$0xff]  }
  0x41   :  { %6440 = vmatpush3.bf16.msra.mxu1 %v7129_v22  ;;  %6447 = vmatprep.subr.bf16.mxu0 %v7131_v24  ;;  %v7181_v22 = vld [vmem:[%s9289_s1 + $0x3d8] sm:$0xff]  }
  0x42   :  { %6469 = vmatprep.subr.bf16.mxu1 %v7132_v25  ;;  %v7183_v24 = vld [vmem:[%s9289_s1 + $0x398] sm:$0xff]   ;;  %v7184_v25 = vld [vmem:[%s9289_s1 + $0x350] sm:$0xff]  }
  0x43   :  { %4664 = vmatmul.mubr.bf16.vlgmr.msra.gmra.mxu0 %v388_v27  ;;  %v7186_v27 = vld [vmem:[%s9289_s1 + $0x310] sm:$0xff]  }
  0x44   :  { %4704 = vmatmul.mubr.bf16.vlgmr.msra.gmra.mxu1 %v390_v28  ;;  %6448 = vmatpush3.bf16.msra.mxu0 %v7133_v26  ;;  %v7185_v26 = vld [vmem:[%s9289_s1 + $0x3d0] sm:$0xff]  }
  0x45   :  { %6470 = vmatpush3.bf16.msra.mxu1 %v7134_v29  ;;  %6449 = vmatprep.subr.bf16.mxu0 %v7135_v30  ;;  %v7187_v28 = vld [vmem:[%s9289_s1 + $0x390] sm:$0xff]   ;;  %v7188_v29 = vld [vmem:[%s9289_s1 + $0x348] sm:$0xff]  }
  0x46   :  { %6471 = vmatprep.subr.bf16.mxu1 %v7136_v31  ;;  %4743 = vmatprep.mubr.bf16.mxu0 %v393_v63  ;;  %v7189_v30 = vld [vmem:[%s9289_s1 + $0x3c8] sm:$0xff]   ;;  %v7212_v63 = vld [vmem:[%s9289_s1 + $0x4a0] sm:$0xff]  }
  0x47   :  { %4783 = vmatprep.mubr.bf16.mxu1 %v395_v2  ;;  %v7190_v31 = vld [vmem:[%s9289_s1 + $0x308] sm:$0xff]   ;;  %v7215_v2 = vld [vmem:[%s9289_s1 + $0x418] sm:$0xff]  }
  0x48   :  { %6450 = vmatpush3.bf16.msra.mxu0 %v7137_v32  ;;  %v19_v32 = vld [vmem:[%s9288_s0 + $0x18] sm:$0xff] }
  0x49   :  { %6472 = vmatpush3.bf16.msra.mxu1 %v7138_v33  ;;  %6451 = vmatprep.subr.bf16.mxu0 %v7139_v34  ;;  %v7191_v33 = vld [vmem:[%s9289_s1 + $0x388] sm:$0xff]   ;;  %v106_v34 = vrot.slane %v19_v32, %v7742_v41 }
  0x4a   :  { %6473 = vmatprep.subr.bf16.mxu1 %v7140_v35  ;;  %v99_v35 = vcombine.high %v19_v32, %v19_v32  ;;  %v7236_v32 = vld [vmem:[%s9289_s1 + $0x530] sm:$0xff]  }
  0x4c   :  { %6452 = vmatpush3.bf16.msra.mxu0 %v7141_v36  ;;  %v7192_v36 = vld [vmem:[%s9289_s1 + $0x340] sm:$0xff]  }
  0x4d   :  { %6474 = vmatpush3.bf16.msra.mxu1 %v7142_v37  ;;  %6453 = vmatprep.subr.bf16.mxu0 %v7143_v38  ;;  %v7193_v37 = vld [vmem:[%s9289_s1 + $0x3c0] sm:$0xff]   ;;  %v114_v38 = vcombine.high %v106_v34, %v106_v34 }
  0x4e   :  { %6475 = vmatprep.subr.bf16.mxu1 %v7144_v39  ;;  %v113_v39 = vrot.slane %v99_v35, %v7742_v41  ;;  %v7239_v35 = vld [vmem:[%s9289_s1 + $0x5e8] sm:$0xff]  }
  0x50   :  { %6454 = vmatpush3.bf16.msra.mxu0 %v7145_v40  ;;  %v7194_v40 = vld [vmem:[%s9289_s1 + $0x300] sm:$0xff]  }
  0x51   :  { %6476 = vmatpush3.bf16.msra.mxu1 %v7146_v42  ;;  %6455 = vmatprep.subr.bf16.mxu0 %v7147_v43  ;;  %v7195_v42 = vld [vmem:[%s9289_s1 + $0x380] sm:$0xff]   ;;  %v397_v43 = vpack.c.bf16 %v114_v38, %v114_v38 }
  0x52   :  { %6477 = vmatprep.subr.bf16.mxu1 %v7148_v44  ;;  %v115_v44 = vcombine.high %v113_v39, %v113_v39  ;;  %v7242_v38 = vld [vmem:[%s9289_s1 + $0x560] sm:$0xff]  }
  0x54   :  { %6456 = vmatpush3.bf16.msra.mxu0 %v7149_v45  ;;  %v7197_v45 = vld [vmem:[%s9289_s1 + $0x478] sm:$0xff]  }
  0x55   :  { %6478 = vmatpush3.bf16.msra.mxu1 %v7150_v46  ;;  %6457 = vmatprep.subr.bf16.mxu0 %v7151_v47  ;;  %v399_v46 = vpack.c.bf16 %v115_v44, %v115_v44  ;;  %v7198_v47 = vld [vmem:[%s9289_s1 + $0x4f8] sm:$0xff]  }
  0x56   :  { %6479 = vmatprep.subr.bf16.mxu1 %v7152_v48  ;;  %v7199_v48 = vld [vmem:[%s9289_s1 + $0x438] sm:$0xff]  }
  0x57   :  { %v7247_v44 = vld [vmem:[%s9289_s1 + $0x5d8] sm:$0xff]  }
  0x58   :  { %6458 = vmatpush3.bf16.msra.mxu0 %v7153_v49  ;;  %v396_v49 = vpack.c.bf16 %v106_v34, %v106_v34  ;;  %v7238_v34 = vld [vmem:[%s9289_s1 + $0x568] sm:$0xff]  }
  0x59   :  { %6480 = vmatpush3.bf16.msra.mxu1 %v7154_v50  ;;  %6459 = vmatprep.subr.bf16.mxu0 %v7155_v51  ;;  %v398_v50 = vpack.c.bf16 %v113_v39, %v113_v39  ;;  %v7200_v51 = vld [vmem:[%s9289_s1 + $0x4b8] sm:$0xff]   ;;  %v7243_v39 = vld [vmem:[%s9289_s1 + $0x5e0] sm:$0xff]  }
  0x5a   :  { %6481 = vmatprep.subr.bf16.mxu1 %v7156_v52  ;;  %v7201_v52 = vld [vmem:[%s9289_s1 + $0x470] sm:$0xff]  }
  0x5c   :  { %6460 = vmatpush3.bf16.msra.mxu0 %v7157_v54  ;;  %v7203_v54 = vld [vmem:[%s9289_s1 + $0x430] sm:$0xff]  }
  0x5d   :  { %6482 = vmatpush3.bf16.msra.mxu1 %v7158_v57  ;;  %6461 = vmatprep.subr.bf16.mxu0 %v7159_v58  ;;  %v7206_v57 = vld [vmem:[%s9289_s1 + $0x4e8] sm:$0xff]  }
  0x5e   :  { %6483 = vmatprep.subr.bf16.mxu1 %v7160_v61  ;;  %v7207_v58 = vld [vmem:[%s9289_s1 + $0x428] sm:$0xff]   ;;  %v7210_v61 = vld [vmem:[%s9289_s1 + $0x4e0] sm:$0xff]  }
  0x60   :  { %6462 = vmatpush3.bf16.msra.mxu0 %v7161_v62  ;;  %v7211_v62 = vld [vmem:[%s9289_s1 + $0x420] sm:$0xff]  }
  0x61   :  { %6484 = vmatpush3.bf16.msra.mxu1 %v7162_v1  ;;  %6491 = vmatprep.subr.bf16.mxu0 %v7164_v3  ;;  %v7214_v1 = vld [vmem:[%s9289_s1 + $0x4d8] sm:$0xff]  }
  0x62   :  { %6513 = vmatprep.subr.bf16.mxu1 %v7165_v4  ;;  %v7216_v3 = vld [vmem:[%s9289_s1 + $0x498] sm:$0xff]   ;;  %v7217_v4 = vld [vmem:[%s9289_s1 + $0x450] sm:$0xff]  }
  0x63   :  { %4744 = vmatmul.mubr.bf16.vlgmr.msra.gmra.mxu0 %v392_v6  ;;  %v7219_v6 = vld [vmem:[%s9289_s1 + $0x410] sm:$0xff]  }
  0x64   :  { %4784 = vmatmul.mubr.bf16.vlgmr.msra.gmra.mxu1 %v394_v7  ;;  %6492 = vmatpush3.bf16.msra.mxu0 %v7166_v5  ;;  %v7218_v5 = vld [vmem:[%s9289_s1 + $0x4d0] sm:$0xff]  }
  0x65   :  { %6514 = vmatpush3.bf16.msra.mxu1 %v7167_v8  ;;  %6493 = vmatprep.subr.bf16.mxu0 %v7168_v9  ;;  %v7220_v7 = vld [vmem:[%s9289_s1 + $0x490] sm:$0xff]   ;;  %v7221_v8 = vld [vmem:[%s9289_s1 + $0x448] sm:$0xff]  }
  0x66   :  { %6515 = vmatprep.subr.bf16.mxu1 %v7169_v10  ;;  %4823 = vmatprep.mubr.bf16.mxu0 %v397_v43  ;;  %v7222_v9 = vld [vmem:[%s9289_s1 + $0x4c8] sm:$0xff]   ;;  %v7246_v43 = vld [vmem:[%s9289_s1 + $0x558] sm:$0xff]  }
  0x67   :  { %4863 = vmatprep.mubr.bf16.mxu1 %v399_v46  ;;  %v7223_v10 = vld [vmem:[%s9289_s1 + $0x408] sm:$0xff]   ;;  %v7249_v46 = vld [vmem:[%s9289_s1 + $0x598] sm:$0xff]  }
  0x68   :  { %6494 = vmatpush3.bf16.msra.mxu0 %v7170_v11  ;;  %v20_v11 = vld [vmem:[%s9288_s0 + $0x20] sm:$0xff] }
  0x69   :  { %6516 = vmatpush3.bf16.msra.mxu1 %v7171_v12  ;;  %6495 = vmatprep.subr.bf16.mxu0 %v7172_v13  ;;  %v7224_v12 = vld [vmem:[%s9289_s1 + $0x488] sm:$0xff]   ;;  %v123_v13 = vrot.slane %v20_v11, %v7742_v41 }
  0x6a   :  { %6517 = vmatprep.subr.bf16.mxu1 %v7173_v14  ;;  %v116_v14 = vcombine.high %v20_v11, %v20_v11  ;;  %v7269_v11 = vld [vmem:[%s9289_s1 + $0x630] sm:$0xff]  }
  0x6c   :  { %6496 = vmatpush3.bf16.msra.mxu0 %v7174_v15  ;;  %v7225_v15 = vld [vmem:[%s9289_s1 + $0x440] sm:$0xff]  }
  0x6d   :  { %6518 = vmatpush3.bf16.msra.mxu1 %v7175_v16  ;;  %6497 = vmatprep.subr.bf16.mxu0 %v7176_v17  ;;  %v7226_v16 = vld [vmem:[%s9289_s1 + $0x4c0] sm:$0xff]   ;;  %v131_v17 = vcombine.high %v123_v13, %v123_v13 }
  0x6e   :  { %6519 = vmatprep.subr.bf16.mxu1 %v7177_v18  ;;  %v130_v18 = vrot.slane %v116_v14, %v7742_v41  ;;  %v7272_v14 = vld [vmem:[%s9289_s1 + $0x6e8] sm:$0xff]  }
  0x70   :  { %6498 = vmatpush3.bf16.msra.mxu0 %v7178_v19  ;;  %v7227_v19 = vld [vmem:[%s9289_s1 + $0x400] sm:$0xff]  }
  0x71   :  { %6520 = vmatpush3.bf16.msra.mxu1 %v7179_v20  ;;  %6499 = vmatprep.subr.bf16.mxu0 %v7180_v21  ;;  %v7228_v20 = vld [vmem:[%s9289_s1 + $0x480] sm:$0xff]   ;;  %v401_v21 = vpack.c.bf16 %v131_v17, %v131_v17 }
  0x72   :  { %6521 = vmatprep.subr.bf16.mxu1 %v7181_v22  ;;  %v132_v22 = vcombine.high %v130_v18, %v130_v18  ;;  %v7275_v17 = vld [vmem:[%s9289_s1 + $0x660] sm:$0xff]  }
  0x74   :  { %6500 = vmatpush3.bf16.msra.mxu0 %v7182_v23  ;;  %v7230_v23 = vld [vmem:[%s9289_s1 + $0x578] sm:$0xff]  }
  0x75   :  { %6522 = vmatpush3.bf16.msra.mxu1 %v7183_v24  ;;  %6501 = vmatprep.subr.bf16.mxu0 %v7184_v25  ;;  %v403_v24 = vpack.c.bf16 %v132_v22, %v132_v22  ;;  %v7231_v25 = vld [vmem:[%s9289_s1 + $0x5f8] sm:$0xff]  }
  0x76   :  { %6523 = vmatprep.subr.bf16.mxu1 %v7185_v26  ;;  %v7232_v26 = vld [vmem:[%s9289_s1 + $0x538] sm:$0xff]  }
  0x77   :  { %v7280_v22 = vld [vmem:[%s9289_s1 + $0x6d8] sm:$0xff]  }
  0x78   :  { %6502 = vmatpush3.bf16.msra.mxu0 %v7186_v27  ;;  %v400_v27 = vpack.c.bf16 %v123_v13, %v123_v13  ;;  %v7271_v13 = vld [vmem:[%s9289_s1 + $0x668] sm:$0xff]  }
  0x79   :  { %6524 = vmatpush3.bf16.msra.mxu1 %v7187_v28  ;;  %6503 = vmatprep.subr.bf16.mxu0 %v7188_v29  ;;  %v402_v28 = vpack.c.bf16 %v130_v18, %v130_v18  ;;  %v7233_v29 = vld [vmem:[%s9289_s1 + $0x5b8] sm:$0xff]   ;;  %v7276_v18 = vld [vmem:[%s9289_s1 + $0x6e0] sm:$0xff]  }
  0x7a   :  { %6525 = vmatprep.subr.bf16.mxu1 %v7189_v30  ;;  %v7234_v30 = vld [vmem:[%s9289_s1 + $0x570] sm:$0xff]  }
  0x7c   :  { %6504 = vmatpush3.bf16.msra.mxu0 %v7190_v31  ;;  %v7235_v31 = vld [vmem:[%s9289_s1 + $0x5f0] sm:$0xff]  }
  0x7d   :  { %6526 = vmatpush3.bf16.msra.mxu1 %v7191_v33  ;;  %6505 = vmatprep.subr.bf16.mxu0 %v7192_v36  ;;  %v7237_v33 = vld [vmem:[%s9289_s1 + $0x5b0] sm:$0xff]   ;;  %v7240_v36 = vld [vmem:[%s9289_s1 + $0x528] sm:$0xff]  }
  0x7e   :  { %6527 = vmatprep.subr.bf16.mxu1 %v7193_v37  ;;  %v7241_v37 = vld [vmem:[%s9289_s1 + $0x5a8] sm:$0xff]  }
  0x80   :  { %6506 = vmatpush3.bf16.msra.mxu0 %v7194_v40  ;;  %v7244_v40 = vld [vmem:[%s9289_s1 + $0x520] sm:$0xff]  }
  0x81   :  { %6528 = vmatpush3.bf16.msra.mxu1 %v7195_v42  ;;  %6535 = vmatprep.subr.bf16.mxu0 %v7197_v45  ;;  %v7245_v42 = vld [vmem:[%s9289_s1 + $0x5a0] sm:$0xff]   ;;  %v7248_v45 = vld [vmem:[%s9289_s1 + $0x518] sm:$0xff]  }
  0x82   :  { %6557 = vmatprep.subr.bf16.mxu1 %v7198_v47  ;;  %v7250_v47 = vld [vmem:[%s9289_s1 + $0x550] sm:$0xff]  }
  0x83   :  { %4824 = vmatmul.mubr.bf16.vlgmr.msra.gmra.mxu0 %v396_v49  ;;  %v7252_v49 = vld [vmem:[%s9289_s1 + $0x510] sm:$0xff]  }
  0x84   :  { %4864 = vmatmul.mubr.bf16.vlgmr.msra.gmra.mxu1 %v398_v50  ;;  %6536 = vmatpush3.bf16.msra.mxu0 %v7199_v48  ;;  %v7251_v48 = vld [vmem:[%s9289_s1 + $0x5d0] sm:$0xff]  }
  0x85   :  { %6558 = vmatpush3.bf16.msra.mxu1 %v7200_v51  ;;  %6537 = vmatprep.subr.bf16.mxu0 %v7201_v52  ;;  %v7253_v50 = vld [vmem:[%s9289_s1 + $0x590] sm:$0xff]   ;;  %v7254_v51 = vld [vmem:[%s9289_s1 + $0x548] sm:$0xff]  }
  0x86   :  { %6559 = vmatprep.subr.bf16.mxu1 %v7202_v53  ;;  %4903 = vmatprep.mubr.bf16.mxu0 %v401_v21  ;;  %v7255_v52 = vld [vmem:[%s9289_s1 + $0x5c8] sm:$0xff]   ;;  %v7279_v21 = vld [vmem:[%s9289_s1 + $0x658] sm:$0xff]  }
  0x87   :  { %4943 = vmatprep.mubr.bf16.mxu1 %v403_v24  ;;  %v7256_v53 = vld [vmem:[%s9289_s1 + $0x508] sm:$0xff]   ;;  %v7282_v24 = vld [vmem:[%s9289_s1 + $0x698] sm:$0xff]  }
  0x88   :  { %6538 = vmatpush3.bf16.msra.mxu0 %v7203_v54  ;;  %v21_v54 = vld [vmem:[%s9288_s0 + $0x28] sm:$0xff] }
  0x89   :  { %6560 = vmatpush3.bf16.msra.mxu1 %v7204_v55  ;;  %6539 = vmatprep.subr.bf16.mxu0 %v7205_v56  ;;  %v7257_v55 = vld [vmem:[%s9289_s1 + $0x588] sm:$0xff]   ;;  %v140_v56 = vrot.slane %v21_v54, %v7742_v41 }
  0x8a   :  { %6561 = vmatprep.subr.bf16.mxu1 %v7206_v57  ;;  %v133_v57 = vcombine.high %v21_v54, %v21_v54  ;;  %v7302_v54 = vld [vmem:[%s9289_s1 + $0x730] sm:$0xff]  }
  0x8c   :  { %6540 = vmatpush3.bf16.msra.mxu0 %v7207_v58  ;;  %v7258_v58 = vld [vmem:[%s9289_s1 + $0x540] sm:$0xff]  }
  0x8d   :  { %6562 = vmatpush3.bf16.msra.mxu1 %v7208_v59  ;;  %6541 = vmatprep.subr.bf16.mxu0 %v7209_v60  ;;  %v7259_v59 = vld [vmem:[%s9289_s1 + $0x5c0] sm:$0xff]   ;;  %v148_v60 = vcombine.high %v140_v56, %v140_v56 }
  0x8e   :  { %6563 = vmatprep.subr.bf16.mxu1 %v7210_v61  ;;  %v147_v61 = vrot.slane %v133_v57, %v7742_v41  ;;  %v5846_v57 = vld [vmem:[%s9290_s2] ss:$0 sm:$0xff] }
  0x90   :  { %6542 = vmatpush3.bf16.msra.mxu0 %v7211_v62  ;;  %v7260_v62 = vld [vmem:[%s9289_s1 + $0x500] sm:$0xff]  }
  0x91   :  { %6564 = vmatpush3.bf16.msra.mxu1 %v7212_v63  ;;  %6543 = vmatprep.subr.bf16.mxu0 %v7213_v0  ;;  %v7261_v63 = vld [vmem:[%s9289_s1 + $0x580] sm:$0xff]   ;;  %v405_v0 = vpack.c.bf16 %v148_v60, %v148_v60 }
  0x92   :  { %6565 = vmatprep.subr.bf16.mxu1 %v7214_v1  ;;  %v149_v1 = vcombine.high %v147_v61, %v147_v61 }
  0x94   :  { %6544 = vmatpush3.bf16.msra.mxu0 %v7215_v2  ;;  %v7263_v2 = vld [vmem:[%s9289_s1 + $0x678] sm:$0xff]  }
  0x95   :  { %6566 = vmatpush3.bf16.msra.mxu1 %v7216_v3  ;;  %6545 = vmatprep.subr.bf16.mxu0 %v7217_v4  ;;  %v407_v3 = vpack.c.bf16 %v149_v1, %v149_v1  ;;  %v7264_v4 = vld [vmem:[%s9289_s1 + $0x6f8] sm:$0xff]   ;;  %v7306_v1 = vld [vmem:[%s9289_s1 + $0x728] sm:$0xff]  }
  0x96   :  { %6567 = vmatprep.subr.bf16.mxu1 %v7218_v5  ;;  %v7265_v5 = vld [vmem:[%s9289_s1 + $0x638] sm:$0xff]  }
  0x98   :  { %6546 = vmatpush3.bf16.msra.mxu0 %v7219_v6  ;;  %v404_v6 = vpack.c.bf16 %v140_v56, %v140_v56 }
  0x99   :  { %6568 = vmatpush3.bf16.msra.mxu1 %v7220_v7  ;;  %6547 = vmatprep.subr.bf16.mxu0 %v7221_v8  ;;  %v406_v7 = vpack.c.bf16 %v147_v61, %v147_v61  ;;  %v7266_v8 = vld [vmem:[%s9289_s1 + $0x6b8] sm:$0xff]  }
  0x9a   :  { %6569 = vmatprep.subr.bf16.mxu1 %v7222_v9  ;;  %v7267_v9 = vld [vmem:[%s9289_s1 + $0x670] sm:$0xff]  }
  0x9c   :  { %6548 = vmatpush3.bf16.msra.mxu0 %v7223_v10  ;;  %v7268_v10 = vld [vmem:[%s9289_s1 + $0x6f0] sm:$0xff]  }
  0x9d   :  { %6570 = vmatpush3.bf16.msra.mxu1 %v7224_v12  ;;  %6549 = vmatprep.subr.bf16.mxu0 %v7225_v15  ;;  %v7270_v12 = vld [vmem:[%s9289_s1 + $0x6b0] sm:$0xff]   ;;  %v7273_v15 = vld [vmem:[%s9289_s1 + $0x628] sm:$0xff]  }
  0x9e   :  { %6571 = vmatprep.subr.bf16.mxu1 %v7226_v16  ;;  %v7274_v16 = vld [vmem:[%s9289_s1 + $0x6a8] sm:$0xff]  }
  0xa0   :  { %6550 = vmatpush3.bf16.msra.mxu0 %v7227_v19  ;;  %v7277_v19 = vld [vmem:[%s9289_s1 + $0x620] sm:$0xff]  }
  0xa1   :  { %6572 = vmatpush3.bf16.msra.mxu1 %v7228_v20  ;;  %6579 = vmatprep.subr.bf16.mxu0 %v7230_v23  ;;  %v7278_v20 = vld [vmem:[%s9289_s1 + $0x6a0] sm:$0xff]   ;;  %v7281_v23 = vld [vmem:[%s9289_s1 + $0x618] sm:$0xff]  }
  0xa2   :  { %6601 = vmatprep.subr.bf16.mxu1 %v7231_v25  ;;  %v7283_v25 = vld [vmem:[%s9289_s1 + $0x650] sm:$0xff]  }
  0xa3   :  { %4904 = vmatmul.mubr.bf16.vlgmr.msra.gmra.mxu0 %v400_v27  ;;  %v7285_v27 = vld [vmem:[%s9289_s1 + $0x610] sm:$0xff]  }
  0xa4   :  { %4944 = vmatmul.mubr.bf16.vlgmr.msra.gmra.mxu1 %v402_v28  ;;  %6580 = vmatpush3.bf16.msra.mxu0 %v7232_v26  ;;  %v7284_v26 = vld [vmem:[%s9289_s1 + $0x6d0] sm:$0xff]  }
  0xa5   :  { %6602 = vmatpush3.bf16.msra.mxu1 %v7233_v29  ;;  %6581 = vmatprep.subr.bf16.mxu0 %v7234_v30  ;;  %v7286_v28 = vld [vmem:[%s9289_s1 + $0x690] sm:$0xff]   ;;  %v7287_v29 = vld [vmem:[%s9289_s1 + $0x648] sm:$0xff]  }
  0xa6   :  { %6603 = vmatprep.subr.bf16.mxu1 %v7235_v31  ;;  %4983 = vmatprep.mubr.bf16.mxu0 %v405_v0  ;;  %v7288_v30 = vld [vmem:[%s9289_s1 + $0x6c8] sm:$0xff]  }
  0xa7   :  { %5023 = vmatprep.mubr.bf16.mxu1 %v407_v3  ;;  %v7289_v31 = vld [vmem:[%s9289_s1 + $0x608] sm:$0xff]  }
  0xa8   :  { %6582 = vmatpush3.bf16.msra.mxu0 %v7236_v32  ;;  %v7290_v32 = vld [vmem:[%s9289_s1 + $0x688] sm:$0xff]  }
  0xa9   :  { %6604 = vmatpush3.bf16.msra.mxu1 %v7237_v33  ;;  %6583 = vmatprep.subr.bf16.mxu0 %v7238_v34  ;;  %v22_v33 = vld [vmem:[%s9288_s0 + $0x30] sm:$0xff]  ;;  %v7291_v34 = vld [vmem:[%s9289_s1 + $0x640] sm:$0xff]  }
  0xaa   :  { %6605 = vmatprep.subr.bf16.mxu1 %v7239_v35  ;;  %v157_v35 = vrot.slane %v22_v33, %v7742_v41 }
  0xac   :  { %6584 = vmatpush3.bf16.msra.mxu0 %v7240_v36  ;;  %v150_v36 = vcombine.high %v22_v33, %v22_v33  ;;  %v7327_v33 = vld [vmem:[%s9289_s1 + $0x780] sm:$0xff]  }
  0xad   :  { %6606 = vmatpush3.bf16.msra.mxu1 %v7241_v37  ;;  %6585 = vmatprep.subr.bf16.mxu0 %v7242_v38  ;;  %v7292_v37 = vld [vmem:[%s9289_s1 + $0x6c0] sm:$0xff]   ;;  %v165_v38 = vcombine.high %v157_v35, %v157_v35 }
  0xae   :  { %6607 = vmatprep.subr.bf16.mxu1 %v7243_v39  ;;  %v164_v39 = vrot.slane %v150_v36, %v7742_v41  ;;  %v7329_v36 = vld [vmem:[%s9289_s1 + $0x878] sm:$0xff]  }
  0xb0   :  { %6586 = vmatpush3.bf16.msra.mxu0 %v7244_v40  ;;  %v7293_v40 = vld [vmem:[%s9289_s1 + $0x600] sm:$0xff]  }
  0xb1   :  { %6608 = vmatpush3.bf16.msra.mxu1 %v7245_v42  ;;  %6587 = vmatprep.subr.bf16.mxu0 %v7246_v43  ;;  %v7294_v42 = vld [vmem:[%s9289_s1 + $0x680] sm:$0xff]   ;;  %v409_v43 = vpack.c.bf16 %v165_v38, %v165_v38 }
  0xb2   :  { %6609 = vmatprep.subr.bf16.mxu1 %v7247_v44  ;;  %v166_v44 = vcombine.high %v164_v39, %v164_v39 }
  0xb4   :  { %6588 = vmatpush3.bf16.msra.mxu0 %v7248_v45  ;;  %v7296_v45 = vld [vmem:[%s9289_s1 + $0x778] sm:$0xff]  }
  0xb5   :  { %6610 = vmatpush3.bf16.msra.mxu1 %v7249_v46  ;;  %6589 = vmatprep.subr.bf16.mxu0 %v7250_v47  ;;  %v7297_v46 = vld [vmem:[%s9289_s1 + $0x7f8] sm:$0xff]   ;;  %v411_v47 = vpack.c.bf16 %v166_v44, %v166_v44  ;;  %v7333_v44 = vld [vmem:[%s9289_s1 + $0x870] sm:$0xff]  }
  0xb6   :  { %6611 = vmatprep.subr.bf16.mxu1 %v7251_v48  ;;  %v7298_v48 = vld [vmem:[%s9289_s1 + $0x738] sm:$0xff]  }
  0xb8   :  { %6590 = vmatpush3.bf16.msra.mxu0 %v7252_v49  ;;  %v408_v49 = vpack.c.bf16 %v157_v35, %v157_v35 }
  0xb9   :  { %6612 = vmatpush3.bf16.msra.mxu1 %v7253_v50  ;;  %6591 = vmatprep.subr.bf16.mxu0 %v7254_v51  ;;  %v410_v50 = vpack.c.bf16 %v164_v39, %v164_v39  ;;  %v7299_v51 = vld [vmem:[%s9289_s1 + $0x7b8] sm:$0xff]  }
  0xba   :  { %6613 = vmatprep.subr.bf16.mxu1 %v7255_v52  ;;  %v7300_v52 = vld [vmem:[%s9289_s1 + $0x770] sm:$0xff]   ;;  %v7331_v39 = vld [vmem:[%s9289_s1 + $0x838] sm:$0xff]  }
  0xbc   :  { %6592 = vmatpush3.bf16.msra.mxu0 %v7256_v53  ;;  %v7301_v53 = vld [vmem:[%s9289_s1 + $0x7f0] sm:$0xff]  }
  0xbd   :  { %6614 = vmatpush3.bf16.msra.mxu1 %v7257_v55  ;;  %6593 = vmatprep.subr.bf16.mxu0 %v7258_v58  ;;  %v7303_v58 = vld [vmem:[%s9289_s1 + $0x7b0] sm:$0xff]  }
  0xbe   :  { %6615 = vmatprep.subr.bf16.mxu1 %v7259_v59  ;;  %v7304_v59 = vld [vmem:[%s9289_s1 + $0x768] sm:$0xff]  }
  0xc0   :  { %6594 = vmatpush3.bf16.msra.mxu0 %v7260_v62  ;;  %v7305_v62 = vld [vmem:[%s9289_s1 + $0x7e8] sm:$0xff]  }
  0xc1   :  { %6616 = vmatpush3.bf16.msra.mxu1 %v7261_v63  ;;  %6623 = vmatprep.subr.bf16.mxu0 %v7263_v2 }
  0xc2   :  { %6645 = vmatprep.subr.bf16.mxu1 %v7264_v4  ;;  %v7307_v4 = vld [vmem:[%s9289_s1 + $0x7a8] sm:$0xff]  }
  0xc3   :  { %4984 = vmatmul.mubr.bf16.vlgmr.msra.gmra.mxu0 %v404_v6  ;;  %v7308_v6 = vld [vmem:[%s9289_s1 + $0x760] sm:$0xff]  }
  0xc4   :  { %5024 = vmatmul.mubr.bf16.vlgmr.msra.gmra.mxu1 %v406_v7  ;;  %6624 = vmatpush3.bf16.msra.mxu0 %v7265_v5 }
  0xc5   :  { %6646 = vmatpush3.bf16.msra.mxu1 %v7266_v8  ;;  %6625 = vmatprep.subr.bf16.mxu0 %v7267_v9  ;;  %v7309_v9 = vld [vmem:[%s9289_s1 + $0x7e0] sm:$0xff]  }
  0xc6   :  { %6647 = vmatprep.subr.bf16.mxu1 %v7268_v10  ;;  %5063 = vmatprep.mubr.bf16.mxu0 %v409_v43  ;;  %v7332_v43 = vld [vmem:[%s9289_s1 + $0x8b8] sm:$0xff]  }
  0xc7   :  { %5103 = vmatprep.mubr.bf16.mxu1 %v411_v47 }
  0xc8   :  { %6626 = vmatpush3.bf16.msra.mxu0 %v7269_v11  ;;  %v7310_v11 = vld [vmem:[%s9289_s1 + $0x720] sm:$0xff]  }
  0xc9   :  { %6648 = vmatpush3.bf16.msra.mxu1 %v7270_v12  ;;  %6627 = vmatprep.subr.bf16.mxu0 %v7271_v13  ;;  %v7311_v12 = vld [vmem:[%s9289_s1 + $0x7a0] sm:$0xff]   ;;  %v7312_v13 = vld [vmem:[%s9289_s1 + $0x758] sm:$0xff]  }
  0xca   :  { %6649 = vmatprep.subr.bf16.mxu1 %v7272_v14  ;;  %v7313_v14 = vld [vmem:[%s9289_s1 + $0x7d8] sm:$0xff]  }
  0xcc   :  { %6628 = vmatpush3.bf16.msra.mxu0 %v7273_v15  ;;  %v7314_v15 = vld [vmem:[%s9289_s1 + $0x718] sm:$0xff]  }
  0xcd   :  { %6650 = vmatpush3.bf16.msra.mxu1 %v7274_v16  ;;  %6629 = vmatprep.subr.bf16.mxu0 %v7275_v17  ;;  %v7315_v16 = vld [vmem:[%s9289_s1 + $0x798] sm:$0xff]   ;;  %v7316_v17 = vld [vmem:[%s9289_s1 + $0x750] sm:$0xff]  }
  0xce   :  { %6651 = vmatprep.subr.bf16.mxu1 %v7276_v18  ;;  %v7317_v18 = vld [vmem:[%s9289_s1 + $0x7d0] sm:$0xff]  }
  0xd0   :  { %6630 = vmatpush3.bf16.msra.mxu0 %v7277_v19  ;;  %v7318_v19 = vld [vmem:[%s9289_s1 + $0x710] sm:$0xff]  }
  0xd1   :  { %6652 = vmatpush3.bf16.msra.mxu1 %v7278_v20  ;;  %6631 = vmatprep.subr.bf16.mxu0 %v7279_v21  ;;  %v7319_v20 = vld [vmem:[%s9289_s1 + $0x790] sm:$0xff]   ;;  %v7320_v21 = vld [vmem:[%s9289_s1 + $0x748] sm:$0xff]  }
  0xd2   :  { %6653 = vmatprep.subr.bf16.mxu1 %v7280_v22  ;;  %v7321_v22 = vld [vmem:[%s9289_s1 + $0x7c8] sm:$0xff]  }
  0xd4   :  { %6632 = vmatpush3.bf16.msra.mxu0 %v7281_v23  ;;  %v7322_v23 = vld [vmem:[%s9289_s1 + $0x708] sm:$0xff]  }
  0xd5   :  { %6654 = vmatpush3.bf16.msra.mxu1 %v7282_v24  ;;  %6633 = vmatprep.subr.bf16.mxu0 %v7283_v25  ;;  %v7323_v24 = vld [vmem:[%s9289_s1 + $0x788] sm:$0xff]   ;;  %v23_v25 = vld [vmem:[%s9288_s0 + $0x38] sm:$0xff] }
  0xd6   :  { %6655 = vmatprep.subr.bf16.mxu1 %v7284_v26  ;;  %v7324_v26 = vld [vmem:[%s9289_s1 + $0x740] sm:$0xff]  }
  0xd8   :  { %6634 = vmatpush3.bf16.msra.mxu0 %v7285_v27  ;;  %v174_v27 = vrot.slane %v23_v25, %v7742_v41 }
  0xd9   :  { %6656 = vmatpush3.bf16.msra.mxu1 %v7286_v28  ;;  %6635 = vmatprep.subr.bf16.mxu0 %v7287_v29  ;;  %v167_v28 = vcombine.high %v23_v25, %v23_v25  ;;  %v7325_v29 = vld [vmem:[%s9289_s1 + $0x7c0] sm:$0xff]   ;;  %v7362_v25 = vld [vmem:[%s9289_s1 + $0x978] sm:$0xff]  }
  0xda   :  { %6657 = vmatprep.subr.bf16.mxu1 %v7288_v30  ;;  %v7326_v30 = vld [vmem:[%s9289_s1 + $0x700] sm:$0xff]  }
  0xdc   :  { %6636 = vmatpush3.bf16.msra.mxu0 %v7289_v31  ;;  %v182_v31 = vcombine.high %v174_v27, %v174_v27 }
  0xdd   :  { %6658 = vmatpush3.bf16.msra.mxu1 %v7290_v32  ;;  %6637 = vmatprep.subr.bf16.mxu0 %v7291_v34  ;;  %v181_v32 = vrot.slane %v167_v28, %v7742_v41  ;;  %v7363_v28 = vld [vmem:[%s9289_s1 + $0x9f8] sm:$0xff]  }
  0xde   :  { %6659 = vmatprep.subr.bf16.mxu1 %v7292_v37  ;;  %v413_v34 = vpack.c.bf16 %v182_v31, %v182_v31  ;;  %v7330_v37 = vld [vmem:[%s9289_s1 + $0x8f8] sm:$0xff]  }
  0xdf   :  { %v183_v35 = vcombine.high %v181_v32, %v181_v32 }
  0xe0   :  { %6638 = vmatpush3.bf16.msra.mxu0 %v7293_v40  ;;  %v412_v40 = vpack.c.bf16 %v174_v27, %v174_v27 }
  0xe1   :  { %6660 = vmatpush3.bf16.msra.mxu1 %v7294_v42  ;;  %6667 = vmatprep.subr.bf16.mxu0 %v7296_v45  ;;  %v415_v38 = vpack.c.bf16 %v183_v35, %v183_v35  ;;  %v414_v42 = vpack.c.bf16 %v181_v32, %v181_v32  ;;  %v7334_v45 = vld [vmem:[%s9289_s1 + $0x8f0] sm:$0xff]  }
  0xe2   :  { %6689 = vmatprep.subr.bf16.mxu1 %v7297_v46  ;;  %v7335_v46 = vld [vmem:[%s9289_s1 + $0x830] sm:$0xff]  }
  0xe3   :  { %v6375_v55 = vpop.f32.mrf.mxu0  ;;  %5064 = vmatmul.mubr.bf16.vlgmr.msra.gmra.mxu0 %v408_v49  ;;  %v7336_v49 = vld [vmem:[%s9289_s1 + $0x8b0] sm:$0xff]  }
  0xe4   :  { %v6397_v56 = vpop.f32.mrf.mxu1  ;;  %5104 = vmatmul.mubr.bf16.vlgmr.msra.gmra.mxu1 %v410_v50  ;;  %6668 = vmatpush3.bf16.msra.mxu0 %v7298_v48  ;;  %v7337_v50 = vld [vmem:[%s9289_s1 + $0x868] sm:$0xff]   ;;  %v7367_v35 = vld [vmem:[%s9289_s1 + $0x9f0] sm:$0xff]  }
  0xe5   :  { %6690 = vmatpush3.bf16.msra.mxu1 %v7299_v51  ;;  %v6376_v60 = vpop.f32.mrf.mxu0  ;;  %6669 = vmatprep.subr.bf16.mxu0 %v7300_v52 }
  0xe6   :  { %v6398_v61 = vpop.f32.mrf.mxu1  ;;  %6691 = vmatprep.subr.bf16.mxu1 %v7301_v53  ;;  %v6377_v63 = vadd.f32 %v6376_v60, %v6375_v55  ;;  %5143 = vmatprep.mubr.bf16.mxu0 %v413_v34  ;;  %v7338_v53 = vld [vmem:[%s9289_s1 + $0x8e8] sm:$0xff]   ;;  %v7366_v34 = vld [vmem:[%s9289_s1 + $0x970] sm:$0xff]  }
  0xe7   :  { %v6399_v0 = vadd.f32 %v6398_v61, %v6397_v56  ;;  %v6378_v2 = vpop.f32.mrf.mxu0  ;;  %5183 = vmatprep.mubr.bf16.mxu1 %v415_v38  ;;  %v7339_v56 = vld [vmem:[%s9289_s1 + $0x828] sm:$0xff]   ;;  %v7341_v61 = vld [vmem:[%s9289_s1 + $0x860] sm:$0xff]  }
  0xe8   :  { %v6400_v3 = vpop.f32.mrf.mxu1  ;;  %v4586_v5 = vadd.f32 %v6377_v63, %v5846_v57  ;;  %6670 = vmatpush3.bf16.msra.mxu0 %v7302_v54  ;;  %v7343_v2 = vld [vmem:[%s9289_s1 + $0x820] sm:$0xff]  }
  0xe9   :  { %6692 = vmatpush3.bf16.msra.mxu1 %v7303_v58  ;;  %v6379_v7 = vpop.f32.mrf.mxu0  ;;  %6671 = vmatprep.subr.bf16.mxu0 %v7304_v59  ;;  %v7340_v59 = vld [vmem:[%s9289_s1 + $0x8a8] sm:$0xff]   ;;  %v7344_v3 = vld [vmem:[%s9289_s1 + $0x8a0] sm:$0xff]  }
  0xea   :  { %v6401_v8 = vpop.f32.mrf.mxu1  ;;  %6693 = vmatprep.subr.bf16.mxu1 %v7305_v62  ;;  %v8391_v10 = vadd.f32 %v6399_v0, %v4586_v5  ;;  %v7342_v0 = vld [vmem:[%s9289_s1 + $0x8e0] sm:$0xff]   ;;  %v7346_v5 = vld [vmem:[%s9289_s1 + $0x8d8] sm:$0xff]  }
  0xeb   :  { %v7348_v7 = vld [vmem:[%s9289_s1 + $0x898] sm:$0xff]   ;;  %v7349_v8 = vld [vmem:[%s9289_s1 + $0x850] sm:$0xff]  }
  0xec   :  { %6672 = vmatpush3.bf16.msra.mxu0 %v7306_v1 }
  0xed   :  { %6694 = vmatpush3.bf16.msra.mxu1 %v7307_v4  ;;  %6673 = vmatprep.subr.bf16.mxu0 %v7308_v6  ;;  %v7345_v4 = vld [vmem:[%s9289_s1 + $0x858] sm:$0xff]  }
  0xee   :  { %6695 = vmatprep.subr.bf16.mxu1 %v7309_v9  ;;  %v7347_v6 = vld [vmem:[%s9289_s1 + $0x818] sm:$0xff]   ;;  %v7350_v9 = vld [vmem:[%s9289_s1 + $0x8d0] sm:$0xff]  }
  0xf0   :  { %6674 = vmatpush3.bf16.msra.mxu0 %v7310_v11  ;;  %v7352_v11 = vld [vmem:[%s9289_s1 + $0x890] sm:$0xff]  }
  0xf1   :  { %6696 = vmatpush3.bf16.msra.mxu1 %v7311_v12  ;;  %6675 = vmatprep.subr.bf16.mxu0 %v7312_v13  ;;  %v7353_v12 = vld [vmem:[%s9289_s1 + $0x848] sm:$0xff]  }
  0xf2   :  { %6697 = vmatprep.subr.bf16.mxu1 %v7313_v14  ;;  %v7354_v13 = vld [vmem:[%s9289_s1 + $0x8c8] sm:$0xff]  }
  0xf3   :  { %v7355_v14 = vld [vmem:[%s9289_s1 + $0x808] sm:$0xff]  }
  0xf4   :  { %6676 = vmatpush3.bf16.msra.mxu0 %v7314_v15  ;;  %v7356_v15 = vld [vmem:[%s9289_s1 + $0x888] sm:$0xff]  }
  0xf5   :  { %6698 = vmatpush3.bf16.msra.mxu1 %v7315_v16  ;;  %6677 = vmatprep.subr.bf16.mxu0 %v7316_v17  ;;  %v7357_v16 = vld [vmem:[%s9289_s1 + $0x840] sm:$0xff]  }
  0xf6   :  { %6699 = vmatprep.subr.bf16.mxu1 %v7317_v18  ;;  %v24_v17 = vld [vmem:[%s9288_s0 + $0x40] sm:$0xff] }
  0xf7   :  { %v7358_v18 = vld [vmem:[%s9289_s1 + $0x8c0] sm:$0xff]  }
  0xf8   :  { %6678 = vmatpush3.bf16.msra.mxu0 %v7318_v19  ;;  %v191_v19 = vrot.slane %v24_v17, %v7742_v41 }
  0xf9   :  { %6700 = vmatpush3.bf16.msra.mxu1 %v7319_v20  ;;  %6679 = vmatprep.subr.bf16.mxu0 %v7320_v21  ;;  %v184_v20 = vcombine.high %v24_v17, %v24_v17  ;;  %v7359_v21 = vld [vmem:[%s9289_s1 + $0x800] sm:$0xff]  }
  0xfa   :  { %6701 = vmatprep.subr.bf16.mxu1 %v7321_v22  ;;  %v7360_v22 = vld [vmem:[%s9289_s1 + $0x880] sm:$0xff]   ;;  %v416_v31 = vpack.c.bf16 %v191_v19, %v191_v19 }
  0xfc   :  { %6680 = vmatpush3.bf16.msra.mxu0 %v7322_v23  ;;  %v199_v23 = vcombine.high %v191_v19, %v191_v19  ;;  %v7396_v19 = vld [vmem:[%s9289_s1 + $0xaf8] sm:$0xff]  }
  0xfd   :  { %6702 = vmatpush3.bf16.msra.mxu1 %v7323_v24  ;;  %6681 = vmatprep.subr.bf16.mxu0 %v7324_v26  ;;  %v198_v24 = vrot.slane %v184_v20, %v7742_v41  ;;  %v7397_v20 = vld [vmem:[%s9289_s1 + $0xa38] sm:$0xff]  }
  0xfe   :  { %6703 = vmatprep.subr.bf16.mxu1 %v7325_v29  ;;  %v417_v26 = vpack.c.bf16 %v199_v23, %v199_v23  ;;  %v7364_v29 = vld [vmem:[%s9289_s1 + $0x938] sm:$0xff]  }
  0xff   :  { %v200_v27 = vcombine.high %v198_v24, %v198_v24  ;;  %v418_v32 = vpack.c.bf16 %v198_v24, %v198_v24  ;;  %v7398_v24 = vld [vmem:[%s9289_s1 + $0xab8] sm:$0xff]  }
 0x100   :  { %6682 = vmatpush3.bf16.msra.mxu0 %v7326_v30 }
 0x101   :  { %6704 = vmatpush3.bf16.msra.mxu1 %v7327_v33  ;;  %6711 = vmatprep.subr.bf16.mxu0 %v7329_v36  ;;  %v419_v30 = vpack.c.bf16 %v200_v27, %v200_v27  ;;  %v7365_v33 = vld [vmem:[%s9289_s1 + $0x9b8] sm:$0xff]   ;;  %v7368_v36 = vld [vmem:[%s9289_s1 + $0x930] sm:$0xff]  }
 0x102   :  { %6733 = vmatprep.subr.bf16.mxu1 %v7330_v37  ;;  %v7401_v27 = vld [vmem:[%s9289_s1 + $0xa30] sm:$0xff]  }
 0x103   :  { %v6419_v47 = vpop.f32.mrf.mxu0  ;;  %5144 = vmatmul.mubr.bf16.vlgmr.msra.gmra.mxu0 %v412_v40  ;;  %v7370_v40 = vld [vmem:[%s9289_s1 + $0x968] sm:$0xff]  }
 0x104   :  { %v6441_v48 = vpop.f32.mrf.mxu1  ;;  %5184 = vmatmul.mubr.bf16.vlgmr.msra.gmra.mxu1 %v414_v42  ;;  %6712 = vmatpush3.bf16.msra.mxu0 %v7331_v39  ;;  %v7369_v39 = vld [vmem:[%s9289_s1 + $0x9b0] sm:$0xff]  }
 0x105   :  { %6734 = vmatpush3.bf16.msra.mxu1 %v7332_v43  ;;  %v6420_v51 = vpop.f32.mrf.mxu0  ;;  %6713 = vmatprep.subr.bf16.mxu0 %v7333_v44  ;;  %v7371_v44 = vld [vmem:[%s9289_s1 + $0x9e8] sm:$0xff]  }
 0x106   :  { %v6442_v52 = vpop.f32.mrf.mxu1  ;;  %6735 = vmatprep.subr.bf16.mxu1 %v7334_v45  ;;  %v6421_v54 = vadd.f32 %v6420_v51, %v6419_v47  ;;  %5223 = vmatprep.mubr.bf16.mxu0 %v417_v26  ;;  %v7372_v47 = vld [vmem:[%s9289_s1 + $0x928] sm:$0xff]   ;;  %v7400_v26 = vld [vmem:[%s9289_s1 + $0xaf0] sm:$0xff]  }
 0x107   :  { %v6443_v55 = vadd.f32 %v6442_v52, %v6441_v48  ;;  %v6422_v57 = vpop.f32.mrf.mxu0  ;;  %5263 = vmatprep.mubr.bf16.mxu1 %v419_v30  ;;  %v7374_v52 = vld [vmem:[%s9289_s1 + $0x960] sm:$0xff]   ;;  %v7402_v30 = vld [vmem:[%s9289_s1 + $0xab0] sm:$0xff]  }
 0x108   :  { %v6444_v58 = vpop.f32.mrf.mxu1  ;;  %v4666_v60 = vadd.f32 %v6421_v54, %v8391_v10  ;;  %6714 = vmatpush3.bf16.msra.mxu0 %v7335_v46  ;;  %v7351_v10 = vld [vmem:[%s9289_s1 + $0x810] sm:$0xff]   ;;  %v7376_v57 = vld [vmem:[%s9289_s1 + $0x920] sm:$0xff]  }
 0x109   :  { %6736 = vmatpush3.bf16.msra.mxu1 %v7336_v49  ;;  %v6423_v62 = vpop.f32.mrf.mxu0  ;;  %6715 = vmatprep.subr.bf16.mxu0 %v7337_v50  ;;  %v7373_v50 = vld [vmem:[%s9289_s1 + $0x9a8] sm:$0xff]   ;;  %v7377_v58 = vld [vmem:[%s9289_s1 + $0x9a0] sm:$0xff]  }
 0x10a   :  { %v6445_v63 = vpop.f32.mrf.mxu1  ;;  %6737 = vmatprep.subr.bf16.mxu1 %v7338_v53  ;;  %v8495_v1 = vadd.f32 %v6443_v55, %v4666_v60  ;;  %v7375_v55 = vld [vmem:[%s9289_s1 + $0x9e0] sm:$0xff]   ;;  %v7379_v60 = vld [vmem:[%s9289_s1 + $0x9d8] sm:$0xff]  }
 0x10b   :  { %v7381_v62 = vld [vmem:[%s9289_s1 + $0x998] sm:$0xff]   ;;  %v7382_v63 = vld [vmem:[%s9289_s1 + $0x950] sm:$0xff]  }
 0x10c   :  { %6716 = vmatpush3.bf16.msra.mxu0 %v7339_v56 }
 0x10d   :  { %6738 = vmatpush3.bf16.msra.mxu1 %v7340_v59  ;;  %6717 = vmatprep.subr.bf16.mxu0 %v7341_v61  ;;  %v7378_v59 = vld [vmem:[%s9289_s1 + $0x958] sm:$0xff]  }
 0x10e   :  { %6739 = vmatprep.subr.bf16.mxu1 %v7342_v0  ;;  %v7380_v61 = vld [vmem:[%s9289_s1 + $0x918] sm:$0xff]   ;;  %v7383_v0 = vld [vmem:[%s9289_s1 + $0x9d0] sm:$0xff]  }
 0x110   :  { %6718 = vmatpush3.bf16.msra.mxu0 %v7343_v2  ;;  %v7385_v2 = vld [vmem:[%s9289_s1 + $0x990] sm:$0xff]  }
 0x111   :  { %6740 = vmatpush3.bf16.msra.mxu1 %v7344_v3  ;;  %6719 = vmatprep.subr.bf16.mxu0 %v7345_v4  ;;  %v7386_v3 = vld [vmem:[%s9289_s1 + $0x948] sm:$0xff]  }
 0x112   :  { %6741 = vmatprep.subr.bf16.mxu1 %v7346_v5  ;;  %v7387_v4 = vld [vmem:[%s9289_s1 + $0x9c8] sm:$0xff]  }
 0x113   :  { %v7388_v5 = vld [vmem:[%s9289_s1 + $0x908] sm:$0xff]  }
 0x114   :  { %6720 = vmatpush3.bf16.msra.mxu0 %v7347_v6  ;;  %v7389_v6 = vld [vmem:[%s9289_s1 + $0x988] sm:$0xff]  }
 0x115   :  { %6742 = vmatpush3.bf16.msra.mxu1 %v7348_v7  ;;  %6721 = vmatprep.subr.bf16.mxu0 %v7349_v8  ;;  %v7390_v7 = vld [vmem:[%s9289_s1 + $0x940] sm:$0xff]   ;;  %v25_v8 = vld [vmem:[%s9288_s0 + $0x48] sm:$0xff] }
 0x116   :  { %6743 = vmatprep.subr.bf16.mxu1 %v7350_v9  ;;  %v7391_v9 = vld [vmem:[%s9289_s1 + $0x9c0] sm:$0xff]  }
 0x118   :  { %6722 = vmatpush3.bf16.msra.mxu0 %v7351_v10  ;;  %v208_v10 = vrot.slane %v25_v8, %v7742_v41 }
 0x119   :  { %6744 = vmatpush3.bf16.msra.mxu1 %v7352_v11  ;;  %6723 = vmatprep.subr.bf16.mxu0 %v7353_v12  ;;  %v201_v11 = vcombine.high %v25_v8, %v25_v8  ;;  %v7392_v12 = vld [vmem:[%s9289_s1 + $0x900] sm:$0xff]  }
 0x11a   :  { %6745 = vmatprep.subr.bf16.mxu1 %v7354_v13  ;;  %v7393_v13 = vld [vmem:[%s9289_s1 + $0x980] sm:$0xff]  }
 0x11c   :  { %6724 = vmatpush3.bf16.msra.mxu0 %v7355_v14  ;;  %v216_v14 = vcombine.high %v208_v10, %v208_v10 }
 0x11d   :  { %6746 = vmatpush3.bf16.msra.mxu1 %v7356_v15  ;;  %6725 = vmatprep.subr.bf16.mxu0 %v7357_v16  ;;  %v215_v15 = vrot.slane %v201_v11, %v7742_v41  ;;  %v7395_v16 = vld [vmem:[%s9289_s1 + $0xa78] sm:$0xff]  }
 0x11e   :  { %6747 = vmatprep.subr.bf16.mxu1 %v7358_v18  ;;  %v421_v17 = vpack.c.bf16 %v216_v14, %v216_v14  ;;  %v7430_v11 = vld [vmem:[%s9289_s1 + $0xb38] sm:$0xff]  }
 0x11f   :  { %v217_v18 = vcombine.high %v215_v15, %v215_v15  ;;  %v422_v23 = vpack.c.bf16 %v215_v15, %v215_v15  ;;  %v7431_v15 = vld [vmem:[%s9289_s1 + $0xbb8] sm:$0xff]  }
 0x120   :  { %6726 = vmatpush3.bf16.msra.mxu0 %v7359_v21 }
 0x121   :  { %6748 = vmatpush3.bf16.msra.mxu1 %v7360_v22  ;;  %6755 = vmatprep.subr.bf16.mxu0 %v7362_v25  ;;  %v423_v21 = vpack.c.bf16 %v217_v18, %v217_v18  ;;  %v420_v22 = vpack.c.bf16 %v208_v10, %v208_v10  ;;  %v7399_v25 = vld [vmem:[%s9289_s1 + $0xa70] sm:$0xff]   ;;  %v7429_v10 = vld [vmem:[%s9289_s1 + $0xbf8] sm:$0xff]  }
 0x122   :  { %6777 = vmatprep.subr.bf16.mxu1 %v7363_v28  ;;  %v7434_v18 = vld [vmem:[%s9289_s1 + $0xb30] sm:$0xff]  }
 0x123   :  { %v6463_v37 = vpop.f32.mrf.mxu0  ;;  %5224 = vmatmul.mubr.bf16.vlgmr.msra.gmra.mxu0 %v416_v31  ;;  %v7403_v31 = vld [vmem:[%s9289_s1 + $0xa68] sm:$0xff]  }
 0x124   :  { %v6485_v38 = vpop.f32.mrf.mxu1  ;;  %5264 = vmatmul.mubr.bf16.vlgmr.msra.gmra.mxu1 %v418_v32  ;;  %6756 = vmatpush3.bf16.msra.mxu0 %v7364_v29 }
 0x125   :  { %6778 = vmatpush3.bf16.msra.mxu1 %v7365_v33  ;;  %v6464_v42 = vpop.f32.mrf.mxu0  ;;  %6757 = vmatprep.subr.bf16.mxu0 %v7366_v34  ;;  %v7404_v34 = vld [vmem:[%s9289_s1 + $0xae8] sm:$0xff]  }
 0x126   :  { %v6486_v43 = vpop.f32.mrf.mxu1  ;;  %6779 = vmatprep.subr.bf16.mxu1 %v7367_v35  ;;  %v6465_v45 = vadd.f32 %v6464_v42, %v6463_v37  ;;  %5303 = vmatprep.mubr.bf16.mxu0 %v421_v17  ;;  %v7405_v37 = vld [vmem:[%s9289_s1 + $0xa28] sm:$0xff]   ;;  %v7433_v17 = vld [vmem:[%s9289_s1 + $0xbf0] sm:$0xff]  }
 0x127   :  { %v6487_v46 = vadd.f32 %v6486_v43, %v6485_v38  ;;  %v6466_v48 = vpop.f32.mrf.mxu0  ;;  %5343 = vmatprep.mubr.bf16.mxu1 %v423_v21  ;;  %v7407_v43 = vld [vmem:[%s9289_s1 + $0xa60] sm:$0xff]   ;;  %v7435_v21 = vld [vmem:[%s9289_s1 + $0xbb0] sm:$0xff]  }
 0x128   :  { %v6488_v49 = vpop.f32.mrf.mxu1  ;;  %v4746_v51 = vadd.f32 %v6465_v45, %v8495_v1  ;;  %6758 = vmatpush3.bf16.msra.mxu0 %v7368_v36  ;;  %v7384_v1 = vld [vmem:[%s9289_s1 + $0x910] sm:$0xff]   ;;  %v7409_v48 = vld [vmem:[%s9289_s1 + $0xa20] sm:$0xff]  }
 0x129   :  { %6780 = vmatpush3.bf16.msra.mxu1 %v7369_v39  ;;  %v6467_v53 = vpop.f32.mrf.mxu0  ;;  %6759 = vmatprep.subr.bf16.mxu0 %v7370_v40  ;;  %v7406_v40 = vld [vmem:[%s9289_s1 + $0xaa8] sm:$0xff]   ;;  %v7410_v49 = vld [vmem:[%s9289_s1 + $0xaa0] sm:$0xff]  }
 0x12a   :  { %v6489_v54 = vpop.f32.mrf.mxu1  ;;  %6781 = vmatprep.subr.bf16.mxu1 %v7371_v44  ;;  %v8599_v56 = vadd.f32 %v6487_v46, %v4746_v51  ;;  %v7408_v46 = vld [vmem:[%s9289_s1 + $0xae0] sm:$0xff]   ;;  %v7412_v51 = vld [vmem:[%s9289_s1 + $0xad8] sm:$0xff]  }
 0x12b   :  { %v7414_v53 = vld [vmem:[%s9289_s1 + $0xa98] sm:$0xff]   ;;  %v7415_v54 = vld [vmem:[%s9289_s1 + $0xa50] sm:$0xff]  }
 0x12c   :  { %6760 = vmatpush3.bf16.msra.mxu0 %v7372_v47 }
 0x12d   :  { %6782 = vmatpush3.bf16.msra.mxu1 %v7373_v50  ;;  %6761 = vmatprep.subr.bf16.mxu0 %v7374_v52  ;;  %v7411_v50 = vld [vmem:[%s9289_s1 + $0xa58] sm:$0xff]  }
 0x12e   :  { %6783 = vmatprep.subr.bf16.mxu1 %v7375_v55  ;;  %v7413_v52 = vld [vmem:[%s9289_s1 + $0xa18] sm:$0xff]   ;;  %v7416_v55 = vld [vmem:[%s9289_s1 + $0xad0] sm:$0xff]  }
 0x130   :  { %6762 = vmatpush3.bf16.msra.mxu0 %v7376_v57  ;;  %v7418_v57 = vld [vmem:[%s9289_s1 + $0xa90] sm:$0xff]  }
 0x131   :  { %6784 = vmatpush3.bf16.msra.mxu1 %v7377_v58  ;;  %6763 = vmatprep.subr.bf16.mxu0 %v7378_v59  ;;  %v7419_v58 = vld [vmem:[%s9289_s1 + $0xa48] sm:$0xff]  }
 0x132   :  { %6785 = vmatprep.subr.bf16.mxu1 %v7379_v60  ;;  %v7420_v59 = vld [vmem:[%s9289_s1 + $0xac8] sm:$0xff]  }
 0x133   :  { %v7421_v60 = vld [vmem:[%s9289_s1 + $0xa08] sm:$0xff]  }
 0x134   :  { %6764 = vmatpush3.bf16.msra.mxu0 %v7380_v61  ;;  %v7422_v61 = vld [vmem:[%s9289_s1 + $0xa88] sm:$0xff]  }
 0x135   :  { %6786 = vmatpush3.bf16.msra.mxu1 %v7381_v62  ;;  %6765 = vmatprep.subr.bf16.mxu0 %v7382_v63  ;;  %v7423_v62 = vld [vmem:[%s9289_s1 + $0xa40] sm:$0xff]   ;;  %v26_v63 = vld [vmem:[%s9288_s0 + $0x50] sm:$0xff] }
 0x136   :  { %6787 = vmatprep.subr.bf16.mxu1 %v7383_v0  ;;  %v7424_v0 = vld [vmem:[%s9289_s1 + $0xac0] sm:$0xff]  }
 0x138   :  { %6766 = vmatpush3.bf16.msra.mxu0 %v7384_v1  ;;  %v225_v1 = vrot.slane %v26_v63, %v7742_v41 }
 0x139   :  { %6788 = vmatpush3.bf16.msra.mxu1 %v7385_v2  ;;  %6767 = vmatprep.subr.bf16.mxu0 %v7386_v3  ;;  %v218_v2 = vcombine.high %v26_v63, %v26_v63  ;;  %v7425_v3 = vld [vmem:[%s9289_s1 + $0xa00] sm:$0xff]   ;;  %v7462_v63 = vld [vmem:[%s9289_s1 + $0xcf8] sm:$0xff]  }
 0x13a   :  { %6789 = vmatprep.subr.bf16.mxu1 %v7387_v4  ;;  %v7426_v4 = vld [vmem:[%s9289_s1 + $0xa80] sm:$0xff]  }
 0x13c   :  { %6768 = vmatpush3.bf16.msra.mxu0 %v7388_v5  ;;  %v233_v5 = vcombine.high %v225_v1, %v225_v1 }
 0x13d   :  { %6790 = vmatpush3.bf16.msra.mxu1 %v7389_v6  ;;  %6769 = vmatprep.subr.bf16.mxu0 %v7390_v7  ;;  %v232_v6 = vrot.slane %v218_v2, %v7742_v41  ;;  %v7428_v7 = vld [vmem:[%s9289_s1 + $0xb78] sm:$0xff]  }
 0x13e   :  { %6791 = vmatprep.subr.bf16.mxu1 %v7391_v9  ;;  %v425_v8 = vpack.c.bf16 %v233_v5, %v233_v5  ;;  %v7463_v2 = vld [vmem:[%s9289_s1 + $0xc38] sm:$0xff]  }
 0x13f   :  { %v234_v9 = vcombine.high %v232_v6, %v232_v6  ;;  %v426_v14 = vpack.c.bf16 %v232_v6, %v232_v6  ;;  %v7464_v5 = vld [vmem:[%s9289_s1 + $0xcb8] sm:$0xff]  }
 0x140   :  { %6770 = vmatpush3.bf16.msra.mxu0 %v7392_v12 }
 0x141   :  { %6792 = vmatpush3.bf16.msra.mxu1 %v7393_v13  ;;  %6799 = vmatprep.subr.bf16.mxu0 %v7395_v16  ;;  %v427_v12 = vpack.c.bf16 %v234_v9, %v234_v9  ;;  %v424_v13 = vpack.c.bf16 %v225_v1, %v225_v1  ;;  %v7432_v16 = vld [vmem:[%s9289_s1 + $0xb70] sm:$0xff]  }
 0x142   :  { %6821 = vmatprep.subr.bf16.mxu1 %v7396_v19  ;;  %v7467_v9 = vld [vmem:[%s9289_s1 + $0xc30] sm:$0xff]  }
 0x143   :  { %v6507_v28 = vpop.f32.mrf.mxu0  ;;  %5304 = vmatmul.mubr.bf16.vlgmr.msra.gmra.mxu0 %v420_v22  ;;  %v7436_v22 = vld [vmem:[%s9289_s1 + $0xb68] sm:$0xff]  }
 0x144   :  { %v6529_v29 = vpop.f32.mrf.mxu1  ;;  %5344 = vmatmul.mubr.bf16.vlgmr.msra.gmra.mxu1 %v422_v23  ;;  %6800 = vmatpush3.bf16.msra.mxu0 %v7397_v20 }
 0x145   :  { %6822 = vmatpush3.bf16.msra.mxu1 %v7398_v24  ;;  %v6508_v32 = vpop.f32.mrf.mxu0  ;;  %6801 = vmatprep.subr.bf16.mxu0 %v7399_v25  ;;  %v7437_v25 = vld [vmem:[%s9289_s1 + $0xbe8] sm:$0xff]  }
 0x146   :  { %v6530_v33 = vpop.f32.mrf.mxu1  ;;  %6823 = vmatprep.subr.bf16.mxu1 %v7400_v26  ;;  %v6509_v35 = vadd.f32 %v6508_v32, %v6507_v28  ;;  %5383 = vmatprep.mubr.bf16.mxu0 %v425_v8  ;;  %v7438_v28 = vld [vmem:[%s9289_s1 + $0xb28] sm:$0xff]   ;;  %v7466_v8 = vld [vmem:[%s9289_s1 + $0xcf0] sm:$0xff]  }
 0x147   :  { %v6531_v36 = vadd.f32 %v6530_v33, %v6529_v29  ;;  %v6510_v38 = vpop.f32.mrf.mxu0  ;;  %5423 = vmatprep.mubr.bf16.mxu1 %v427_v12  ;;  %v7440_v33 = vld [vmem:[%s9289_s1 + $0xb60] sm:$0xff]   ;;  %v7468_v12 = vld [vmem:[%s9289_s1 + $0xcb0] sm:$0xff]  }
 0x148   :  { %v6532_v39 = vpop.f32.mrf.mxu1  ;;  %v4826_v42 = vadd.f32 %v6509_v35, %v8599_v56  ;;  %6802 = vmatpush3.bf16.msra.mxu0 %v7401_v27  ;;  %v7417_v56 = vld [vmem:[%s9289_s1 + $0xa10] sm:$0xff]   ;;  %v7442_v38 = vld [vmem:[%s9289_s1 + $0xb20] sm:$0xff]  }
 0x149   :  { %6824 = vmatpush3.bf16.msra.mxu1 %v7402_v30  ;;  %v6511_v44 = vpop.f32.mrf.mxu0  ;;  %6803 = vmatprep.subr.bf16.mxu0 %v7403_v31  ;;  %v7439_v31 = vld [vmem:[%s9289_s1 + $0xba8] sm:$0xff]   ;;  %v7443_v39 = vld [vmem:[%s9289_s1 + $0xba0] sm:$0xff]  }
 0x14a   :  { %v6533_v45 = vpop.f32.mrf.mxu1  ;;  %6825 = vmatprep.subr.bf16.mxu1 %v7404_v34  ;;  %v8703_v47 = vadd.f32 %v6531_v36, %v4826_v42  ;;  %v7441_v36 = vld [vmem:[%s9289_s1 + $0xbe0] sm:$0xff]   ;;  %v7445_v42 = vld [vmem:[%s9289_s1 + $0xbd8] sm:$0xff]  }
 0x14b   :  { %v7447_v44 = vld [vmem:[%s9289_s1 + $0xb98] sm:$0xff]   ;;  %v7448_v45 = vld [vmem:[%s9289_s1 + $0xb50] sm:$0xff]  }
 0x14c   :  { %6804 = vmatpush3.bf16.msra.mxu0 %v7405_v37 }
 0x14d   :  { %6826 = vmatpush3.bf16.msra.mxu1 %v7406_v40  ;;  %6805 = vmatprep.subr.bf16.mxu0 %v7407_v43  ;;  %v7444_v40 = vld [vmem:[%s9289_s1 + $0xb58] sm:$0xff]  }
 0x14e   :  { %6827 = vmatprep.subr.bf16.mxu1 %v7408_v46  ;;  %v7446_v43 = vld [vmem:[%s9289_s1 + $0xb18] sm:$0xff]   ;;  %v7449_v46 = vld [vmem:[%s9289_s1 + $0xbd0] sm:$0xff]  }
 0x150   :  { %6806 = vmatpush3.bf16.msra.mxu0 %v7409_v48  ;;  %v7451_v48 = vld [vmem:[%s9289_s1 + $0xb90] sm:$0xff]  }
 0x151   :  { %6828 = vmatpush3.bf16.msra.mxu1 %v7410_v49  ;;  %6807 = vmatprep.subr.bf16.mxu0 %v7411_v50  ;;  %v7452_v49 = vld [vmem:[%s9289_s1 + $0xb48] sm:$0xff]  }
 0x152   :  { %6829 = vmatprep.subr.bf16.mxu1 %v7412_v51  ;;  %v7453_v50 = vld [vmem:[%s9289_s1 + $0xbc8] sm:$0xff]  }
 0x153   :  { %v7454_v51 = vld [vmem:[%s9289_s1 + $0xb08] sm:$0xff]  }
 0x154   :  { %6808 = vmatpush3.bf16.msra.mxu0 %v7413_v52  ;;  %v7455_v52 = vld [vmem:[%s9289_s1 + $0xb88] sm:$0xff]  }
 0x155   :  { %6830 = vmatpush3.bf16.msra.mxu1 %v7414_v53  ;;  %6809 = vmatprep.subr.bf16.mxu0 %v7415_v54  ;;  %v7456_v53 = vld [vmem:[%s9289_s1 + $0xb40] sm:$0xff]  }
 0x156   :  { %6831 = vmatprep.subr.bf16.mxu1 %v7416_v55  ;;  %v7457_v54 = vld [vmem:[%s9289_s1 + $0xbc0] sm:$0xff]   ;;  %v27_v55 = vld [vmem:[%s9288_s0 + $0x58] sm:$0xff] }
 0x158   :  { %6810 = vmatpush3.bf16.msra.mxu0 %v7417_v56  ;;  %v7458_v56 = vld [vmem:[%s9289_s1 + $0xb00] sm:$0xff]  }
 0x159   :  { %6832 = vmatpush3.bf16.msra.mxu1 %v7418_v57  ;;  %6811 = vmatprep.subr.bf16.mxu0 %v7419_v58  ;;  %v242_v57 = vrot.slane %v27_v55, %v7742_v41  ;;  %v235_v58 = vcombine.high %v27_v55, %v27_v55 }
 0x15a   :  { %6833 = vmatprep.subr.bf16.mxu1 %v7420_v59  ;;  %v7459_v59 = vld [vmem:[%s9289_s1 + $0xb80] sm:$0xff]  }
 0x15c   :  { %6812 = vmatpush3.bf16.msra.mxu0 %v7421_v60  ;;  %v250_v60 = vcombine.high %v242_v57, %v242_v57 }
 0x15d   :  { %6834 = vmatpush3.bf16.msra.mxu1 %v7422_v61  ;;  %6813 = vmatprep.subr.bf16.mxu0 %v7423_v62  ;;  %v249_v61 = vrot.slane %v235_v58, %v7742_v41  ;;  %v7461_v62 = vld [vmem:[%s9289_s1 + $0xc78] sm:$0xff]  }
 0x15e   :  { %6835 = vmatprep.subr.bf16.mxu1 %v7424_v0  ;;  %v429_v0 = vpack.c.bf16 %v250_v60, %v250_v60  ;;  %v7497_v60 = vld [vmem:[%s9289_s1 + $0xdb8] sm:$0xff]  }
 0x15f   :  { %v251_v1 = vcombine.high %v249_v61, %v249_v61 }
 0x160   :  { %6814 = vmatpush3.bf16.msra.mxu0 %v7425_v3  ;;  %v428_v3 = vpack.c.bf16 %v242_v57, %v242_v57  ;;  %v7496_v57 = vld [vmem:[%s9289_s1 + $0xd38] sm:$0xff]  }
 0x161   :  { %6836 = vmatpush3.bf16.msra.mxu1 %v7426_v4  ;;  %6843 = vmatprep.subr.bf16.mxu0 %v7428_v7  ;;  %v430_v4 = vpack.c.bf16 %v249_v61, %v249_v61  ;;  %v431_v6 = vpack.c.bf16 %v251_v1, %v251_v1  ;;  %v7465_v7 = vld [vmem:[%s9289_s1 + $0xc70] sm:$0xff]  }
 0x162   :  { %6865 = vmatprep.subr.bf16.mxu1 %v7429_v10 }
 0x163   :  { %v6551_v19 = vpop.f32.mrf.mxu0  ;;  %5384 = vmatmul.mubr.bf16.vlgmr.msra.gmra.mxu0 %v424_v13  ;;  %v7469_v13 = vld [vmem:[%s9289_s1 + $0xc68] sm:$0xff]  }
 0x164   :  { %v6573_v20 = vpop.f32.mrf.mxu1  ;;  %5424 = vmatmul.mubr.bf16.vlgmr.msra.gmra.mxu1 %v426_v14  ;;  %6844 = vmatpush3.bf16.msra.mxu0 %v7430_v11 }
 0x165   :  { %6866 = vmatpush3.bf16.msra.mxu1 %v7431_v15  ;;  %v6552_v23 = vpop.f32.mrf.mxu0  ;;  %6845 = vmatprep.subr.bf16.mxu0 %v7432_v16  ;;  %v7470_v16 = vld [vmem:[%s9289_s1 + $0xce8] sm:$0xff]  }
 0x166   :  { %v6574_v24 = vpop.f32.mrf.mxu1  ;;  %6867 = vmatprep.subr.bf16.mxu1 %v7433_v17  ;;  %v6553_v26 = vadd.f32 %v6552_v23, %v6551_v19  ;;  %5463 = vmatprep.mubr.bf16.mxu0 %v429_v0  ;;  %v7471_v19 = vld [vmem:[%s9289_s1 + $0xc28] sm:$0xff]   ;;  %v7500_v0 = vld [vmem:[%s9289_s1 + $0xd30] sm:$0xff]  }
 0x167   :  { %v6575_v27 = vadd.f32 %v6574_v24, %v6573_v20  ;;  %v6554_v29 = vpop.f32.mrf.mxu0  ;;  %5503 = vmatprep.mubr.bf16.mxu1 %v431_v6  ;;  %v7473_v24 = vld [vmem:[%s9289_s1 + $0xc60] sm:$0xff]  }
 0x168   :  { %v6576_v30 = vpop.f32.mrf.mxu1  ;;  %v4906_v32 = vadd.f32 %v6553_v26, %v8703_v47  ;;  %6846 = vmatpush3.bf16.msra.mxu0 %v7434_v18  ;;  %v7450_v47 = vld [vmem:[%s9289_s1 + $0xb10] sm:$0xff]   ;;  %v7475_v29 = vld [vmem:[%s9289_s1 + $0xc20] sm:$0xff]  }
 0x169   :  { %6868 = vmatpush3.bf16.msra.mxu1 %v7435_v21  ;;  %v6555_v34 = vpop.f32.mrf.mxu0  ;;  %6847 = vmatprep.subr.bf16.mxu0 %v7436_v22  ;;  %v7472_v22 = vld [vmem:[%s9289_s1 + $0xca8] sm:$0xff]   ;;  %v7476_v30 = vld [vmem:[%s9289_s1 + $0xca0] sm:$0xff]  }
 0x16a   :  { %v6577_v35 = vpop.f32.mrf.mxu1  ;;  %6869 = vmatprep.subr.bf16.mxu1 %v7437_v25  ;;  %v8807_v37 = vadd.f32 %v6575_v27, %v4906_v32  ;;  %v7474_v27 = vld [vmem:[%s9289_s1 + $0xce0] sm:$0xff]   ;;  %v7478_v32 = vld [vmem:[%s9289_s1 + $0xcd8] sm:$0xff]  }
 0x16b   :  { %v7480_v34 = vld [vmem:[%s9289_s1 + $0xc98] sm:$0xff]   ;;  %v7481_v35 = vld [vmem:[%s9289_s1 + $0xc50] sm:$0xff]  }
 0x16c   :  { %6848 = vmatpush3.bf16.msra.mxu0 %v7438_v28 }
 0x16d   :  { %6870 = vmatpush3.bf16.msra.mxu1 %v7439_v31  ;;  %6849 = vmatprep.subr.bf16.mxu0 %v7440_v33  ;;  %v7477_v31 = vld [vmem:[%s9289_s1 + $0xc58] sm:$0xff]  }
 0x16e   :  { %6871 = vmatprep.subr.bf16.mxu1 %v7441_v36  ;;  %v7479_v33 = vld [vmem:[%s9289_s1 + $0xc18] sm:$0xff]   ;;  %v7482_v36 = vld [vmem:[%s9289_s1 + $0xcd0] sm:$0xff]  }
 0x170   :  { %6850 = vmatpush3.bf16.msra.mxu0 %v7442_v38  ;;  %v7484_v38 = vld [vmem:[%s9289_s1 + $0xc90] sm:$0xff]  }
 0x171   :  { %6872 = vmatpush3.bf16.msra.mxu1 %v7443_v39  ;;  %6851 = vmatprep.subr.bf16.mxu0 %v7444_v40  ;;  %v7485_v39 = vld [vmem:[%s9289_s1 + $0xc48] sm:$0xff]  }
 0x172   :  { %6873 = vmatprep.subr.bf16.mxu1 %v7445_v42  ;;  %v7486_v40 = vld [vmem:[%s9289_s1 + $0xcc8] sm:$0xff]  }
 0x173   :  { %v7487_v42 = vld [vmem:[%s9289_s1 + $0xc08] sm:$0xff]  }
 0x174   :  { %6852 = vmatpush3.bf16.msra.mxu0 %v7446_v43  ;;  %v7488_v43 = vld [vmem:[%s9289_s1 + $0xc88] sm:$0xff]  }
 0x175   :  { %6874 = vmatpush3.bf16.msra.mxu1 %v7447_v44  ;;  %6853 = vmatprep.subr.bf16.mxu0 %v7448_v45  ;;  %v7489_v44 = vld [vmem:[%s9289_s1 + $0xc40] sm:$0xff]  }
 0x176   :  { %6875 = vmatprep.subr.bf16.mxu1 %v7449_v46  ;;  %v7490_v45 = vld [vmem:[%s9289_s1 + $0xcc0] sm:$0xff]  }
 0x177   :  { %v28_v46 = vld [vmem:[%s9288_s0 + $0x60] sm:$0xff] }
 0x178   :  { %6854 = vmatpush3.bf16.msra.mxu0 %v7450_v47  ;;  %v7491_v47 = vld [vmem:[%s9289_s1 + $0xc00] sm:$0xff]  }
 0x179   :  { %6876 = vmatpush3.bf16.msra.mxu1 %v7451_v48  ;;  %6855 = vmatprep.subr.bf16.mxu0 %v7452_v49  ;;  %v259_v48 = vrot.slane %v28_v46, %v7742_v41  ;;  %v252_v49 = vcombine.high %v28_v46, %v28_v46 }
 0x17a   :  { %6877 = vmatprep.subr.bf16.mxu1 %v7453_v50  ;;  %v7492_v50 = vld [vmem:[%s9289_s1 + $0xc80] sm:$0xff]  }
 0x17b   :  { %v432_v58 = vpack.c.bf16 %v259_v48, %v259_v48 }
 0x17c   :  { %6856 = vmatpush3.bf16.msra.mxu0 %v7454_v51  ;;  %v267_v51 = vcombine.high %v259_v48, %v259_v48  ;;  %v7529_v48 = vld [vmem:[%s9289_s1 + $0xe38] sm:$0xff]  }
 0x17d   :  { %6878 = vmatpush3.bf16.msra.mxu1 %v7455_v52  ;;  %6857 = vmatprep.subr.bf16.mxu0 %v7456_v53  ;;  %v266_v52 = vrot.slane %v252_v49, %v7742_v41  ;;  %v7494_v53 = vld [vmem:[%s9289_s1 + $0xd78] sm:$0xff]  }
 0x17e   :  { %6879 = vmatprep.subr.bf16.mxu1 %v7457_v54  ;;  %v7495_v54 = vld [vmem:[%s9289_s1 + $0xdf8] sm:$0xff]   ;;  %v433_v55 = vpack.c.bf16 %v267_v51, %v267_v51 }
 0x17f   :  { %v7530_v51 = vld [vmem:[%s9289_s1 + $0xeb8] sm:$0xff]  }
 0x180   :  { %6858 = vmatpush3.bf16.msra.mxu0 %v7458_v56  ;;  %v268_v56 = vcombine.high %v266_v52, %v266_v52 }
 0x181   :  { %6880 = vmatpush3.bf16.msra.mxu1 %v7459_v59  ;;  %6887 = vmatprep.subr.bf16.mxu0 %v7461_v62  ;;  %v434_v59 = vpack.c.bf16 %v266_v52, %v266_v52  ;;  %v7498_v62 = vld [vmem:[%s9289_s1 + $0xd70] sm:$0xff]  }
 0x182   :  { %6909 = vmatprep.subr.bf16.mxu1 %v7462_v63  ;;  %v435_v61 = vpack.c.bf16 %v268_v56, %v268_v56  ;;  %v7499_v63 = vld [vmem:[%s9289_s1 + $0xdf0] sm:$0xff]  }
 0x183   :  { %v6595_v10 = vpop.f32.mrf.mxu0  ;;  %5464 = vmatmul.mubr.bf16.vlgmr.msra.gmra.mxu0 %v428_v3  ;;  %v7501_v3 = vld [vmem:[%s9289_s1 + $0xdb0] sm:$0xff]  }
 0x184   :  { %v6617_v11 = vpop.f32.mrf.mxu1  ;;  %5504 = vmatmul.mubr.bf16.vlgmr.msra.gmra.mxu1 %v430_v4  ;;  %6888 = vmatpush3.bf16.msra.mxu0 %v7463_v2  ;;  %v7502_v4 = vld [vmem:[%s9289_s1 + $0xd68] sm:$0xff]  }
 0x185   :  { %6910 = vmatpush3.bf16.msra.mxu1 %v7464_v5  ;;  %v6596_v14 = vpop.f32.mrf.mxu0  ;;  %6889 = vmatprep.subr.bf16.mxu0 %v7465_v7  ;;  %v7503_v7 = vld [vmem:[%s9289_s1 + $0xde8] sm:$0xff]  }
 0x186   :  { %v6618_v15 = vpop.f32.mrf.mxu1  ;;  %6911 = vmatprep.subr.bf16.mxu1 %v7466_v8  ;;  %v6597_v17 = vadd.f32 %v6596_v14, %v6595_v10  ;;  %5543 = vmatprep.mubr.bf16.mxu0 %v433_v55  ;;  %v7504_v10 = vld [vmem:[%s9289_s1 + $0xd28] sm:$0xff]   ;;  %v7533_v55 = vld [vmem:[%s9289_s1 + $0xe30] sm:$0xff]  }
 0x187   :  { %v6619_v18 = vadd.f32 %v6618_v15, %v6617_v11  ;;  %v6598_v20 = vpop.f32.mrf.mxu0  ;;  %5583 = vmatprep.mubr.bf16.mxu1 %v435_v61  ;;  %v7506_v15 = vld [vmem:[%s9289_s1 + $0xd60] sm:$0xff]  }
 0x188   :  { %v6620_v21 = vpop.f32.mrf.mxu1  ;;  %v4986_v23 = vadd.f32 %v6597_v17, %v8807_v37  ;;  %6890 = vmatpush3.bf16.msra.mxu0 %v7467_v9  ;;  %v7483_v37 = vld [vmem:[%s9289_s1 + $0xc10] sm:$0xff]   ;;  %v7508_v20 = vld [vmem:[%s9289_s1 + $0xd20] sm:$0xff]  }
 0x189   :  { %6912 = vmatpush3.bf16.msra.mxu1 %v7468_v12  ;;  %v6599_v25 = vpop.f32.mrf.mxu0  ;;  %6891 = vmatprep.subr.bf16.mxu0 %v7469_v13  ;;  %v7505_v13 = vld [vmem:[%s9289_s1 + $0xda8] sm:$0xff]   ;;  %v7509_v21 = vld [vmem:[%s9289_s1 + $0xda0] sm:$0xff]  }
 0x18a   :  { %v6621_v26 = vpop.f32.mrf.mxu1  ;;  %6913 = vmatprep.subr.bf16.mxu1 %v7470_v16  ;;  %v8911_v28 = vadd.f32 %v6619_v18, %v4986_v23  ;;  %v7507_v18 = vld [vmem:[%s9289_s1 + $0xde0] sm:$0xff]   ;;  %v7511_v23 = vld [vmem:[%s9289_s1 + $0xdd8] sm:$0xff]  }
 0x18b   :  { %v7513_v25 = vld [vmem:[%s9289_s1 + $0xd98] sm:$0xff]   ;;  %v7514_v26 = vld [vmem:[%s9289_s1 + $0xd50] sm:$0xff]  }
 0x18c   :  { %6892 = vmatpush3.bf16.msra.mxu0 %v7471_v19 }
 0x18d   :  { %6914 = vmatpush3.bf16.msra.mxu1 %v7472_v22  ;;  %6893 = vmatprep.subr.bf16.mxu0 %v7473_v24  ;;  %v7510_v22 = vld [vmem:[%s9289_s1 + $0xd58] sm:$0xff]  }
 0x18e   :  { %6915 = vmatprep.subr.bf16.mxu1 %v7474_v27  ;;  %v7512_v24 = vld [vmem:[%s9289_s1 + $0xd18] sm:$0xff]   ;;  %v7515_v27 = vld [vmem:[%s9289_s1 + $0xdd0] sm:$0xff]  }
 0x190   :  { %6894 = vmatpush3.bf16.msra.mxu0 %v7475_v29  ;;  %v7517_v29 = vld [vmem:[%s9289_s1 + $0xd90] sm:$0xff]  }
 0x191   :  { %6916 = vmatpush3.bf16.msra.mxu1 %v7476_v30  ;;  %6895 = vmatprep.subr.bf16.mxu0 %v7477_v31  ;;  %v7518_v30 = vld [vmem:[%s9289_s1 + $0xd48] sm:$0xff]  }
 0x192   :  { %6917 = vmatprep.subr.bf16.mxu1 %v7478_v32  ;;  %v7519_v31 = vld [vmem:[%s9289_s1 + $0xdc8] sm:$0xff]  }
 0x193   :  { %v7520_v32 = vld [vmem:[%s9289_s1 + $0xd08] sm:$0xff]  }
 0x194   :  { %6896 = vmatpush3.bf16.msra.mxu0 %v7479_v33  ;;  %v7521_v33 = vld [vmem:[%s9289_s1 + $0xd88] sm:$0xff]  }
 0x195   :  { %6918 = vmatpush3.bf16.msra.mxu1 %v7480_v34  ;;  %6897 = vmatprep.subr.bf16.mxu0 %v7481_v35  ;;  %v7522_v34 = vld [vmem:[%s9289_s1 + $0xd40] sm:$0xff]  }
 0x196   :  { %6919 = vmatprep.subr.bf16.mxu1 %v7482_v36  ;;  %v7523_v35 = vld [vmem:[%s9289_s1 + $0xdc0] sm:$0xff]   ;;  %v29_v36 = vld [vmem:[%s9288_s0 + $0x68] sm:$0xff] }
 0x198   :  { %6898 = vmatpush3.bf16.msra.mxu0 %v7483_v37  ;;  %v7524_v37 = vld [vmem:[%s9289_s1 + $0xd00] sm:$0xff]  }
 0x199   :  { %6920 = vmatpush3.bf16.msra.mxu1 %v7484_v38  ;;  %6899 = vmatprep.subr.bf16.mxu0 %v7485_v39  ;;  %v276_v38 = vrot.slane %v29_v36, %v7742_v41  ;;  %v269_v39 = vcombine.high %v29_v36, %v29_v36 }
 0x19a   :  { %6921 = vmatprep.subr.bf16.mxu1 %v7486_v40  ;;  %v7525_v40 = vld [vmem:[%s9289_s1 + $0xd80] sm:$0xff]  }
 0x19b   :  { %v436_v49 = vpack.c.bf16 %v276_v38, %v276_v38 }
 0x19c   :  { %6900 = vmatpush3.bf16.msra.mxu0 %v7487_v42  ;;  %v284_v42 = vcombine.high %v276_v38, %v276_v38 }
 0x19d   :  { %6922 = vmatpush3.bf16.msra.mxu1 %v7488_v43  ;;  %6901 = vmatprep.subr.bf16.mxu0 %v7489_v44  ;;  %v283_v43 = vrot.slane %v269_v39, %v7742_v41  ;;  %v7527_v44 = vld [vmem:[%s9289_s1 + $0xe78] sm:$0xff]  }
 0x19e   :  { %6923 = vmatprep.subr.bf16.mxu1 %v7490_v45  ;;  %v7528_v45 = vld [vmem:[%s9289_s1 + $0xef8] sm:$0xff]   ;;  %v437_v46 = vpack.c.bf16 %v284_v42, %v284_v42 }
 0x19f   :  { %v7562_v39 = vld [vmem:[%s9289_s1 + $0xf38] sm:$0xff]  }
 0x1a0   :  { %6902 = vmatpush3.bf16.msra.mxu0 %v7491_v47  ;;  %v285_v47 = vcombine.high %v283_v43, %v283_v43  ;;  %v7563_v42 = vld [vmem:[%s9289_s1 + $0xfb8] sm:$0xff]  }
 0x1a1   :  { %6924 = vmatpush3.bf16.msra.mxu1 %v7492_v50  ;;  %6931 = vmatprep.subr.bf16.mxu0 %v7494_v53  ;;  %v438_v50 = vpack.c.bf16 %v283_v43, %v283_v43  ;;  %v7531_v53 = vld [vmem:[%s9289_s1 + $0xe70] sm:$0xff]  }
 0x1a2   :  { %6953 = vmatprep.subr.bf16.mxu1 %v7495_v54  ;;  %v439_v52 = vpack.c.bf16 %v285_v47, %v285_v47  ;;  %v7532_v54 = vld [vmem:[%s9289_s1 + $0xef0] sm:$0xff]  }
 0x1a3   :  { %v6639_v1 = vpop.f32.mrf.mxu0  ;;  %5544 = vmatmul.mubr.bf16.vlgmr.msra.gmra.mxu0 %v432_v58  ;;  %v7534_v58 = vld [vmem:[%s9289_s1 + $0xeb0] sm:$0xff]  }
 0x1a4   :  { %v6661_v2 = vpop.f32.mrf.mxu1  ;;  %5584 = vmatmul.mubr.bf16.vlgmr.msra.gmra.mxu1 %v434_v59  ;;  %6932 = vmatpush3.bf16.msra.mxu0 %v7496_v57  ;;  %v7535_v59 = vld [vmem:[%s9289_s1 + $0xe68] sm:$0xff]  }
 0x1a5   :  { %6954 = vmatpush3.bf16.msra.mxu1 %v7497_v60  ;;  %v6640_v5 = vpop.f32.mrf.mxu0  ;;  %6933 = vmatprep.subr.bf16.mxu0 %v7498_v62  ;;  %v7536_v62 = vld [vmem:[%s9289_s1 + $0xee8] sm:$0xff]  }
 0x1a6   :  { %v6662_v6 = vpop.f32.mrf.mxu1  ;;  %6955 = vmatprep.subr.bf16.mxu1 %v7499_v63  ;;  %v6641_v8 = vadd.f32 %v6640_v5, %v6639_v1  ;;  %5623 = vmatprep.mubr.bf16.mxu0 %v437_v46  ;;  %v7537_v1 = vld [vmem:[%s9289_s1 + $0xe28] sm:$0xff]  }
 0x1a7   :  { %v6663_v9 = vadd.f32 %v6662_v6, %v6661_v2  ;;  %v6642_v11 = vpop.f32.mrf.mxu0  ;;  %5663 = vmatprep.mubr.bf16.mxu1 %v439_v52  ;;  %v7539_v6 = vld [vmem:[%s9289_s1 + $0xe60] sm:$0xff]   ;;  %v7568_v52 = vld [vmem:[%s9289_s1 + $0xf68] sm:$0xff]  }
 0x1a8   :  { %v6664_v12 = vpop.f32.mrf.mxu1  ;;  %v5066_v14 = vadd.f32 %v6641_v8, %v8911_v28  ;;  %6934 = vmatpush3.bf16.msra.mxu0 %v7500_v0  ;;  %v7516_v28 = vld [vmem:[%s9289_s1 + $0xd10] sm:$0xff]   ;;  %v7541_v11 = vld [vmem:[%s9289_s1 + $0xe20] sm:$0xff]  }
 0x1a9   :  { %6956 = vmatpush3.bf16.msra.mxu1 %v7501_v3  ;;  %v6643_v16 = vpop.f32.mrf.mxu0  ;;  %6935 = vmatprep.subr.bf16.mxu0 %v7502_v4  ;;  %v7538_v4 = vld [vmem:[%s9289_s1 + $0xea8] sm:$0xff]   ;;  %v7542_v12 = vld [vmem:[%s9289_s1 + $0xea0] sm:$0xff]  }
 0x1aa   :  { %v6665_v17 = vpop.f32.mrf.mxu1  ;;  %6957 = vmatprep.subr.bf16.mxu1 %v7503_v7  ;;  %v9015_v19 = vadd.f32 %v6663_v9, %v5066_v14  ;;  %v7540_v9 = vld [vmem:[%s9289_s1 + $0xee0] sm:$0xff]   ;;  %v7544_v14 = vld [vmem:[%s9289_s1 + $0xed8] sm:$0xff]  }
 0x1ab   :  { %v7546_v16 = vld [vmem:[%s9289_s1 + $0xe98] sm:$0xff]   ;;  %v7547_v17 = vld [vmem:[%s9289_s1 + $0xe50] sm:$0xff]  }
 0x1ac   :  { %6936 = vmatpush3.bf16.msra.mxu0 %v7504_v10 }
 0x1ad   :  { %6958 = vmatpush3.bf16.msra.mxu1 %v7505_v13  ;;  %6937 = vmatprep.subr.bf16.mxu0 %v7506_v15  ;;  %v7543_v13 = vld [vmem:[%s9289_s1 + $0xe58] sm:$0xff]  }
 0x1ae   :  { %6959 = vmatprep.subr.bf16.mxu1 %v7507_v18  ;;  %v7545_v15 = vld [vmem:[%s9289_s1 + $0xe18] sm:$0xff]   ;;  %v7548_v18 = vld [vmem:[%s9289_s1 + $0xed0] sm:$0xff]  }
 0x1b0   :  { %6938 = vmatpush3.bf16.msra.mxu0 %v7508_v20  ;;  %v7550_v20 = vld [vmem:[%s9289_s1 + $0xe90] sm:$0xff]  }
 0x1b1   :  { %6960 = vmatpush3.bf16.msra.mxu1 %v7509_v21  ;;  %6939 = vmatprep.subr.bf16.mxu0 %v7510_v22  ;;  %v7551_v21 = vld [vmem:[%s9289_s1 + $0xe48] sm:$0xff]  }
 0x1b2   :  { %6961 = vmatprep.subr.bf16.mxu1 %v7511_v23  ;;  %v7552_v22 = vld [vmem:[%s9289_s1 + $0xec8] sm:$0xff]  }
 0x1b3   :  { %v7553_v23 = vld [vmem:[%s9289_s1 + $0xe08] sm:$0xff]  }
 0x1b4   :  { %6940 = vmatpush3.bf16.msra.mxu0 %v7512_v24  ;;  %v7554_v24 = vld [vmem:[%s9289_s1 + $0xe88] sm:$0xff]  }
 0x1b5   :  { %6962 = vmatpush3.bf16.msra.mxu1 %v7513_v25  ;;  %6941 = vmatprep.subr.bf16.mxu0 %v7514_v26  ;;  %v7555_v25 = vld [vmem:[%s9289_s1 + $0xe40] sm:$0xff]  }
 0x1b6   :  { %6963 = vmatprep.subr.bf16.mxu1 %v7515_v27  ;;  %v7556_v26 = vld [vmem:[%s9289_s1 + $0xec0] sm:$0xff]   ;;  %v30_v27 = vld [vmem:[%s9288_s0 + $0x70] sm:$0xff] }
 0x1b8   :  { %6942 = vmatpush3.bf16.msra.mxu0 %v7516_v28  ;;  %v7557_v28 = vld [vmem:[%s9289_s1 + $0xe00] sm:$0xff]  }
 0x1b9   :  { %6964 = vmatpush3.bf16.msra.mxu1 %v7517_v29  ;;  %6943 = vmatprep.subr.bf16.mxu0 %v7518_v30  ;;  %v293_v29 = vrot.slane %v30_v27, %v7742_v41  ;;  %v286_v30 = vcombine.high %v30_v27, %v30_v27 }
 0x1ba   :  { %6965 = vmatprep.subr.bf16.mxu1 %v7519_v31  ;;  %v7558_v31 = vld [vmem:[%s9289_s1 + $0xe80] sm:$0xff]  }
 0x1bb   :  { %v440_v38 = vpack.c.bf16 %v293_v29, %v293_v29 }
 0x1bc   :  { %6944 = vmatpush3.bf16.msra.mxu0 %v7520_v32  ;;  %v301_v32 = vcombine.high %v293_v29, %v293_v29 }
 0x1bd   :  { %6966 = vmatpush3.bf16.msra.mxu1 %v7521_v33  ;;  %6945 = vmatprep.subr.bf16.mxu0 %v7522_v34  ;;  %v300_v33 = vrot.slane %v286_v30, %v7742_v41  ;;  %v7560_v34 = vld [vmem:[%s9289_s1 + $0xf78] sm:$0xff]  }
 0x1be   :  { %6967 = vmatprep.subr.bf16.mxu1 %v7523_v35  ;;  %v7561_v35 = vld [vmem:[%s9289_s1 + $0xff8] sm:$0xff]   ;;  %v441_v36 = vpack.c.bf16 %v301_v32, %v301_v32 }
 0x1c0   :  { %6946 = vmatpush3.bf16.msra.mxu0 %v7524_v37  ;;  %v302_v37 = vcombine.high %v300_v33, %v300_v33 }
 0x1c1   :  { %6968 = vmatpush3.bf16.msra.mxu1 %v7525_v40  ;;  %6975 = vmatprep.subr.bf16.mxu0 %v7527_v44  ;;  %v442_v40 = vpack.c.bf16 %v300_v33, %v300_v33  ;;  %v7564_v44 = vld [vmem:[%s9289_s1 + $0xf70] sm:$0xff]  }
 0x1c2   :  { %6997 = vmatprep.subr.bf16.mxu1 %v7528_v45  ;;  %v443_v43 = vpack.c.bf16 %v302_v37, %v302_v37  ;;  %v7565_v45 = vld [vmem:[%s9289_s1 + $0xff0] sm:$0xff]  }
 0x1c3   :  { %v6683_v56 = vpop.f32.mrf.mxu0  ;;  %5624 = vmatmul.mubr.bf16.vlgmr.msra.gmra.mxu0 %v436_v49  ;;  %v7567_v49 = vld [vmem:[%s9289_s1 + $0xfb0] sm:$0xff]  }
 0x1c4   :  { %v6705_v57 = vpop.f32.mrf.mxu1  ;;  %5664 = vmatmul.mubr.bf16.vlgmr.msra.gmra.mxu1 %v438_v50  ;;  %6976 = vmatpush3.bf16.msra.mxu0 %v7529_v48  ;;  %v7566_v48 = vld [vmem:[%s9289_s1 + $0xf30] sm:$0xff]  }
 0x1c5   :  { %6998 = vmatpush3.bf16.msra.mxu1 %v7530_v51  ;;  %v6684_v60 = vpop.f32.mrf.mxu0  ;;  %6977 = vmatprep.subr.bf16.mxu0 %v7531_v53 }
 0x1c6   :  { %v6706_v61 = vpop.f32.mrf.mxu1  ;;  %6999 = vmatprep.subr.bf16.mxu1 %v7532_v54  ;;  %v6685_v63 = vadd.f32 %v6684_v60, %v6683_v56  ;;  %5703 = vmatprep.mubr.bf16.mxu0 %v441_v36  ;;  %v7571_v60 = vld [vmem:[%s9289_s1 + $0xfa8] sm:$0xff]  }
 0x1c7   :  { %v6707_v0 = vadd.f32 %v6706_v61, %v6705_v57  ;;  %v6686_v2 = vpop.f32.mrf.mxu0  ;;  %5743 = vmatprep.mubr.bf16.mxu1 %v443_v43 }
 0x1c8   :  { %v6708_v3 = vpop.f32.mrf.mxu1  ;;  %v5146_v5 = vadd.f32 %v6685_v63, %v9015_v19  ;;  %6978 = vmatpush3.bf16.msra.mxu0 %v7533_v55  ;;  %v7549_v19 = vld [vmem:[%s9289_s1 + $0xe10] sm:$0xff]   ;;  %v7569_v55 = vld [vmem:[%s9289_s1 + $0xfe8] sm:$0xff]   ;;  %v7572_v63 = vld [vmem:[%s9289_s1 + $0xf60] sm:$0xff]  }
 0x1c9   :  { %7000 = vmatpush3.bf16.msra.mxu1 %v7534_v58  ;;  %v6687_v7 = vpop.f32.mrf.mxu0  ;;  %6979 = vmatprep.subr.bf16.mxu0 %v7535_v59  ;;  %v7570_v58 = vld [vmem:[%s9289_s1 + $0xf28] sm:$0xff]   ;;  %v7574_v2 = vld [vmem:[%s9289_s1 + $0xf20] sm:$0xff]  }
 0x1ca   :  { %v6709_v8 = vpop.f32.mrf.mxu1  ;;  %7001 = vmatprep.subr.bf16.mxu1 %v7536_v62  ;;  %v9119_v10 = vadd.f32 %v6707_v0, %v5146_v5  ;;  %v7575_v3 = vld [vmem:[%s9289_s1 + $0xfa0] sm:$0xff]   ;;  %v7577_v5 = vld [vmem:[%s9289_s1 + $0xfd8] sm:$0xff]  }
 0x1cb   :  { %v7579_v7 = vld [vmem:[%s9289_s1 + $0xf98] sm:$0xff]   ;;  %v7580_v8 = vld [vmem:[%s9289_s1 + $0xf50] sm:$0xff]  }
 0x1cc   :  { %6980 = vmatpush3.bf16.msra.mxu0 %v7537_v1  ;;  %v7573_v1 = vld [vmem:[%s9289_s1 + $0xfe0] sm:$0xff]  }
 0x1cd   :  { %7002 = vmatpush3.bf16.msra.mxu1 %v7538_v4  ;;  %6981 = vmatprep.subr.bf16.mxu0 %v7539_v6  ;;  %v7576_v4 = vld [vmem:[%s9289_s1 + $0xf58] sm:$0xff]  }
 0x1ce   :  { %7003 = vmatprep.subr.bf16.mxu1 %v7540_v9  ;;  %v7578_v6 = vld [vmem:[%s9289_s1 + $0xf18] sm:$0xff]   ;;  %v7581_v9 = vld [vmem:[%s9289_s1 + $0xfd0] sm:$0xff]  }
 0x1d0   :  { %6982 = vmatpush3.bf16.msra.mxu0 %v7541_v11  ;;  %v7583_v11 = vld [vmem:[%s9289_s1 + $0xf90] sm:$0xff]  }
 0x1d1   :  { %7004 = vmatpush3.bf16.msra.mxu1 %v7542_v12  ;;  %6983 = vmatprep.subr.bf16.mxu0 %v7543_v13  ;;  %v7584_v12 = vld [vmem:[%s9289_s1 + $0xf48] sm:$0xff]  }
 0x1d2   :  { %7005 = vmatprep.subr.bf16.mxu1 %v7544_v14  ;;  %v7585_v13 = vld [vmem:[%s9289_s1 + $0xfc8] sm:$0xff]  }
 0x1d3   :  { %v7586_v14 = vld [vmem:[%s9289_s1 + $0xf08] sm:$0xff]  }
 0x1d4   :  { %6984 = vmatpush3.bf16.msra.mxu0 %v7545_v15  ;;  %v7587_v15 = vld [vmem:[%s9289_s1 + $0xf88] sm:$0xff]  }
 0x1d5   :  { %7006 = vmatpush3.bf16.msra.mxu1 %v7546_v16  ;;  %6985 = vmatprep.subr.bf16.mxu0 %v7547_v17  ;;  %v7588_v16 = vld [vmem:[%s9289_s1 + $0xf40] sm:$0xff]  }
 0x1d6   :  { %7007 = vmatprep.subr.bf16.mxu1 %v7548_v18  ;;  %v7589_v17 = vld [vmem:[%s9289_s1 + $0xfc0] sm:$0xff]   ;;  %v31_v18 = vld [vmem:[%s9288_s0 + $0x78] sm:$0xff] }
 0x1d8   :  { %6986 = vmatpush3.bf16.msra.mxu0 %v7549_v19 }
 0x1d9   :  { %7008 = vmatpush3.bf16.msra.mxu1 %v7550_v20  ;;  %6987 = vmatprep.subr.bf16.mxu0 %v7551_v21 }
 0x1da   :  { %7009 = vmatprep.subr.bf16.mxu1 %v7552_v22 }
 0x1dc   :  { %6988 = vmatpush3.bf16.msra.mxu0 %v7553_v23 }
 0x1dd   :  { %7010 = vmatpush3.bf16.msra.mxu1 %v7554_v24  ;;  %6989 = vmatprep.subr.bf16.mxu0 %v7555_v25 }
 0x1de   :  { %7011 = vmatprep.subr.bf16.mxu1 %v7556_v26 }
 0x1e0   :  { %6990 = vmatpush3.bf16.msra.mxu0 %v7557_v28 }
 0x1e1   :  { %7012 = vmatpush3.bf16.msra.mxu1 %v7558_v31  ;;  %7019 = vmatprep.subr.bf16.mxu0 %v7560_v34 }
 0x1e2   :  { %7041 = vmatprep.subr.bf16.mxu1 %v7561_v35 }
 0x1e3   :  { %v6727_v46 = vpop.f32.mrf.mxu0  ;;  %5704 = vmatmul.mubr.bf16.vlgmr.msra.gmra.mxu0 %v440_v38 }
 0x1e4   :  { %v6749_v47 = vpop.f32.mrf.mxu1  ;;  %5744 = vmatmul.mubr.bf16.vlgmr.msra.gmra.mxu1 %v442_v40  ;;  %7020 = vmatpush3.bf16.msra.mxu0 %v7562_v39 }
 0x1e5   :  { %7042 = vmatpush3.bf16.msra.mxu1 %v7563_v42  ;;  %v6728_v50 = vpop.f32.mrf.mxu0  ;;  %7021 = vmatprep.subr.bf16.mxu0 %v7564_v44 }
 0x1e6   :  { %v6750_v51 = vpop.f32.mrf.mxu1  ;;  %v6729_v53 = vadd.f32 %v6728_v50, %v6727_v46  ;;  %7043 = vmatprep.subr.bf16.mxu1 %v7565_v45 }
 0x1e7   :  { %v6751_v54 = vadd.f32 %v6750_v51, %v6749_v47  ;;  %v6730_v56 = vpop.f32.mrf.mxu0 }
 0x1e8   :  { %v6752_v57 = vpop.f32.mrf.mxu1  ;;  %v5226_v59 = vadd.f32 %v6729_v53, %v9119_v10  ;;  %7022 = vmatpush3.bf16.msra.mxu0 %v7566_v48  ;;  %v7582_v10 = vld [vmem:[%s9289_s1 + $0xf10] sm:$0xff]  }
 0x1e9   :  { %7044 = vmatpush3.bf16.msra.mxu1 %v7567_v49  ;;  %v6731_v61 = vpop.f32.mrf.mxu0  ;;  %7023 = vmatprep.subr.bf16.mxu0 %v7568_v52 }
 0x1ea   :  { %v6753_v62 = vpop.f32.mrf.mxu1  ;;  %v9220_v0 = vadd.f32 %v6751_v54, %v5226_v59  ;;  %7045 = vmatprep.subr.bf16.mxu1 %v7569_v55 }
 0x1ec   :  { %7024 = vmatpush3.bf16.msra.mxu0 %v7570_v58 }
 0x1ed   :  { %7046 = vmatpush3.bf16.msra.mxu1 %v7571_v60  ;;  %7025 = vmatprep.subr.bf16.mxu0 %v7572_v63 }
 0x1ee   :  { %7047 = vmatprep.subr.bf16.mxu1 %v7573_v1 }
 0x1f0   :  { %7026 = vmatpush3.bf16.msra.mxu0 %v7574_v2 }
 0x1f1   :  { %7048 = vmatpush3.bf16.msra.mxu1 %v7575_v3  ;;  %7027 = vmatprep.subr.bf16.mxu0 %v7576_v4 }
 0x1f2   :  { %7049 = vmatprep.subr.bf16.mxu1 %v7577_v5 }
 0x1f4   :  { %7028 = vmatpush3.bf16.msra.mxu0 %v7578_v6 }
 0x1f5   :  { %7050 = vmatpush3.bf16.msra.mxu1 %v7579_v7  ;;  %7029 = vmatprep.subr.bf16.mxu0 %v7580_v8 }
 0x1f6   :  { %7051 = vmatprep.subr.bf16.mxu1 %v7581_v9 }
 0x1f8   :  { %7030 = vmatpush3.bf16.msra.mxu0 %v7582_v10 }
 0x1f9   :  { %7052 = vmatpush3.bf16.msra.mxu1 %v7583_v11  ;;  %7031 = vmatprep.subr.bf16.mxu0 %v7584_v12 }
 0x1fa   :  { %7053 = vmatprep.subr.bf16.mxu1 %v7585_v13 }
 0x1fb   :  { %8 = vsyncpa [#allocation3], 0  ;;  %v310_v19 = vrot.slane %v31_v18, %v7742_v41  ;;  %v303_v20 = vcombine.high %v31_v18, %v31_v18  ;;  %v7590_v21 = vld [vmem:[%s9289_s1 + $0xf00] sm:$0xff]   ;;  %s7616_s0 = smov [#allocation2]  }
 0x1fc   :  { %7032 = vmatpush3.bf16.msra.mxu0 %v7586_v14  ;;  %v7591_v22 = vld [vmem:[%s9289_s1 + $0xf80] sm:$0xff]   ;;  %s5838_s1 = sshll.u32 %s7616_s0, 4  ;;  %s5839_s1 = int_to_ptr.vmem [resolvable:$true] %s5838_s1 }
 0x1fd   :  { %7054 = vmatpush3.bf16.msra.mxu1 %v7587_v15  ;;  %7033 = vmatprep.subr.bf16.mxu0 %v7588_v16  ;;  %v318_v23 = vcombine.high %v310_v19, %v310_v19  ;;  %v317_v24 = vrot.slane %v303_v20, %v7742_v41  ;;  %v444_v27 = vpack.c.bf16 %v310_v19, %v310_v19  ;;  %s7593_s23 = scalar_lea.vmem %s5839_s1, 32  ;;  %p7598_p1 = scmp.lt.s32.totalorder %s5839_s1, %s5839_s1 }
 0x1fe   :  { %7055 = vmatprep.subr.bf16.mxu1 %v7589_v17  ;;  %p7594_p0 = scmp.ne.s32.totalorder %s5839_s1, %s7593_s23  ;;  %p7599_p2 = scmp.lt.s32.totalorder %s7593_s23, %s7593_s23 }
 0x1ff   :  { %v445_v25 = vpack.c.bf16 %v318_v23, %v318_v23  ;;  %v319_v26 = vcombine.high %v317_v24, %v317_v24  ;;  %v446_v28 = vpack.c.bf16 %v317_v24, %v317_v24 }
 0x200   :  { %7034 = vmatpush3.bf16.msra.mxu0 %v7590_v21  ;;  %p7600_p3 = por %p7599_p2, %p7598_p1 }
 0x201   :  { %7056 = vmatpush3.bf16.msra.mxu1 %v7591_v22  ;;  %5783 = vmatprep.mubr.bf16.mxu0 %v445_v25  ;;  %v447_v29 = vpack.c.bf16 %v319_v26, %v319_v26 }
 0x202   :  { %p7601_p4 = pnand %p7600_p3, %p7594_p0 }
 0x203   :  { %5823 = vmatprep.mubr.bf16.mxu1 %v447_v29  ;;  %v6771_v30 = vpop.f32.mrf.mxu0  ;;  %5784 = vmatmul.mubr.bf16.vlgmr.msra.gmra.mxu0 %v444_v27 }
 0x204   :  { %v6793_v31 = vpop.f32.mrf.mxu1  ;;  %5824 = vmatmul.mubr.bf16.vlgmr.msra.gmra.mxu1 %v446_v28 }
 0x205   :  { %v6772_v32 = vpop.f32.mrf.mxu0 }
 0x206   :  { %v6794_v33 = vpop.f32.mrf.mxu1  ;;  %v6773_v34 = vadd.f32 %v6772_v32, %v6771_v30 }
 0x207   :  { %v6795_v35 = vadd.f32 %v6794_v33, %v6793_v31  ;;  %v6774_v36 = vpop.f32.mrf.mxu0 }
 0x208   :  { %v6796_v41 = vpop.f32.mrf.mxu1  ;;  %v5306_v37 = vadd.f32 %v6773_v34, %v9220_v0 }
 0x209   :  { %v6775_v38 = vpop.f32.mrf.mxu0 }
 0x20a   :  { %v6797_v39 = vpop.f32.mrf.mxu1  ;;  %v5346_v40 = vadd.f32 %v6795_v35, %v5306_v37 }
 0x223   :  { %v6815_v42 = vpop.f32.mrf.mxu0 }
 0x224   :  { %v6837_v43 = vpop.f32.mrf.mxu1 }
 0x225   :  { %v6816_v44 = vpop.f32.mrf.mxu0 }
 0x226   :  { %v6838_v45 = vpop.f32.mrf.mxu1  ;;  %v6817_v46 = vadd.f32 %v6816_v44, %v6815_v42 }
 0x227   :  { %v6839_v47 = vadd.f32 %v6838_v45, %v6837_v43  ;;  %v6818_v48 = vpop.f32.mrf.mxu0 }
 0x228   :  { %v6840_v49 = vpop.f32.mrf.mxu1  ;;  %v5386_v50 = vadd.f32 %v6817_v46, %v5346_v40 }
 0x229   :  { %v6819_v51 = vpop.f32.mrf.mxu0 }
 0x22a   :  { %v6841_v52 = vpop.f32.mrf.mxu1  ;;  %v5426_v53 = vadd.f32 %v6839_v47, %v5386_v50 }
 0x243   :  { %v6859_v54 = vpop.f32.mrf.mxu0 }
 0x244   :  { %v6881_v55 = vpop.f32.mrf.mxu1 }
 0x245   :  { %v6860_v56 = vpop.f32.mrf.mxu0 }
 0x246   :  { %v6882_v57 = vpop.f32.mrf.mxu1  ;;  %v6861_v58 = vadd.f32 %v6860_v56, %v6859_v54 }
 0x247   :  { %v6883_v59 = vadd.f32 %v6882_v57, %v6881_v55  ;;  %v6862_v60 = vpop.f32.mrf.mxu0 }
 0x248   :  { %v6884_v61 = vpop.f32.mrf.mxu1  ;;  %v5466_v62 = vadd.f32 %v6861_v58, %v5426_v53 }
 0x249   :  { %v6863_v63 = vpop.f32.mrf.mxu0 }
 0x24a   :  { %v6885_v0 = vpop.f32.mrf.mxu1  ;;  %v5506_v1 = vadd.f32 %v6883_v59, %v5466_v62 }
 0x263   :  { %v6903_v2 = vpop.f32.mrf.mxu0 }
 0x264   :  { %v6925_v3 = vpop.f32.mrf.mxu1 }
 0x265   :  { %v6904_v4 = vpop.f32.mrf.mxu0 }
 0x266   :  { %v6926_v5 = vpop.f32.mrf.mxu1  ;;  %v6905_v6 = vadd.f32 %v6904_v4, %v6903_v2 }
 0x267   :  { %v6927_v7 = vadd.f32 %v6926_v5, %v6925_v3  ;;  %v6906_v8 = vpop.f32.mrf.mxu0 }
 0x268   :  { %v6928_v9 = vpop.f32.mrf.mxu1  ;;  %v5546_v10 = vadd.f32 %v6905_v6, %v5506_v1 }
 0x269   :  { %v6907_v11 = vpop.f32.mrf.mxu0 }
 0x26a   :  { %v6929_v12 = vpop.f32.mrf.mxu1  ;;  %v5586_v13 = vadd.f32 %v6927_v7, %v5546_v10 }
 0x283   :  { %v6947_v14 = vpop.f32.mrf.mxu0 }
 0x284   :  { %v6969_v15 = vpop.f32.mrf.mxu1 }
 0x285   :  { %v6948_v16 = vpop.f32.mrf.mxu0 }
 0x286   :  { %v6970_v17 = vpop.f32.mrf.mxu1  ;;  %v6949_v30 = vadd.f32 %v6948_v16, %v6947_v14 }
 0x287   :  { %v6950_v18 = vpop.f32.mrf.mxu0  ;;  %v6971_v32 = vadd.f32 %v6970_v17, %v6969_v15 }
 0x288   :  { %v6972_v19 = vpop.f32.mrf.mxu1  ;;  %v5626_v31 = vadd.f32 %v6949_v30, %v5586_v13 }
 0x289   :  { %v6951_v20 = vpop.f32.mrf.mxu0 }
 0x28a   :  { %v6973_v21 = vpop.f32.mrf.mxu1  ;;  %v5666_v34 = vadd.f32 %v6971_v32, %v5626_v31 }
 0x2a3   :  { %v6991_v22 = vpop.f32.mrf.mxu0 }
 0x2a4   :  { %v7013_v23 = vpop.f32.mrf.mxu1 }
 0x2a5   :  { %v6992_v24 = vpop.f32.mrf.mxu0 }
 0x2a6   :  { %v7014_v25 = vpop.f32.mrf.mxu1  ;;  %v6993_v33 = vadd.f32 %v6992_v24, %v6991_v22 }
 0x2a7   :  { %v6994_v26 = vpop.f32.mrf.mxu0  ;;  %v7015_v36 = vadd.f32 %v7014_v25, %v7013_v23 }
 0x2a8   :  { %v7016_v27 = vpop.f32.mrf.mxu1  ;;  %v5706_v35 = vadd.f32 %v6993_v33, %v5666_v34 }
 0x2a9   :  { %v6995_v28 = vpop.f32.mrf.mxu0 }
 0x2aa   :  { %v7017_v29 = vpop.f32.mrf.mxu1  ;;  %v5746_v39 = vadd.f32 %v7015_v36, %v5706_v35 }
 0x2c3   :  { %v7035_v41 = vpop.f32.mrf.mxu0 }
 0x2c4   :  { %v7057_v37 = vpop.f32.mrf.mxu1 }
 0x2c5   :  { %v7036_v38 = vpop.f32.mrf.mxu0 }
 0x2c6   :  { %v7037_v40 = vadd.f32 %v7036_v38, %v7035_v41  ;;  %v7058_v42 = vpop.f32.mrf.mxu1 }
 0x2c7   :  { %v7038_v43 = vpop.f32.mrf.mxu0  ;;  %v7059_v45 = vadd.f32 %v7058_v42, %v7057_v37 }
 0x2c8   :  { %v5786_v44 = vadd.f32 %v7037_v40, %v5746_v39  ;;  %v7060_v46 = vpop.f32.mrf.mxu1 }
 0x2c9   :  { %v7039_v47 = vpop.f32.mrf.mxu0 }
 0x2ca   :  { %v7061_v48 = vpop.f32.mrf.mxu1  ;;  %v5826_v49 = vadd.f32 %v7059_v45, %v5786_v44 }
 0x2cc   :  { %5831 = vst [vmem:[#allocation2] sm:$0x3] %v5826_v49 }
 0x2cd   :  { %7604 = shalt.err (!%p7601_p4)
}
 0x2ce   :  { %5841 = dma.vmem_to_hbm [thread:$0]  %s5839_s1, 32, %s9291_s3, [#allocation3]  }
 0x2cf   :  { %7613 = dma.done.wait [#allocation3], 32  }
 0x2d0   :  { %7614 = vsyncadd [#allocation3], 4294967264 }
 0x2d1   :  { %5845 = vsyncpa [#allocation3], 1 }

</bundles_post_ra>
